<compile_context>
chip_gen: v6e
topology: v6e:2x2x1
jax: 0.10.0
libtpu: 0.0.40
codegen_flags: <defaults>
</compile_context>

<pallas_src>
import functools

import jax
import jax.numpy as jnp
from jax.experimental import pallas as pl
from jax.experimental.pallas import tpu as pltpu

_BN_EPS = 1e-5


def _vmem_limit(nbytes):
    # Derived from actual block sizes; clamp so it stays legal on v7x (64 MiB
    # physical VMEM) and never below the v5e default scoped limit.
    return int(min(max(2 * int(nbytes), 16 * 1024 * 1024), 64 * 1024 * 1024))


# ----------------------------------------------------------------------------
# Pallas kernels
# ----------------------------------------------------------------------------
def _convt_gemm_stats_kernel(cols_ref, w_ref, raw_ref, sum_ref, sq_ref, *,
                             m_total, tile_m):
    # cols_ref: (tile_m, K*K*Cin) bf16    w_ref: (K*K*Cin, Cout) bf16 (resident)
    # raw_ref : (tile_m, Cout) f32  -- un-normalized conv output tile
    # sum_ref / sq_ref: (1, Cout) f32 accumulators, resident across the grid.
    i = pl.program_id(0)

    @pl.when(i == 0)
    def _():
        sum_ref[...] = jnp.zeros_like(sum_ref)
        sq_ref[...] = jnp.zeros_like(sq_ref)

    acc = jnp.dot(cols_ref[...], w_ref[...], preferred_element_type=jnp.float32)
    raw_ref[...] = acc

    # Mask rows of the (possibly ragged) last tile out of the batch statistics.
    row = jax.lax.broadcasted_iota(jnp.int32, (acc.shape[0], 1), 0) + i * tile_m
    acc_m = jnp.where(row < m_total, acc, 0.0)
    sum_ref[...] += jnp.sum(acc_m, axis=0, keepdims=True)
    sq_ref[...] += jnp.sum(acc_m * acc_m, axis=0, keepdims=True)


def _bn_relu_kernel(raw_ref, sum_ref, sq_ref, gamma_ref, beta_ref, o_ref, *,
                    m_total):
    # BatchNorm2d (training-mode batch stats over M = N*OH*OW, biased var)
    # folded into a single per-channel scale/shift, then ReLU.
    inv_m = 1.0 / m_total
    mean = sum_ref[...] * inv_m
    # Clamp: single-pass E[x^2] - mean^2 can cancel slightly negative in f32.
    var = jnp.maximum(sq_ref[...] * inv_m - mean * mean, 0.0)
    scale = gamma_ref[...] * jax.lax.rsqrt(var + _BN_EPS)
    shift = beta_ref[...] - mean * scale
    o_ref[...] = jnp.maximum(raw_ref[...] * scale + shift, 0.0)


def _convt_tanh_kernel(cols_ref, wt_ref, b_ref, o_ref):
    # cols_ref: (tile_m, K*K*Cin) bf16    wt_ref: (Cout, K*K*Cin) bf16
    # o_ref: (Cout, tile_m) f32 -- M on the lane axis => lane-dense stores
    # even for Cout == 1.
    acc = jax.lax.dot_general(
        wt_ref[...], cols_ref[...],
        dimension_numbers=(((1,), (1,)), ((), ())),
        preferred_element_type=jnp.float32)
    o_ref[...] = jnp.tanh(acc + b_ref[...])


# ----------------------------------------------------------------------------
# JAX glue: ConvTranspose2d -> dilate + pad + im2col (taps folded into lanes)
# ----------------------------------------------------------------------------
def _transposed_conv_cols(x_nhwc, kernel_size, stride):
    # TODO(synk): move this tap-gather (im2col) inside the Pallas kernels (or
    # fuse all four layers over a batch grid) to avoid materializing the
    # K*K-times blown-up `cols` in HBM at large batch sizes.
    x_nhwc = x_nhwc.astype(jnp.bfloat16)
    n, h, w, c = x_nhwc.shape
    if stride > 1:
        hd = (h - 1) * stride + 1
        wd = (w - 1) * stride + 1
        xd = jnp.zeros((n, hd, wd, c), x_nhwc.dtype)
        xd = xd.at[:, ::stride, ::stride, :].set(x_nhwc)
    else:
        xd = x_nhwc
    p = kernel_size - 1
    xp = jnp.pad(xd, ((0, 0), (p, p), (p, p), (0, 0)))
    ph, pw = xp.shape[1], xp.shape[2]
    oh = ph - kernel_size + 1  # == (h - 1) * stride + kernel_size
    ow = pw - kernel_size + 1
    taps = []
    for kh in range(kernel_size):          # kh-major, kw next, cin minor
        for kw in range(kernel_size):
            taps.append(xp[:, kh:kh + oh, kw:kw + ow, :])
    cols = jnp.concatenate(taps, axis=-1)  # (N, OH, OW, K*K*Cin) bf16
    return cols.reshape(n * oh * ow, kernel_size * kernel_size * c), (n, oh, ow)


def _prep_weight(w_pt, kernel_size):
    # PyTorch ConvTranspose2d weight: (Cin, Cout, K, K)
    # -> (K, K, Cin, Cout), spatially flipped -> (K*K*Cin, Cout), bf16.
    w = jnp.transpose(w_pt, (2, 3, 0, 1))[::-1, ::-1]
    cin, cout = w.shape[2], w.shape[3]
    return w.reshape(kernel_size * kernel_size * cin, cout).astype(jnp.bfloat16)


# ----------------------------------------------------------------------------
# Blocks
# ----------------------------------------------------------------------------
def _bn_relu_block(x_nhwc, params, kernel_size, stride, tile_m=512):
    cols, (n, oh, ow) = _transposed_conv_cols(x_nhwc, kernel_size, stride)
    w = _prep_weight(params["w"], kernel_size)           # (K*K*Cin, Cout) bf16
    kkc, cout = w.shape
    m = cols.shape[0]
    tm = m if m <= tile_m else tile_m                     # exact fit for small M
    grid = (pl.cdiv(m, tm),)
    gamma = params["gamma"].reshape(1, cout).astype(jnp.float32)
    beta = params["beta"].reshape(1, cout).astype(jnp.float32)

    # Pass 1: tiled GEMM + batch-stat accumulation (reduction axis -> arbitrary).
    gemm_bytes = 2 * (tm * kkc * 2) + kkc * cout * 2 + 2 * (tm * cout * 4)
    raw, csum, csq = pl.pallas_call(
        functools.partial(_convt_gemm_stats_kernel, m_total=m, tile_m=tm),
        out_shape=(jax.ShapeDtypeStruct((m, cout), jnp.float32),
                   jax.ShapeDtypeStruct((1, cout), jnp.float32),
                   jax.ShapeDtypeStruct((1, cout), jnp.float32)),
        grid=grid,
        in_specs=[pl.BlockSpec((tm, kkc), lambda i: (i, 0)),
                  pl.BlockSpec((kkc, cout), lambda i: (0, 0))],
        out_specs=(pl.BlockSpec((tm, cout), lambda i: (i, 0)),
                   pl.BlockSpec((1, cout), lambda i: (0, 0)),
                   pl.BlockSpec((1, cout), lambda i: (0, 0))),
        compiler_params=pltpu.CompilerParams(
            dimension_semantics=("arbitrary",),
            vmem_limit_bytes=_vmem_limit(gemm_bytes)),
    )(cols, w)

    # Pass 2: fused BN affine + ReLU, independent tiles ("parallel").
    bn_bytes = 4 * (tm * cout * 4)
    out2d = pl.pallas_call(
        functools.partial(_bn_relu_kernel, m_total=m),
        out_shape=jax.ShapeDtypeStruct((m, cout), jnp.float32),
        grid=grid,
        in_specs=[pl.BlockSpec((tm, cout), lambda i: (i, 0)),
                  pl.BlockSpec((1, cout), lambda i: (0, 0)),
                  pl.BlockSpec((1, cout), lambda i: (0, 0)),
                  pl.BlockSpec((1, cout), lambda i: (0, 0)),
                  pl.BlockSpec((1, cout), lambda i: (0, 0))],
        out_specs=pl.BlockSpec((tm, cout), lambda i: (i, 0)),
        compiler_params=pltpu.CompilerParams(
            dimension_semantics=("parallel",),
            vmem_limit_bytes=_vmem_limit(bn_bytes)),
    )(raw, csum, csq, gamma, beta)
    return out2d.reshape(n, oh, ow, cout)


def _tanh_block_nchw(x_nhwc, params, kernel_size, stride, tile_m=1024):
    # Final layer: tiled over M (cdiv grid, ragged last tile -- no pad copy),
    # output stored transposed (Cout, M) so stores are lane-dense.
    cols, (n, oh, ow) = _transposed_conv_cols(x_nhwc, kernel_size, stride)
    w = _prep_weight(params["w"], kernel_size)            # (K*K*Cin, Cout) bf16
    kkc, cout = w.shape
    wt = jnp.transpose(w)                                  # (Cout, K*K*Cin)
    b = params["b"].reshape(cout, 1).astype(jnp.float32)
    m = cols.shape[0]
    tm = m if m <= tile_m else tile_m
    nbytes = 2 * (tm * kkc * 2) + cout * kkc * 2 + 2 * (cout * tm * 4)
    out = pl.pallas_call(
        _convt_tanh_kernel,
        out_shape=jax.ShapeDtypeStruct((cout, m), jnp.float32),
        grid=(pl.cdiv(m, tm),),
        in_specs=[
            pl.BlockSpec((tm, kkc), lambda i: (i, 0)),
            pl.BlockSpec((cout, kkc), lambda i: (0, 0)),
            pl.BlockSpec((cout, 1), lambda i: (0, 0)),
        ],
        out_specs=pl.BlockSpec((cout, tm), lambda i: (0, i)),
        compiler_params=pltpu.CompilerParams(
            dimension_semantics=("parallel",),
            vmem_limit_bytes=_vmem_limit(nbytes)),
    )(cols, wt, b)
    out = out.reshape(cout, n, oh, ow)
    return jnp.transpose(out, (1, 0, 2, 3))                # NCHW


# ----------------------------------------------------------------------------
# Generator
# ----------------------------------------------------------------------------
# (kernel_size, stride, final_layer) per block -- static Python data.
CFG = (
    (3, 2, False),
    (4, 1, False),
    (3, 2, False),
    (4, 2, True),
)


def init_generator_params(key, input_dim=10, im_chan=1, hidden_dim=64):
    chans = [input_dim, hidden_dim * 4, hidden_dim * 2, hidden_dim, im_chan]
    params = []
    for (k, _s, final), cin, cout in zip(CFG, chans[:-1], chans[1:]):
        key, kw_, kb_ = jax.random.split(key, 3)
        p = {"w": 0.05 * jax.random.normal(kw_, (cin, cout, k, k), jnp.float32)}
        if final:
            p["b"] = 0.05 * jax.random.normal(kb_, (cout,), jnp.float32)
        else:
            # ConvTranspose bias is exactly cancelled by training-mode BatchNorm
            # (mean subtraction), so it is omitted -- mathematically equivalent.
            p["gamma"] = jnp.ones((cout,), jnp.float32)
            p["beta"] = jnp.zeros((cout,), jnp.float32)
        params.append(p)
    return params


@functools.partial(jax.jit, static_argnames=("input_dim",))
def generator_forward(noise, params, *, input_dim=10):
    # noise: (N, input_dim) -> NHWC (N, 1, 1, input_dim)
    n = noise.shape[0]
    x = noise.reshape(n, 1, 1, input_dim)
    for p, (k, s, final) in zip(params, CFG):
        if final:
            x = _tanh_block_nchw(x, p, k, s)
        else:
            x = _bn_relu_block(x, p, k, s)
    return x  # (N, im_chan, 28, 28), PyTorch NCHW convention


if __name__ == "__main__":
    batch = 2
    input_dim = 10
    hidden_dim = 16  # small hidden dim; spatial pipeline 1->3->6->13->28 unchanged
    im_chan = 1

    key = jax.random.PRNGKey(0)
    key, knoise = jax.random.split(key)
    noise = jax.random.normal(knoise, (batch, input_dim), jnp.float32)

    params = init_generator_params(
        key, input_dim=input_dim, im_chan=im_chan, hidden_dim=hidden_dim)

    out = generator_forward(noise, params, input_dim=input_dim)
    out = jax.block_until_ready(out)

    assert out.shape == (batch, im_chan, 28, 28), out.shape
    assert bool(jnp.all(jnp.isfinite(out)))
    assert bool(jnp.all(jnp.abs(out) <= 1.0 + 1e-6))  # tanh range
    print("KERNEL_OK")
</pallas_src>

<mosaic_0001>
module attributes {stable_mosaic.version = 11 : i64} {
  func.func @_convt_gemm_stats_kernel(%arg0: i32, %arg1: memref<18x90xbf16, #tpu.memory_space<vmem>>, %arg2: memref<90x64xbf16, #tpu.memory_space<vmem>>, %arg3: memref<18x64xf32, #tpu.memory_space<vmem>>, %arg4: memref<1x64xf32, #tpu.memory_space<vmem>>, %arg5: memref<1x64xf32, #tpu.memory_space<vmem>>) attributes {dimension_semantics = [#tpu.dimension_semantics<arbitrary>], iteration_bounds = array<i64: 1>, scalar_prefetch = 0 : i64, scratch_operands = 0 : i64, tpu.core_type = #tpu.core_type<tc>, window_params = [{transform_indices = @transform_0, window_bounds = array<i64: 18, 90>}, {pipeline_mode = #tpu.pipeline_mode<synchronous>, transform_indices = @transform_1, window_bounds = array<i64: 90, 64>}, {transform_indices = @transform_2, window_bounds = array<i64: 18, 64>}, {pipeline_mode = #tpu.pipeline_mode<synchronous>, transform_indices = @transform_3, window_bounds = array<i64: 1, 64>}, {pipeline_mode = #tpu.pipeline_mode<synchronous>, transform_indices = @transform_4, window_bounds = array<i64: 1, 64>}]} {
    %c0_i32 = arith.constant 0 : i32
    %0 = arith.cmpi eq, %arg0, %c0_i32 : i32
    %1 = arith.extui %0 : i1 to i32
    %c0_i32_0 = arith.constant 0 : i32
    %2 = arith.cmpi ne, %1, %c0_i32_0 : i32
    scf.if %2 {
      %cst_18 = arith.constant 0.000000e+00 : f32
      %28 = vector.broadcast %cst_18 : f32 to vector<1x64xf32>
      %c0_19 = arith.constant 0 : index
      %c0_20 = arith.constant 0 : index
      %29 = vector.load %arg4[%c0_19, %c0_20] : memref<1x64xf32, #tpu.memory_space<vmem>>, vector<1x64xf32>
      tpu.vector_store %arg4[%c0_19, %c0_20], %28 {strides = array<i32>} : memref<1x64xf32, #tpu.memory_space<vmem>>, vector<1x64xf32>,
      %cst_21 = arith.constant 0.000000e+00 : f32
      %30 = vector.broadcast %cst_21 : f32 to vector<1x64xf32>
      %c0_22 = arith.constant 0 : index
      %c0_23 = arith.constant 0 : index
      %31 = vector.load %arg5[%c0_22, %c0_23] : memref<1x64xf32, #tpu.memory_space<vmem>>, vector<1x64xf32>
      tpu.vector_store %arg5[%c0_22, %c0_23], %30 {strides = array<i32>} : memref<1x64xf32, #tpu.memory_space<vmem>>, vector<1x64xf32>,
    } else {
    }
    %c0 = arith.constant 0 : index
    %c0_1 = arith.constant 0 : index
    %3 = vector.load %arg1[%c0, %c0_1] : memref<18x90xbf16, #tpu.memory_space<vmem>>, vector<18x90xbf16>
    %c0_2 = arith.constant 0 : index
    %c0_3 = arith.constant 0 : index
    %4 = vector.load %arg2[%c0_2, %c0_3] : memref<90x64xbf16, #tpu.memory_space<vmem>>, vector<90x64xbf16>
    %cst = arith.constant dense<0.000000e+00> : vector<18x64xf32>
    %5 = tpu.matmul %3, %4, %cst {dimension_numbers = #tpu.dot_dimension_numbers<[1], [0], [0], [1], [0, 0, 1, 1], [], []>} : vector<18x90xbf16>, vector<90x64xbf16>, vector<18x64xf32> -> vector<18x64xf32>
    %c0_4 = arith.constant 0 : index
    %c0_5 = arith.constant 0 : index
    %6 = vector.load %arg3[%c0_4, %c0_5] : memref<18x64xf32, #tpu.memory_space<vmem>>, vector<18x64xf32>
    tpu.vector_store %arg3[%c0_4, %c0_5], %5 {strides = array<i32>} : memref<18x64xf32, #tpu.memory_space<vmem>>, vector<18x64xf32>,
    %7 = tpu.iota {dimensions = array<i32: 0>} : vector<18x1xi32>
    %c18_i32 = arith.constant 18 : i32
    %8 = arith.muli %arg0, %c18_i32 : i32
    %9 = vector.broadcast %8 : i32 to vector<18x1xi32>
    %10 = arith.addi %7, %9 : vector<18x1xi32>
    %c18_i32_6 = arith.constant 18 : i32
    %11 = vector.broadcast %c18_i32_6 : i32 to vector<18x1xi32>
    %12 = arith.cmpi slt, %10, %11 : vector<18x1xi32>
    %cst_7 = arith.constant 0.000000e+00 : f32
    %13 = vector.shape_cast %12 : vector<18x1xi1> to vector<18x1xi1>
    %14 = vector.broadcast %13 : vector<18x1xi1> to vector<18x64xi1>
    %15 = vector.broadcast %cst_7 : f32 to vector<18x64xf32>
    %16 = arith.select %14, %5, %15 : vector<18x64xi1>, vector<18x64xf32>
    %c0_8 = arith.constant 0 : index
    %c0_9 = arith.constant 0 : index
    %17 = vector.load %arg4[%c0_8, %c0_9] : memref<1x64xf32, #tpu.memory_space<vmem>>, vector<1x64xf32>
    %cst_10 = arith.constant dense<0.000000e+00> : vector<64xf32>
    %18 = vector.multi_reduction <add>, %16, %cst_10 [0] : vector<18x64xf32> to vector<64xf32>
    %19 = vector.shape_cast %18 : vector<64xf32> to vector<1x64xf32>
    %20 = arith.addf %17, %19 : vector<1x64xf32>
    %c0_11 = arith.constant 0 : index
    %c0_12 = arith.constant 0 : index
    %21 = vector.load %arg4[%c0_11, %c0_12] : memref<1x64xf32, #tpu.memory_space<vmem>>, vector<1x64xf32>
    tpu.vector_store %arg4[%c0_11, %c0_12], %20 {strides = array<i32>} : memref<1x64xf32, #tpu.memory_space<vmem>>, vector<1x64xf32>,
    %c0_13 = arith.constant 0 : index
    %c0_14 = arith.constant 0 : index
    %22 = vector.load %arg5[%c0_13, %c0_14] : memref<1x64xf32, #tpu.memory_space<vmem>>, vector<1x64xf32>
    %23 = arith.mulf %16, %16 : vector<18x64xf32>
    %cst_15 = arith.constant dense<0.000000e+00> : vector<64xf32>
    %24 = vector.multi_reduction <add>, %23, %cst_15 [0] : vector<18x64xf32> to vector<64xf32>
    %25 = vector.shape_cast %24 : vector<64xf32> to vector<1x64xf32>
    %26 = arith.addf %22, %25 : vector<1x64xf32>
    %c0_16 = arith.constant 0 : index
    %c0_17 = arith.constant 0 : index
    %27 = vector.load %arg5[%c0_16, %c0_17] : memref<1x64xf32, #tpu.memory_space<vmem>>, vector<1x64xf32>
    tpu.vector_store %arg5[%c0_16, %c0_17], %26 {strides = array<i32>} : memref<1x64xf32, #tpu.memory_space<vmem>>, vector<1x64xf32>,
    return
  }
  func.func @transform_0(%arg0: i32) -> (i32, i32) {
    %c0_i32 = arith.constant 0 : i32
    %c0_i32_0 = arith.constant 0 : i32
    return %arg0, %c0_i32 : i32, i32
  }
  func.func @transform_1(%arg0: i32) -> (i32, i32) {
    %c0_i32 = arith.constant 0 : i32
    %c0_i32_0 = arith.constant 0 : i32
    %c0_i32_1 = arith.constant 0 : i32
    return %c0_i32, %c0_i32_0 : i32, i32
  }
  func.func @transform_2(%arg0: i32) -> (i32, i32) {
    %c0_i32 = arith.constant 0 : i32
    %c0_i32_0 = arith.constant 0 : i32
    return %arg0, %c0_i32 : i32, i32
  }
  func.func @transform_3(%arg0: i32) -> (i32, i32) {
    %c0_i32 = arith.constant 0 : i32
    %c0_i32_0 = arith.constant 0 : i32
    %c0_i32_1 = arith.constant 0 : i32
    return %c0_i32, %c0_i32_0 : i32, i32
  }
  func.func @transform_4(%arg0: i32) -> (i32, i32) {
    %c0_i32 = arith.constant 0 : i32
    %c0_i32_0 = arith.constant 0 : i32
    %c0_i32_1 = arith.constant 0 : i32
    return %c0_i32, %c0_i32_0 : i32, i32
  }
}

module attributes {stable_mosaic.version = 11 : i64} {
  func.func @_bn_relu_kernel(%arg0: i32, %arg1: memref<18x64xf32, #tpu.memory_space<vmem>>, %arg2: memref<1x64xf32, #tpu.memory_space<vmem>>, %arg3: memref<1x64xf32, #tpu.memory_space<vmem>>, %arg4: memref<1x64xf32, #tpu.memory_space<vmem>>, %arg5: memref<1x64xf32, #tpu.memory_space<vmem>>, %arg6: memref<18x64xf32, #tpu.memory_space<vmem>>) attributes {dimension_semantics = [#tpu.dimension_semantics<parallel>], iteration_bounds = array<i64: 1>, scalar_prefetch = 0 : i64, scratch_operands = 0 : i64, tpu.core_type = #tpu.core_type<tc>, window_params = [{transform_indices = @transform_0, window_bounds = array<i64: 18, 64>}, {pipeline_mode = #tpu.pipeline_mode<synchronous>, transform_indices = @transform_1, window_bounds = array<i64: 1, 64>}, {pipeline_mode = #tpu.pipeline_mode<synchronous>, transform_indices = @transform_2, window_bounds = array<i64: 1, 64>}, {pipeline_mode = #tpu.pipeline_mode<synchronous>, transform_indices = @transform_3, window_bounds = array<i64: 1, 64>}, {pipeline_mode = #tpu.pipeline_mode<synchronous>, transform_indices = @transform_4, window_bounds = array<i64: 1, 64>}, {transform_indices = @transform_5, window_bounds = array<i64: 18, 64>}]} {
    %c0 = arith.constant 0 : index
    %c0_0 = arith.constant 0 : index
    %0 = vector.load %arg2[%c0, %c0_0] : memref<1x64xf32, #tpu.memory_space<vmem>>, vector<1x64xf32>
    %cst = arith.constant 0.055555556 : f32
    %1 = vector.broadcast %cst : f32 to vector<1x64xf32>
    %2 = arith.mulf %0, %1 : vector<1x64xf32>
    %c0_1 = arith.constant 0 : index
    %c0_2 = arith.constant 0 : index
    %3 = vector.load %arg3[%c0_1, %c0_2] : memref<1x64xf32, #tpu.memory_space<vmem>>, vector<1x64xf32>
    %cst_3 = arith.constant 0.055555556 : f32
    %4 = vector.broadcast %cst_3 : f32 to vector<1x64xf32>
    %5 = arith.mulf %3, %4 : vector<1x64xf32>
    %6 = arith.mulf %2, %2 : vector<1x64xf32>
    %7 = arith.subf %5, %6 : vector<1x64xf32>
    %cst_4 = arith.constant 0.000000e+00 : f32
    %8 = vector.broadcast %cst_4 : f32 to vector<1x64xf32>
    %9 = arith.maximumf %7, %8 : vector<1x64xf32>
    %c0_5 = arith.constant 0 : index
    %c0_6 = arith.constant 0 : index
    %10 = vector.load %arg4[%c0_5, %c0_6] : memref<1x64xf32, #tpu.memory_space<vmem>>, vector<1x64xf32>
    %cst_7 = arith.constant 9.99999974E-6 : f32
    %11 = vector.broadcast %cst_7 : f32 to vector<1x64xf32>
    %12 = arith.addf %9, %11 : vector<1x64xf32>
    %13 = math.rsqrt %12 : vector<1x64xf32>
    %14 = arith.mulf %10, %13 : vector<1x64xf32>
    %c0_8 = arith.constant 0 : index
    %c0_9 = arith.constant 0 : index
    %15 = vector.load %arg5[%c0_8, %c0_9] : memref<1x64xf32, #tpu.memory_space<vmem>>, vector<1x64xf32>
    %16 = arith.mulf %2, %14 : vector<1x64xf32>
    %17 = arith.subf %15, %16 : vector<1x64xf32>
    %c0_10 = arith.constant 0 : index
    %c0_11 = arith.constant 0 : index
    %18 = vector.load %arg1[%c0_10, %c0_11] : memref<18x64xf32, #tpu.memory_space<vmem>>, vector<18x64xf32>
    %19 = vector.broadcast %14 : vector<1x64xf32> to vector<18x64xf32>
    %20 = arith.mulf %18, %19 : vector<18x64xf32>
    %21 = vector.broadcast %17 : vector<1x64xf32> to vector<18x64xf32>
    %22 = arith.addf %20, %21 : vector<18x64xf32>
    %cst_12 = arith.constant 0.000000e+00 : f32
    %23 = vector.broadcast %cst_12 : f32 to vector<18x64xf32>
    %24 = arith.maximumf %22, %23 : vector<18x64xf32>
    %c0_13 = arith.constant 0 : index
    %c0_14 = arith.constant 0 : index
    %25 = vector.load %arg6[%c0_13, %c0_14] : memref<18x64xf32, #tpu.memory_space<vmem>>, vector<18x64xf32>
    tpu.vector_store %arg6[%c0_13, %c0_14], %24 {strides = array<i32>} : memref<18x64xf32, #tpu.memory_space<vmem>>, vector<18x64xf32>,
    return
  }
  func.func @transform_0(%arg0: i32) -> (i32, i32) {
    %c0_i32 = arith.constant 0 : i32
    %c0_i32_0 = arith.constant 0 : i32
    return %arg0, %c0_i32 : i32, i32
  }
  func.func @transform_1(%arg0: i32) -> (i32, i32) {
    %c0_i32 = arith.constant 0 : i32
    %c0_i32_0 = arith.constant 0 : i32
    %c0_i32_1 = arith.constant 0 : i32
    return %c0_i32, %c0_i32_0 : i32, i32
  }
  func.func @transform_2(%arg0: i32) -> (i32, i32) {
    %c0_i32 = arith.constant 0 : i32
    %c0_i32_0 = arith.constant 0 : i32
    %c0_i32_1 = arith.constant 0 : i32
    return %c0_i32, %c0_i32_0 : i32, i32
  }
  func.func @transform_3(%arg0: i32) -> (i32, i32) {
    %c0_i32 = arith.constant 0 : i32
    %c0_i32_0 = arith.constant 0 : i32
    %c0_i32_1 = arith.constant 0 : i32
    return %c0_i32, %c0_i32_0 : i32, i32
  }
  func.func @transform_4(%arg0: i32) -> (i32, i32) {
    %c0_i32 = arith.constant 0 : i32
    %c0_i32_0 = arith.constant 0 : i32
    %c0_i32_1 = arith.constant 0 : i32
    return %c0_i32, %c0_i32_0 : i32, i32
  }
  func.func @transform_5(%arg0: i32) -> (i32, i32) {
    %c0_i32 = arith.constant 0 : i32
    %c0_i32_0 = arith.constant 0 : i32
    return %arg0, %c0_i32 : i32, i32
  }
}

module attributes {stable_mosaic.version = 11 : i64} {
  func.func @_convt_gemm_stats_kernel(%arg0: i32, %arg1: memref<72x1024xbf16, #tpu.memory_space<vmem>>, %arg2: memref<1024x32xbf16, #tpu.memory_space<vmem>>, %arg3: memref<72x32xf32, #tpu.memory_space<vmem>>, %arg4: memref<1x32xf32, #tpu.memory_space<vmem>>, %arg5: memref<1x32xf32, #tpu.memory_space<vmem>>) attributes {dimension_semantics = [#tpu.dimension_semantics<arbitrary>], iteration_bounds = array<i64: 1>, scalar_prefetch = 0 : i64, scratch_operands = 0 : i64, tpu.core_type = #tpu.core_type<tc>, window_params = [{transform_indices = @transform_0, window_bounds = array<i64: 72, 1024>}, {pipeline_mode = #tpu.pipeline_mode<synchronous>, transform_indices = @transform_1, window_bounds = array<i64: 1024, 32>}, {transform_indices = @transform_2, window_bounds = array<i64: 72, 32>}, {pipeline_mode = #tpu.pipeline_mode<synchronous>, transform_indices = @transform_3, window_bounds = array<i64: 1, 32>}, {pipeline_mode = #tpu.pipeline_mode<synchronous>, transform_indices = @transform_4, window_bounds = array<i64: 1, 32>}]} {
    %c0_i32 = arith.constant 0 : i32
    %0 = arith.cmpi eq, %arg0, %c0_i32 : i32
    %1 = arith.extui %0 : i1 to i32
    %c0_i32_0 = arith.constant 0 : i32
    %2 = arith.cmpi ne, %1, %c0_i32_0 : i32
    scf.if %2 {
      %cst_18 = arith.constant 0.000000e+00 : f32
      %28 = vector.broadcast %cst_18 : f32 to vector<1x32xf32>
      %c0_19 = arith.constant 0 : index
      %c0_20 = arith.constant 0 : index
      %29 = vector.load %arg4[%c0_19, %c0_20] : memref<1x32xf32, #tpu.memory_space<vmem>>, vector<1x32xf32>
      tpu.vector_store %arg4[%c0_19, %c0_20], %28 {strides = array<i32>} : memref<1x32xf32, #tpu.memory_space<vmem>>, vector<1x32xf32>,
      %cst_21 = arith.constant 0.000000e+00 : f32
      %30 = vector.broadcast %cst_21 : f32 to vector<1x32xf32>
      %c0_22 = arith.constant 0 : index
      %c0_23 = arith.constant 0 : index
      %31 = vector.load %arg5[%c0_22, %c0_23] : memref<1x32xf32, #tpu.memory_space<vmem>>, vector<1x32xf32>
      tpu.vector_store %arg5[%c0_22, %c0_23], %30 {strides = array<i32>} : memref<1x32xf32, #tpu.memory_space<vmem>>, vector<1x32xf32>,
    } else {
    }
    %c0 = arith.constant 0 : index
    %c0_1 = arith.constant 0 : index
    %3 = vector.load %arg1[%c0, %c0_1] : memref<72x1024xbf16, #tpu.memory_space<vmem>>, vector<72x1024xbf16>
    %c0_2 = arith.constant 0 : index
    %c0_3 = arith.constant 0 : index
    %4 = vector.load %arg2[%c0_2, %c0_3] : memref<1024x32xbf16, #tpu.memory_space<vmem>>, vector<1024x32xbf16>
    %cst = arith.constant dense<0.000000e+00> : vector<72x32xf32>
    %5 = tpu.matmul %3, %4, %cst {dimension_numbers = #tpu.dot_dimension_numbers<[1], [0], [0], [1], [0, 0, 1, 1], [], []>} : vector<72x1024xbf16>, vector<1024x32xbf16>, vector<72x32xf32> -> vector<72x32xf32>
    %c0_4 = arith.constant 0 : index
    %c0_5 = arith.constant 0 : index
    %6 = vector.load %arg3[%c0_4, %c0_5] : memref<72x32xf32, #tpu.memory_space<vmem>>, vector<72x32xf32>
    tpu.vector_store %arg3[%c0_4, %c0_5], %5 {strides = array<i32>} : memref<72x32xf32, #tpu.memory_space<vmem>>, vector<72x32xf32>,
    %7 = tpu.iota {dimensions = array<i32: 0>} : vector<72x1xi32>
    %c72_i32 = arith.constant 72 : i32
    %8 = arith.muli %arg0, %c72_i32 : i32
    %9 = vector.broadcast %8 : i32 to vector<72x1xi32>
    %10 = arith.addi %7, %9 : vector<72x1xi32>
    %c72_i32_6 = arith.constant 72 : i32
    %11 = vector.broadcast %c72_i32_6 : i32 to vector<72x1xi32>
    %12 = arith.cmpi slt, %10, %11 : vector<72x1xi32>
    %cst_7 = arith.constant 0.000000e+00 : f32
    %13 = vector.shape_cast %12 : vector<72x1xi1> to vector<72x1xi1>
    %14 = vector.broadcast %13 : vector<72x1xi1> to vector<72x32xi1>
    %15 = vector.broadcast %cst_7 : f32 to vector<72x32xf32>
    %16 = arith.select %14, %5, %15 : vector<72x32xi1>, vector<72x32xf32>
    %c0_8 = arith.constant 0 : index
    %c0_9 = arith.constant 0 : index
    %17 = vector.load %arg4[%c0_8, %c0_9] : memref<1x32xf32, #tpu.memory_space<vmem>>, vector<1x32xf32>
    %cst_10 = arith.constant dense<0.000000e+00> : vector<32xf32>
    %18 = vector.multi_reduction <add>, %16, %cst_10 [0] : vector<72x32xf32> to vector<32xf32>
    %19 = vector.shape_cast %18 : vector<32xf32> to vector<1x32xf32>
    %20 = arith.addf %17, %19 : vector<1x32xf32>
    %c0_11 = arith.constant 0 : index
    %c0_12 = arith.constant 0 : index
    %21 = vector.load %arg4[%c0_11, %c0_12] : memref<1x32xf32, #tpu.memory_space<vmem>>, vector<1x32xf32>
    tpu.vector_store %arg4[%c0_11, %c0_12], %20 {strides = array<i32>} : memref<1x32xf32, #tpu.memory_space<vmem>>, vector<1x32xf32>,
    %c0_13 = arith.constant 0 : index
    %c0_14 = arith.constant 0 : index
    %22 = vector.load %arg5[%c0_13, %c0_14] : memref<1x32xf32, #tpu.memory_space<vmem>>, vector<1x32xf32>
    %23 = arith.mulf %16, %16 : vector<72x32xf32>
    %cst_15 = arith.constant dense<0.000000e+00> : vector<32xf32>
    %24 = vector.multi_reduction <add>, %23, %cst_15 [0] : vector<72x32xf32> to vector<32xf32>
    %25 = vector.shape_cast %24 : vector<32xf32> to vector<1x32xf32>
    %26 = arith.addf %22, %25 : vector<1x32xf32>
    %c0_16 = arith.constant 0 : index
    %c0_17 = arith.constant 0 : index
    %27 = vector.load %arg5[%c0_16, %c0_17] : memref<1x32xf32, #tpu.memory_space<vmem>>, vector<1x32xf32>
    tpu.vector_store %arg5[%c0_16, %c0_17], %26 {strides = array<i32>} : memref<1x32xf32, #tpu.memory_space<vmem>>, vector<1x32xf32>,
    return
  }
  func.func @transform_0(%arg0: i32) -> (i32, i32) {
    %c0_i32 = arith.constant 0 : i32
    %c0_i32_0 = arith.constant 0 : i32
    return %arg0, %c0_i32 : i32, i32
  }
  func.func @transform_1(%arg0: i32) -> (i32, i32) {
    %c0_i32 = arith.constant 0 : i32
    %c0_i32_0 = arith.constant 0 : i32
    %c0_i32_1 = arith.constant 0 : i32
    return %c0_i32, %c0_i32_0 : i32, i32
  }
  func.func @transform_2(%arg0: i32) -> (i32, i32) {
    %c0_i32 = arith.constant 0 : i32
    %c0_i32_0 = arith.constant 0 : i32
    return %arg0, %c0_i32 : i32, i32
  }
  func.func @transform_3(%arg0: i32) -> (i32, i32) {
    %c0_i32 = arith.constant 0 : i32
    %c0_i32_0 = arith.constant 0 : i32
    %c0_i32_1 = arith.constant 0 : i32
    return %c0_i32, %c0_i32_0 : i32, i32
  }
  func.func @transform_4(%arg0: i32) -> (i32, i32) {
    %c0_i32 = arith.constant 0 : i32
    %c0_i32_0 = arith.constant 0 : i32
    %c0_i32_1 = arith.constant 0 : i32
    return %c0_i32, %c0_i32_0 : i32, i32
  }
}

module attributes {stable_mosaic.version = 11 : i64} {
  func.func @_bn_relu_kernel(%arg0: i32, %arg1: memref<72x32xf32, #tpu.memory_space<vmem>>, %arg2: memref<1x32xf32, #tpu.memory_space<vmem>>, %arg3: memref<1x32xf32, #tpu.memory_space<vmem>>, %arg4: memref<1x32xf32, #tpu.memory_space<vmem>>, %arg5: memref<1x32xf32, #tpu.memory_space<vmem>>, %arg6: memref<72x32xf32, #tpu.memory_space<vmem>>) attributes {dimension_semantics = [#tpu.dimension_semantics<parallel>], iteration_bounds = array<i64: 1>, scalar_prefetch = 0 : i64, scratch_operands = 0 : i64, tpu.core_type = #tpu.core_type<tc>, window_params = [{transform_indices = @transform_0, window_bounds = array<i64: 72, 32>}, {pipeline_mode = #tpu.pipeline_mode<synchronous>, transform_indices = @transform_1, window_bounds = array<i64: 1, 32>}, {pipeline_mode = #tpu.pipeline_mode<synchronous>, transform_indices = @transform_2, window_bounds = array<i64: 1, 32>}, {pipeline_mode = #tpu.pipeline_mode<synchronous>, transform_indices = @transform_3, window_bounds = array<i64: 1, 32>}, {pipeline_mode = #tpu.pipeline_mode<synchronous>, transform_indices = @transform_4, window_bounds = array<i64: 1, 32>}, {transform_indices = @transform_5, window_bounds = array<i64: 72, 32>}]} {
    %c0 = arith.constant 0 : index
    %c0_0 = arith.constant 0 : index
    %0 = vector.load %arg2[%c0, %c0_0] : memref<1x32xf32, #tpu.memory_space<vmem>>, vector<1x32xf32>
    %cst = arith.constant 0.013888889 : f32
    %1 = vector.broadcast %cst : f32 to vector<1x32xf32>
    %2 = arith.mulf %0, %1 : vector<1x32xf32>
    %c0_1 = arith.constant 0 : index
    %c0_2 = arith.constant 0 : index
    %3 = vector.load %arg3[%c0_1, %c0_2] : memref<1x32xf32, #tpu.memory_space<vmem>>, vector<1x32xf32>
    %cst_3 = arith.constant 0.013888889 : f32
    %4 = vector.broadcast %cst_3 : f32 to vector<1x32xf32>
    %5 = arith.mulf %3, %4 : vector<1x32xf32>
    %6 = arith.mulf %2, %2 : vector<1x32xf32>
    %7 = arith.subf %5, %6 : vector<1x32xf32>
    %cst_4 = arith.constant 0.000000e+00 : f32
    %8 = vector.broadcast %cst_4 : f32 to vector<1x32xf32>
    %9 = arith.maximumf %7, %8 : vector<1x32xf32>
    %c0_5 = arith.constant 0 : index
    %c0_6 = arith.constant 0 : index
    %10 = vector.load %arg4[%c0_5, %c0_6] : memref<1x32xf32, #tpu.memory_space<vmem>>, vector<1x32xf32>
    %cst_7 = arith.constant 9.99999974E-6 : f32
    %11 = vector.broadcast %cst_7 : f32 to vector<1x32xf32>
    %12 = arith.addf %9, %11 : vector<1x32xf32>
    %13 = math.rsqrt %12 : vector<1x32xf32>
    %14 = arith.mulf %10, %13 : vector<1x32xf32>
    %c0_8 = arith.constant 0 : index
    %c0_9 = arith.constant 0 : index
    %15 = vector.load %arg5[%c0_8, %c0_9] : memref<1x32xf32, #tpu.memory_space<vmem>>, vector<1x32xf32>
    %16 = arith.mulf %2, %14 : vector<1x32xf32>
    %17 = arith.subf %15, %16 : vector<1x32xf32>
    %c0_10 = arith.constant 0 : index
    %c0_11 = arith.constant 0 : index
    %18 = vector.load %arg1[%c0_10, %c0_11] : memref<72x32xf32, #tpu.memory_space<vmem>>, vector<72x32xf32>
    %19 = vector.broadcast %14 : vector<1x32xf32> to vector<72x32xf32>
    %20 = arith.mulf %18, %19 : vector<72x32xf32>
    %21 = vector.broadcast %17 : vector<1x32xf32> to vector<72x32xf32>
    %22 = arith.addf %20, %21 : vector<72x32xf32>
    %cst_12 = arith.constant 0.000000e+00 : f32
    %23 = vector.broadcast %cst_12 : f32 to vector<72x32xf32>
    %24 = arith.maximumf %22, %23 : vector<72x32xf32>
    %c0_13 = arith.constant 0 : index
    %c0_14 = arith.constant 0 : index
    %25 = vector.load %arg6[%c0_13, %c0_14] : memref<72x32xf32, #tpu.memory_space<vmem>>, vector<72x32xf32>
    tpu.vector_store %arg6[%c0_13, %c0_14], %24 {strides = array<i32>} : memref<72x32xf32, #tpu.memory_space<vmem>>, vector<72x32xf32>,
    return
  }
  func.func @transform_0(%arg0: i32) -> (i32, i32) {
    %c0_i32 = arith.constant 0 : i32
    %c0_i32_0 = arith.constant 0 : i32
    return %arg0, %c0_i32 : i32, i32
  }
  func.func @transform_1(%arg0: i32) -> (i32, i32) {
    %c0_i32 = arith.constant 0 : i32
    %c0_i32_0 = arith.constant 0 : i32
    %c0_i32_1 = arith.constant 0 : i32
    return %c0_i32, %c0_i32_0 : i32, i32
  }
  func.func @transform_2(%arg0: i32) -> (i32, i32) {
    %c0_i32 = arith.constant 0 : i32
    %c0_i32_0 = arith.constant 0 : i32
    %c0_i32_1 = arith.constant 0 : i32
    return %c0_i32, %c0_i32_0 : i32, i32
  }
  func.func @transform_3(%arg0: i32) -> (i32, i32) {
    %c0_i32 = arith.constant 0 : i32
    %c0_i32_0 = arith.constant 0 : i32
    %c0_i32_1 = arith.constant 0 : i32
    return %c0_i32, %c0_i32_0 : i32, i32
  }
  func.func @transform_4(%arg0: i32) -> (i32, i32) {
    %c0_i32 = arith.constant 0 : i32
    %c0_i32_0 = arith.constant 0 : i32
    %c0_i32_1 = arith.constant 0 : i32
    return %c0_i32, %c0_i32_0 : i32, i32
  }
  func.func @transform_5(%arg0: i32) -> (i32, i32) {
    %c0_i32 = arith.constant 0 : i32
    %c0_i32_0 = arith.constant 0 : i32
    return %arg0, %c0_i32 : i32, i32
  }
}

module attributes {stable_mosaic.version = 11 : i64} {
  func.func @_bn_relu_kernel(%arg0: i32, %arg1: memref<338x16xf32, #tpu.memory_space<vmem>>, %arg2: memref<1x16xf32, #tpu.memory_space<vmem>>, %arg3: memref<1x16xf32, #tpu.memory_space<vmem>>, %arg4: memref<1x16xf32, #tpu.memory_space<vmem>>, %arg5: memref<1x16xf32, #tpu.memory_space<vmem>>, %arg6: memref<338x16xf32, #tpu.memory_space<vmem>>) attributes {dimension_semantics = [#tpu.dimension_semantics<parallel>], iteration_bounds = array<i64: 1>, scalar_prefetch = 0 : i64, scratch_operands = 0 : i64, tpu.core_type = #tpu.core_type<tc>, window_params = [{transform_indices = @transform_0, window_bounds = array<i64: 338, 16>}, {pipeline_mode = #tpu.pipeline_mode<synchronous>, transform_indices = @transform_1, window_bounds = array<i64: 1, 16>}, {pipeline_mode = #tpu.pipeline_mode<synchronous>, transform_indices = @transform_2, window_bounds = array<i64: 1, 16>}, {pipeline_mode = #tpu.pipeline_mode<synchronous>, transform_indices = @transform_3, window_bounds = array<i64: 1, 16>}, {pipeline_mode = #tpu.pipeline_mode<synchronous>, transform_indices = @transform_4, window_bounds = array<i64: 1, 16>}, {transform_indices = @transform_5, window_bounds = array<i64: 338, 16>}]} {
    %c0 = arith.constant 0 : index
    %c0_0 = arith.constant 0 : index
    %0 = vector.load %arg2[%c0, %c0_0] : memref<1x16xf32, #tpu.memory_space<vmem>>, vector<1x16xf32>
    %cst = arith.constant 2.958580e-03 : f32
    %1 = vector.broadcast %cst : f32 to vector<1x16xf32>
    %2 = arith.mulf %0, %1 : vector<1x16xf32>
    %c0_1 = arith.constant 0 : index
    %c0_2 = arith.constant 0 : index
    %3 = vector.load %arg3[%c0_1, %c0_2] : memref<1x16xf32, #tpu.memory_space<vmem>>, vector<1x16xf32>
    %cst_3 = arith.constant 2.958580e-03 : f32
    %4 = vector.broadcast %cst_3 : f32 to vector<1x16xf32>
    %5 = arith.mulf %3, %4 : vector<1x16xf32>
    %6 = arith.mulf %2, %2 : vector<1x16xf32>
    %7 = arith.subf %5, %6 : vector<1x16xf32>
    %cst_4 = arith.constant 0.000000e+00 : f32
    %8 = vector.broadcast %cst_4 : f32 to vector<1x16xf32>
    %9 = arith.maximumf %7, %8 : vector<1x16xf32>
    %c0_5 = arith.constant 0 : index
    %c0_6 = arith.constant 0 : index
    %10 = vector.load %arg4[%c0_5, %c0_6] : memref<1x16xf32, #tpu.memory_space<vmem>>, vector<1x16xf32>
    %cst_7 = arith.constant 9.99999974E-6 : f32
    %11 = vector.broadcast %cst_7 : f32 to vector<1x16xf32>
    %12 = arith.addf %9, %11 : vector<1x16xf32>
    %13 = math.rsqrt %12 : vector<1x16xf32>
    %14 = arith.mulf %10, %13 : vector<1x16xf32>
    %c0_8 = arith.constant 0 : index
    %c0_9 = arith.constant 0 : index
    %15 = vector.load %arg5[%c0_8, %c0_9] : memref<1x16xf32, #tpu.memory_space<vmem>>, vector<1x16xf32>
    %16 = arith.mulf %2, %14 : vector<1x16xf32>
    %17 = arith.subf %15, %16 : vector<1x16xf32>
    %c0_10 = arith.constant 0 : index
    %c0_11 = arith.constant 0 : index
    %18 = vector.load %arg1[%c0_10, %c0_11] : memref<338x16xf32, #tpu.memory_space<vmem>>, vector<338x16xf32>
    %19 = vector.broadcast %14 : vector<1x16xf32> to vector<338x16xf32>
    %20 = arith.mulf %18, %19 : vector<338x16xf32>
    %21 = vector.broadcast %17 : vector<1x16xf32> to vector<338x16xf32>
    %22 = arith.addf %20, %21 : vector<338x16xf32>
    %cst_12 = arith.constant 0.000000e+00 : f32
    %23 = vector.broadcast %cst_12 : f32 to vector<338x16xf32>
    %24 = arith.maximumf %22, %23 : vector<338x16xf32>
    %c0_13 = arith.constant 0 : index
    %c0_14 = arith.constant 0 : index
    %25 = vector.load %arg6[%c0_13, %c0_14] : memref<338x16xf32, #tpu.memory_space<vmem>>, vector<338x16xf32>
    tpu.vector_store %arg6[%c0_13, %c0_14], %24 {strides = array<i32>} : memref<338x16xf32, #tpu.memory_space<vmem>>, vector<338x16xf32>,
    return
  }
  func.func @transform_0(%arg0: i32) -> (i32, i32) {
    %c0_i32 = arith.constant 0 : i32
    %c0_i32_0 = arith.constant 0 : i32
    return %arg0, %c0_i32 : i32, i32
  }
  func.func @transform_1(%arg0: i32) -> (i32, i32) {
    %c0_i32 = arith.constant 0 : i32
    %c0_i32_0 = arith.constant 0 : i32
    %c0_i32_1 = arith.constant 0 : i32
    return %c0_i32, %c0_i32_0 : i32, i32
  }
  func.func @transform_2(%arg0: i32) -> (i32, i32) {
    %c0_i32 = arith.constant 0 : i32
    %c0_i32_0 = arith.constant 0 : i32
    %c0_i32_1 = arith.constant 0 : i32
    return %c0_i32, %c0_i32_0 : i32, i32
  }
  func.func @transform_3(%arg0: i32) -> (i32, i32) {
    %c0_i32 = arith.constant 0 : i32
    %c0_i32_0 = arith.constant 0 : i32
    %c0_i32_1 = arith.constant 0 : i32
    return %c0_i32, %c0_i32_0 : i32, i32
  }
  func.func @transform_4(%arg0: i32) -> (i32, i32) {
    %c0_i32 = arith.constant 0 : i32
    %c0_i32_0 = arith.constant 0 : i32
    %c0_i32_1 = arith.constant 0 : i32
    return %c0_i32, %c0_i32_0 : i32, i32
  }
  func.func @transform_5(%arg0: i32) -> (i32, i32) {
    %c0_i32 = arith.constant 0 : i32
    %c0_i32_0 = arith.constant 0 : i32
    return %arg0, %c0_i32 : i32, i32
  }
}

module attributes {stable_mosaic.version = 11 : i64} {
  func.func @_convt_gemm_stats_kernel(%arg0: i32, %arg1: memref<338x288xbf16, #tpu.memory_space<vmem>>, %arg2: memref<288x16xbf16, #tpu.memory_space<vmem>>, %arg3: memref<338x16xf32, #tpu.memory_space<vmem>>, %arg4: memref<1x16xf32, #tpu.memory_space<vmem>>, %arg5: memref<1x16xf32, #tpu.memory_space<vmem>>) attributes {dimension_semantics = [#tpu.dimension_semantics<arbitrary>], iteration_bounds = array<i64: 1>, scalar_prefetch = 0 : i64, scratch_operands = 0 : i64, tpu.core_type = #tpu.core_type<tc>, window_params = [{transform_indices = @transform_0, window_bounds = array<i64: 338, 288>}, {pipeline_mode = #tpu.pipeline_mode<synchronous>, transform_indices = @transform_1, window_bounds = array<i64: 288, 16>}, {transform_indices = @transform_2, window_bounds = array<i64: 338, 16>}, {pipeline_mode = #tpu.pipeline_mode<synchronous>, transform_indices = @transform_3, window_bounds = array<i64: 1, 16>}, {pipeline_mode = #tpu.pipeline_mode<synchronous>, transform_indices = @transform_4, window_bounds = array<i64: 1, 16>}]} {
    %c0_i32 = arith.constant 0 : i32
    %0 = arith.cmpi eq, %arg0, %c0_i32 : i32
    %1 = arith.extui %0 : i1 to i32
    %c0_i32_0 = arith.constant 0 : i32
    %2 = arith.cmpi ne, %1, %c0_i32_0 : i32
    scf.if %2 {
      %cst_18 = arith.constant 0.000000e+00 : f32
      %28 = vector.broadcast %cst_18 : f32 to vector<1x16xf32>
      %c0_19 = arith.constant 0 : index
      %c0_20 = arith.constant 0 : index
      %29 = vector.load %arg4[%c0_19, %c0_20] : memref<1x16xf32, #tpu.memory_space<vmem>>, vector<1x16xf32>
      tpu.vector_store %arg4[%c0_19, %c0_20], %28 {strides = array<i32>} : memref<1x16xf32, #tpu.memory_space<vmem>>, vector<1x16xf32>,
      %cst_21 = arith.constant 0.000000e+00 : f32
      %30 = vector.broadcast %cst_21 : f32 to vector<1x16xf32>
      %c0_22 = arith.constant 0 : index
      %c0_23 = arith.constant 0 : index
      %31 = vector.load %arg5[%c0_22, %c0_23] : memref<1x16xf32, #tpu.memory_space<vmem>>, vector<1x16xf32>
      tpu.vector_store %arg5[%c0_22, %c0_23], %30 {strides = array<i32>} : memref<1x16xf32, #tpu.memory_space<vmem>>, vector<1x16xf32>,
    } else {
    }
    %c0 = arith.constant 0 : index
    %c0_1 = arith.constant 0 : index
    %3 = vector.load %arg1[%c0, %c0_1] : memref<338x288xbf16, #tpu.memory_space<vmem>>, vector<338x288xbf16>
    %c0_2 = arith.constant 0 : index
    %c0_3 = arith.constant 0 : index
    %4 = vector.load %arg2[%c0_2, %c0_3] : memref<288x16xbf16, #tpu.memory_space<vmem>>, vector<288x16xbf16>
    %cst = arith.constant dense<0.000000e+00> : vector<338x16xf32>
    %5 = tpu.matmul %3, %4, %cst {dimension_numbers = #tpu.dot_dimension_numbers<[1], [0], [0], [1], [0, 0, 1, 1], [], []>} : vector<338x288xbf16>, vector<288x16xbf16>, vector<338x16xf32> -> vector<338x16xf32>
    %c0_4 = arith.constant 0 : index
    %c0_5 = arith.constant 0 : index
    %6 = vector.load %arg3[%c0_4, %c0_5] : memref<338x16xf32, #tpu.memory_space<vmem>>, vector<338x16xf32>
    tpu.vector_store %arg3[%c0_4, %c0_5], %5 {strides = array<i32>} : memref<338x16xf32, #tpu.memory_space<vmem>>, vector<338x16xf32>,
    %7 = tpu.iota {dimensions = array<i32: 0>} : vector<338x1xi32>
    %c338_i32 = arith.constant 338 : i32
    %8 = arith.muli %arg0, %c338_i32 : i32
    %9 = vector.broadcast %8 : i32 to vector<338x1xi32>
    %10 = arith.addi %7, %9 : vector<338x1xi32>
    %c338_i32_6 = arith.constant 338 : i32
    %11 = vector.broadcast %c338_i32_6 : i32 to vector<338x1xi32>
    %12 = arith.cmpi slt, %10, %11 : vector<338x1xi32>
    %cst_7 = arith.constant 0.000000e+00 : f32
    %13 = vector.shape_cast %12 : vector<338x1xi1> to vector<338x1xi1>
    %14 = vector.broadcast %13 : vector<338x1xi1> to vector<338x16xi1>
    %15 = vector.broadcast %cst_7 : f32 to vector<338x16xf32>
    %16 = arith.select %14, %5, %15 : vector<338x16xi1>, vector<338x16xf32>
    %c0_8 = arith.constant 0 : index
    %c0_9 = arith.constant 0 : index
    %17 = vector.load %arg4[%c0_8, %c0_9] : memref<1x16xf32, #tpu.memory_space<vmem>>, vector<1x16xf32>
    %cst_10 = arith.constant dense<0.000000e+00> : vector<16xf32>
    %18 = vector.multi_reduction <add>, %16, %cst_10 [0] : vector<338x16xf32> to vector<16xf32>
    %19 = vector.shape_cast %18 : vector<16xf32> to vector<1x16xf32>
    %20 = arith.addf %17, %19 : vector<1x16xf32>
    %c0_11 = arith.constant 0 : index
    %c0_12 = arith.constant 0 : index
    %21 = vector.load %arg4[%c0_11, %c0_12] : memref<1x16xf32, #tpu.memory_space<vmem>>, vector<1x16xf32>
    tpu.vector_store %arg4[%c0_11, %c0_12], %20 {strides = array<i32>} : memref<1x16xf32, #tpu.memory_space<vmem>>, vector<1x16xf32>,
    %c0_13 = arith.constant 0 : index
    %c0_14 = arith.constant 0 : index
    %22 = vector.load %arg5[%c0_13, %c0_14] : memref<1x16xf32, #tpu.memory_space<vmem>>, vector<1x16xf32>
    %23 = arith.mulf %16, %16 : vector<338x16xf32>
    %cst_15 = arith.constant dense<0.000000e+00> : vector<16xf32>
    %24 = vector.multi_reduction <add>, %23, %cst_15 [0] : vector<338x16xf32> to vector<16xf32>
    %25 = vector.shape_cast %24 : vector<16xf32> to vector<1x16xf32>
    %26 = arith.addf %22, %25 : vector<1x16xf32>
    %c0_16 = arith.constant 0 : index
    %c0_17 = arith.constant 0 : index
    %27 = vector.load %arg5[%c0_16, %c0_17] : memref<1x16xf32, #tpu.memory_space<vmem>>, vector<1x16xf32>
    tpu.vector_store %arg5[%c0_16, %c0_17], %26 {strides = array<i32>} : memref<1x16xf32, #tpu.memory_space<vmem>>, vector<1x16xf32>,
    return
  }
  func.func @transform_0(%arg0: i32) -> (i32, i32) {
    %c0_i32 = arith.constant 0 : i32
    %c0_i32_0 = arith.constant 0 : i32
    return %arg0, %c0_i32 : i32, i32
  }
  func.func @transform_1(%arg0: i32) -> (i32, i32) {
    %c0_i32 = arith.constant 0 : i32
    %c0_i32_0 = arith.constant 0 : i32
    %c0_i32_1 = arith.constant 0 : i32
    return %c0_i32, %c0_i32_0 : i32, i32
  }
  func.func @transform_2(%arg0: i32) -> (i32, i32) {
    %c0_i32 = arith.constant 0 : i32
    %c0_i32_0 = arith.constant 0 : i32
    return %arg0, %c0_i32 : i32, i32
  }
  func.func @transform_3(%arg0: i32) -> (i32, i32) {
    %c0_i32 = arith.constant 0 : i32
    %c0_i32_0 = arith.constant 0 : i32
    %c0_i32_1 = arith.constant 0 : i32
    return %c0_i32, %c0_i32_0 : i32, i32
  }
  func.func @transform_4(%arg0: i32) -> (i32, i32) {
    %c0_i32 = arith.constant 0 : i32
    %c0_i32_0 = arith.constant 0 : i32
    %c0_i32_1 = arith.constant 0 : i32
    return %c0_i32, %c0_i32_0 : i32, i32
  }
}

module attributes {stable_mosaic.version = 11 : i64} {
  func.func @_convt_tanh_kernel(%arg0: i32, %arg1: memref<1024x256xbf16, #tpu.memory_space<vmem>>, %arg2: memref<1x256xbf16, #tpu.memory_space<vmem>>, %arg3: memref<1x1xf32, #tpu.memory_space<vmem>>, %arg4: memref<1x1024xf32, #tpu.memory_space<vmem>>) attributes {dimension_semantics = [#tpu.dimension_semantics<parallel>], iteration_bounds = array<i64: 2>, scalar_prefetch = 0 : i64, scratch_operands = 0 : i64, tpu.core_type = #tpu.core_type<tc>, window_params = [{transform_indices = @transform_0, window_bounds = array<i64: 1024, 256>}, {pipeline_mode = #tpu.pipeline_mode<synchronous>, transform_indices = @transform_1, window_bounds = array<i64: 1, 256>}, {pipeline_mode = #tpu.pipeline_mode<synchronous>, transform_indices = @transform_2, window_bounds = array<i64: 1, 1>}, {transform_indices = @transform_3, window_bounds = array<i64: 1, 1024>}]} {
    %c0 = arith.constant 0 : index
    %c0_0 = arith.constant 0 : index
    %0 = vector.load %arg2[%c0, %c0_0] : memref<1x256xbf16, #tpu.memory_space<vmem>>, vector<1x256xbf16>
    %c0_1 = arith.constant 0 : index
    %c0_2 = arith.constant 0 : index
    %1 = vector.load %arg1[%c0_1, %c0_2] : memref<1024x256xbf16, #tpu.memory_space<vmem>>, vector<1024x256xbf16>
    %cst = arith.constant dense<0.000000e+00> : vector<1x1024xf32>
    %2 = tpu.matmul %0, %1, %cst {dimension_numbers = #tpu.dot_dimension_numbers<[1], [1], [0], [0], [0, 0, 1, 0], [], []>} : vector<1x256xbf16>, vector<1024x256xbf16>, vector<1x1024xf32> -> vector<1x1024xf32>
    %c0_3 = arith.constant 0 : index
    %c0_4 = arith.constant 0 : index
    %3 = vector.load %arg3[%c0_3, %c0_4] : memref<1x1xf32, #tpu.memory_space<vmem>>, vector<1x1xf32>
    %4 = vector.broadcast %3 : vector<1x1xf32> to vector<1x1024xf32>
    %5 = arith.addf %2, %4 : vector<1x1024xf32>
    %6 = math.tanh %5 : vector<1x1024xf32>
    %c0_5 = arith.constant 0 : index
    %c0_6 = arith.constant 0 : index
    %7 = vector.load %arg4[%c0_5, %c0_6] : memref<1x1024xf32, #tpu.memory_space<vmem>>, vector<1x1024xf32>
    tpu.vector_store %arg4[%c0_5, %c0_6], %6 {strides = array<i32>} : memref<1x1024xf32, #tpu.memory_space<vmem>>, vector<1x1024xf32>,
    return
  }
  func.func @transform_0(%arg0: i32) -> (i32, i32) {
    %c0_i32 = arith.constant 0 : i32
    %c0_i32_0 = arith.constant 0 : i32
    return %arg0, %c0_i32 : i32, i32
  }
  func.func @transform_1(%arg0: i32) -> (i32, i32) {
    %c0_i32 = arith.constant 0 : i32
    %c0_i32_0 = arith.constant 0 : i32
    %c0_i32_1 = arith.constant 0 : i32
    return %c0_i32, %c0_i32_0 : i32, i32
  }
  func.func @transform_2(%arg0: i32) -> (i32, i32) {
    %c0_i32 = arith.constant 0 : i32
    %c0_i32_0 = arith.constant 0 : i32
    %c0_i32_1 = arith.constant 0 : i32
    return %c0_i32, %c0_i32_0 : i32, i32
  }
  func.func @transform_3(%arg0: i32) -> (i32, i32) {
    %c0_i32 = arith.constant 0 : i32
    %c0_i32_0 = arith.constant 0 : i32
    return %c0_i32, %arg0 : i32, i32
  }
}

</mosaic_0001>

<bundles_post_ra>
// kernel: generator_forward.8
= control target key start
LH: loop header
LB: loop body
LE: loop exit
PB: predicated region body
PF: predicated region fallthrough
CT: control target
= control target key end

     0   :  { %v38_v8 = vlaneseq  ;;  %vm58_vm0 = vcmask 523264   ;;  %vm61_vm1 = vcmask 517120   ;;  %s129_s1 = inlined_call_operand.vmem [shape: f32[1,64], index: 1, kind: input, shape index: {}]   ;;  %s130_s2 = inlined_call_operand.vmem [shape: f32[1,64], index: 2, kind: input, shape index: {}]   ;;  %s131_s3 = inlined_call_operand.vmem [shape: f32[1,64], index: 3, kind: input, shape index: {}]   ;;  %s132_s4 = inlined_call_operand.vmem [shape: f32[1,64], index: 4, kind: input, shape index: {}]   ;;  %s133_s0 = inlined_call_operand.vmem [shape: f32[18,64], index: 0, kind: input, shape index: {}]   ;;  %s134_s5 = inlined_call_operand.vmem [shape: f32[18,64], index: 5, kind: output, shape index: {}]  }
   0x1   :  { %v20_v0 = vld [vmem:[%s129_s1] sm:$0x1]  ;;  %v35_v16 = vld [vmem:[%s133_s0 + $0x8] sm:$0xff]  ;;  %v36_v17 = vld [vmem:[%s133_s0 + $0x10] sm:$0x3] }
   0x2   :  { %v22_v1 = vld [vmem:[%s130_s2] sm:$0x1]  ;;  %v21_v2 = vmul.f32 0.055555556, %v20_v0  ;;  %v39_v9 = vshrl.u32 %v38_v8, 7 }
   0x3   :  { %v23_v3 = vmul.f32 0.055555556, %v22_v1  ;;  %v27_v10 = vld [vmem:[%s131_s3] sm:$0x1] }
   0x4   :  { %v24_v4 = vmul.f32 %v21_v2, %v21_v2  ;;  %v40_v11 = vsub.s32 0, %v39_v9  ;;  %v31_v14 = vld [vmem:[%s132_s4] sm:$0x1] }
   0x5   :  { %v34_v15 = vld [vmem:[%s133_s0] sm:$0xff] }
   0x6   :  { %v25_v5 = vsub.f32 %v23_v3, %v24_v4 }
   0x8   :  { %v26_v6 = vmax.f32 %v25_v5, 0.0 }
   0xa   :  { %v28_v7 = vadd.f32 1e-05, %v26_v6 }
   0xc   :  { %67 = vrsqrt.f32 %v28_v7 }
  0x19   :  { %v68_v12 = vpop.eup %67 }
  0x1a   :  { %v30_v13 = vmul.f32 %v68_v12, %v27_v10 }
  0x1c   :  { %v32_v18 = vmul.f32 %v30_v13, %v21_v2  ;;  %v41_v19 = vrot.slane %v30_v13, %v40_v11 }
  0x1e   :  { %v33_v20 = vsub.f32 %v31_v14, %v32_v18  ;;  %v43_v21 = vmul.f32 %v41_v19, %v34_v15  ;;  %v44_v22 = vmul.f32 %v41_v19, %v35_v16  ;;  %v45_v23 = vmul.f32 %v41_v19, %v36_v17 }
  0x20   :  { %v50_v24 = vrot.slane %v33_v20, %v40_v11 }
  0x22   :  { %v52_v25 = vadd.f32 %v50_v24, %v43_v21  ;;  %v53_v26 = vadd.f32 %v50_v24, %v44_v22  ;;  %v54_v27 = vadd.f32 %v50_v24, %v45_v23 }
  0x24   :  { %v55_v28 = vmax.f32 %v52_v25, 0.0  ;;  %v56_v29 = vmax.f32 %v53_v26, 0.0  ;;  %v57_v30 = vmax.f32 %v54_v27, 0.0 }
  0x26   :  { %59 = vst.msk [vmem:[%s134_s5] sm:$0xff] %vm58_vm0, %v55_v28  ;;  %60 = vst.msk [vmem:[%s134_s5 + $0x8] sm:$0xff] %vm58_vm0, %v56_v29 }
  0x27   :  { %62 = vst.msk [vmem:[%s134_s5 + $0x10] sm:$0x3] %vm61_vm1, %v57_v30 }

// kernel: generator_forward.7
= control target key start
LH: loop header
LB: loop body
LE: loop exit
PB: predicated region body
PF: predicated region fallthrough
CT: control target
= control target key end

     0   :  { %vm87_vm0 = vcmask 1044480   ;;  %vm80_vm1 = vcmask 736256   ;;  %vm19_vm2 = vcmask 516096   ;;  %v253_v9 = vmov 0.0   ;;  %s345_s1 = inlined_call_operand.vmem [shape: bf16[90,64], index: 1, kind: input, shape index: {}]   ;;  %s346_s0 = inlined_call_operand.vmem [shape: bf16[18,90], index: 0, kind: input, shape index: {}]   ;;  %s347_s3 = inlined_call_operand.vmem [shape: f32[1,64], index: 3, kind: output, shape index: {1}]   ;;  %s348_s4 = inlined_call_operand.vmem [shape: f32[1,64], index: 4, kind: output, shape index: {2}]   ;;  %s349_s2 = inlined_call_operand.vmem [shape: f32[18,64], index: 2, kind: output, shape index: {0}]  }
   0x1   :  { %v245_v0 = vld [vmem:[%s345_s1 + $0x28] sm:$0x1f]   ;;  %v246_v1 = vld [vmem:[%s345_s1 + $0x20] sm:$0xff]   ;;  %v247_v3 = vld [vmem:[%s345_s1 + $0x18] sm:$0xff]   ;;  %20 = vst.msk [vmem:[%s347_s3] sm:$0x1] %vm19_vm2, %v253_v9  ;;  %v144_v10 = vlaneseq }
   0x2   :  { %243 = vmatprep.subr.msk.bf16.mxu0 %vm87_vm0, %v245_v0  ;;  %v89_v2 = vsel %vm87_vm0, %v245_v0, 0  ;;  %v251_v4 = vld [vmem:[%s346_s0] sm:$0xff]   ;;  %v248_v5 = vld [vmem:[%s345_s1 + $0x10] sm:$0xff]   ;;  %v249_v6 = vld [vmem:[%s345_s1 + $0x8] sm:$0xff]   ;;  %21 = vst.msk [vmem:[%s348_s4] sm:$0x1] %vm19_vm2, %v253_v9 }
   0x3   :  { %228 = vmatpush3.bf16.msra.mxu0 %v89_v2  ;;  %239 = vmatprep.mubr.msk.bf16.mxu0 %vm80_vm1, %v251_v4  ;;  %v250_v7 = vld [vmem:[%s345_s1] sm:$0xff]   ;;  %v252_v8 = vld [vmem:[%s346_s0 + $0x8] ss:$0 sps:$4 sm:$0x11]   ;;  %v145_v11 = vshrl.u32 %v144_v10, 7  ;;  %vm142_vm3 = vcmask 517120  }
   0x4   :  { %229 = vmatprep.subr.bf16.mxu0 %v246_v1  ;;  %vm139_vm4 = vcmask 523264  }
   0x5   :  { %v147_v12 = vadd.s32 16, %v145_v11 }
   0x7   :  { %230 = vmatpush3.bf16.msra.mxu0 %v246_v1  ;;  %vm155_vm5 = vcmp.lt.s32.totalorder %v147_v12, 18 }
   0x8   :  { %231 = vmatprep.subr.bf16.mxu0 %v247_v3  ;;  %v165_v40 = vld [vmem:[%s347_s3] sm:$0x1] }
   0x9   :  { %v180_v43 = vld [vmem:[%s348_s4] sm:$0x1] }
   0xb   :  { %232 = vmatpush3.bf16.msra.mxu0 %v247_v3 }
   0xc   :  { %233 = vmatprep.subr.bf16.mxu0 %v248_v5 }
   0xf   :  { %234 = vmatpush3.bf16.msra.mxu0 %v248_v5 }
  0x10   :  { %235 = vmatprep.subr.bf16.mxu0 %v249_v6 }
  0x13   :  { %236 = vmatpush3.bf16.msra.mxu0 %v249_v6 }
  0x14   :  { %237 = vmatprep.subr.bf16.mxu0 %v250_v7 }
  0x17   :  { %238 = vmatpush3.bf16.msra.mxu0 %v250_v7 }
  0x1a   :  { %240 = vmatmul.mubr.msk.bf16.vlgmr.msra.gmra.mxu0 %vm80_vm1, %v252_v8 }
  0xda   :  { %v241_v13 = vpop.f32.mrf.mxu0 }
  0xdb   :  { %143 = vst.msk [vmem:[%s349_s2 + $0x10] sm:$0x3] %vm142_vm3, %v241_v13  ;;  %v164_v15 = vsel %vm155_vm5, %v241_v13, 0.0 }
  0xdc   :  { %v125_v14 = vpop.f32.mrf.mxu0  ;;  %v183_v19 = vmul.f32 %v164_v15, %v164_v15  ;;  %v169_v24 = vsel %vm142_vm3, %v164_v15, 0.0 }
  0xdd   :  { %140 = vst.msk [vmem:[%s349_s2] sm:$0xff] %vm139_vm4, %v125_v14  ;;  %v181_v17 = vmul.f32 %v125_v14, %v125_v14  ;;  %v166_v20 = vsel %vm139_vm4, %v125_v14, 0.0 }
  0xde   :  { %v242_v16 = vpop.f32.mrf.mxu0  ;;  %v187_v29 = vsel %vm142_vm3, %v183_v19, 0.0 }
  0xdf   :  { %v184_v25 = vsel %vm139_vm4, %v181_v17, 0.0 }
  0xe0   :  { %v128_v18 = vpop.f32.mrf.mxu0 }
  0xe1   :  { %141 = vst.msk [vmem:[%s349_s2 + $0x8] sm:$0xff] %vm139_vm4, %v128_v18  ;;  %v167_v21 = vsel %vm139_vm4, %v128_v18, 0.0  ;;  %v182_v22 = vmul.f32 %v128_v18, %v128_v18 }
  0xe2   :  { %v168_v23 = vadd.f32 %v167_v21, %v166_v20 }
  0xe3   :  { %v185_v26 = vsel %vm139_vm4, %v182_v22, 0.0 }
  0xe4   :  { %v170_v27 = vadd.f32 %v169_v24, %v168_v23  ;;  %v186_v28 = vadd.f32 %v185_v26, %v184_v25 }
  0xe6   :  { %v171_v30 = vrot.slane %v170_v27, 4  ;;  %v188_v31 = vadd.f32 %v187_v29, %v186_v28 }
  0xe8   :  { %v172_v32 = vadd.f32 %v171_v30, %v170_v27  ;;  %v189_v33 = vrot.slane %v188_v31, 4 }
  0xea   :  { %v173_v34 = vrot.slane %v172_v32, 2  ;;  %v190_v35 = vadd.f32 %v189_v33, %v188_v31 }
  0xec   :  { %v174_v36 = vadd.f32 %v173_v34, %v172_v32  ;;  %v191_v37 = vrot.slane %v190_v35, 2 }
  0xee   :  { %v175_v38 = vrot.slane %v174_v36, 1  ;;  %v192_v39 = vadd.f32 %v191_v37, %v190_v35 }
  0xf0   :  { %v176_v41 = vadd.f32 %v175_v38, %v174_v36  ;;  %v193_v42 = vrot.slane %v192_v39, 1 }
  0xf2   :  { %v177_v44 = vadd.f32 %v176_v41, %v165_v40  ;;  %v194_v45 = vadd.f32 %v193_v42, %v192_v39 }
  0xf4   :  { %179 = vst.msk [vmem:[%s347_s3] sm:$0x1] %vm19_vm2, %v177_v44  ;;  %v195_v46 = vadd.f32 %v194_v45, %v180_v43 }
  0xf6   :  { %196 = vst.msk [vmem:[%s348_s4] sm:$0x1] %vm19_vm2, %v195_v46 }

// kernel: generator_forward.10
= control target key start
LH: loop header
LB: loop body
LE: loop exit
PB: predicated region body
PF: predicated region fallthrough
CT: control target
= control target key end

     0   :  { %v44_v8 = vlaneseq  ;;  %vm82_vm0 = vcmask 261120   ;;  %s203_s1 = inlined_call_operand.vmem [shape: f32[1,32], index: 1, kind: input, shape index: {}]   ;;  %s204_s2 = inlined_call_operand.vmem [shape: f32[1,32], index: 2, kind: input, shape index: {}]   ;;  %s205_s3 = inlined_call_operand.vmem [shape: f32[1,32], index: 3, kind: input, shape index: {}]   ;;  %s206_s0 = inlined_call_operand.vmem [shape: f32[72,32], index: 0, kind: input, shape index: {}]   ;;  %s207_s4 = inlined_call_operand.vmem [shape: f32[1,32], index: 4, kind: input, shape index: {}]   ;;  %s208_s5 = inlined_call_operand.vmem [shape: f32[72,32], index: 5, kind: output, shape index: {}]  }
   0x1   :  { %v20_v0 = vld [vmem:[%s203_s1] sm:$0x1]  ;;  %v35_v16 = vld [vmem:[%s206_s0 + $0x8] sm:$0xff]  ;;  %v36_v17 = vld [vmem:[%s206_s0 + $0x10] sm:$0xff] }
   0x2   :  { %v22_v1 = vld [vmem:[%s204_s2] sm:$0x1]  ;;  %v21_v2 = vmul.f32 0.013888889, %v20_v0  ;;  %v45_v9 = vshrl.u32 %v44_v8, 7  ;;  %v37_v18 = vld [vmem:[%s206_s0 + $0x18] sm:$0xff] }
   0x3   :  { %v23_v3 = vmul.f32 0.013888889, %v22_v1  ;;  %v27_v10 = vld [vmem:[%s205_s3] sm:$0x1]  ;;  %v39_v22 = vld [vmem:[%s206_s0 + $0x28] sm:$0xff]  ;;  %v40_v23 = vld [vmem:[%s206_s0 + $0x30] sm:$0xff] }
   0x4   :  { %v24_v4 = vmul.f32 %v21_v2, %v21_v2  ;;  %v46_v11 = vsub.s32 0, %v45_v9  ;;  %v31_v14 = vld [vmem:[%s207_s4] sm:$0x1]  ;;  %v41_v24 = vld [vmem:[%s206_s0 + $0x38] sm:$0xff] }
   0x5   :  { %v34_v15 = vld [vmem:[%s206_s0] sm:$0xff] }
   0x6   :  { %v25_v5 = vsub.f32 %v23_v3, %v24_v4  ;;  %v38_v21 = vld [vmem:[%s206_s0 + $0x20] sm:$0xff] }
   0x7   :  { %v42_v29 = vld [vmem:[%s206_s0 + $0x40] sm:$0xff] }
   0x8   :  { %v26_v6 = vmax.f32 %v25_v5, 0.0 }
   0xa   :  { %v28_v7 = vadd.f32 1e-05, %v26_v6 }
   0xc   :  { %96 = vrsqrt.f32 %v28_v7 }
  0x19   :  { %v97_v12 = vpop.eup %96 }
  0x1a   :  { %v30_v13 = vmul.f32 %v97_v12, %v27_v10 }
  0x1c   :  { %v32_v19 = vmul.f32 %v30_v13, %v21_v2  ;;  %v47_v20 = vrot.slane %v30_v13, %v46_v11 }
  0x1e   :  { %v33_v25 = vsub.f32 %v31_v14, %v32_v19  ;;  %v49_v26 = vmul.f32 %v47_v20, %v34_v15  ;;  %v50_v27 = vmul.f32 %v47_v20, %v35_v16  ;;  %v51_v28 = vmul.f32 %v47_v20, %v36_v17 }
  0x1f   :  { %v52_v30 = vmul.f32 %v47_v20, %v37_v18  ;;  %v53_v31 = vmul.f32 %v47_v20, %v38_v21  ;;  %v54_v32 = vmul.f32 %v47_v20, %v39_v22  ;;  %v55_v33 = vmul.f32 %v47_v20, %v40_v23 }
  0x20   :  { %v62_v34 = vrot.slane %v33_v25, %v46_v11  ;;  %v56_v35 = vmul.f32 %v47_v20, %v41_v24  ;;  %v57_v36 = vmul.f32 %v47_v20, %v42_v29 }
  0x22   :  { %v64_v37 = vadd.f32 %v62_v34, %v49_v26  ;;  %v65_v38 = vadd.f32 %v62_v34, %v50_v27  ;;  %v66_v39 = vadd.f32 %v62_v34, %v51_v28  ;;  %v67_v40 = vadd.f32 %v62_v34, %v52_v30 }
  0x23   :  { %v68_v41 = vadd.f32 %v62_v34, %v53_v31  ;;  %v69_v42 = vadd.f32 %v62_v34, %v54_v32  ;;  %v70_v43 = vadd.f32 %v62_v34, %v55_v33  ;;  %v71_v44 = vadd.f32 %v62_v34, %v56_v35 }
  0x24   :  { %v73_v45 = vmax.f32 %v64_v37, 0.0  ;;  %v74_v46 = vmax.f32 %v65_v38, 0.0  ;;  %v75_v47 = vmax.f32 %v66_v39, 0.0  ;;  %v76_v48 = vmax.f32 %v67_v40, 0.0 }
  0x25   :  { %v77_v49 = vmax.f32 %v68_v41, 0.0  ;;  %v78_v50 = vmax.f32 %v69_v42, 0.0  ;;  %v79_v51 = vmax.f32 %v70_v43, 0.0  ;;  %v80_v52 = vmax.f32 %v71_v44, 0.0 }
  0x26   :  { %83 = vst.msk [vmem:[%s208_s5] sm:$0xff] %vm82_vm0, %v73_v45  ;;  %84 = vst.msk [vmem:[%s208_s5 + $0x8] sm:$0xff] %vm82_vm0, %v74_v46  ;;  %v72_v53 = vadd.f32 %v62_v34, %v57_v36 }
  0x27   :  { %85 = vst.msk [vmem:[%s208_s5 + $0x10] sm:$0xff] %vm82_vm0, %v75_v47  ;;  %86 = vst.msk [vmem:[%s208_s5 + $0x18] sm:$0xff] %vm82_vm0, %v76_v48 }
  0x28   :  { %87 = vst.msk [vmem:[%s208_s5 + $0x20] sm:$0xff] %vm82_vm0, %v77_v49  ;;  %88 = vst.msk [vmem:[%s208_s5 + $0x28] sm:$0xff] %vm82_vm0, %v78_v50  ;;  %v81_v54 = vmax.f32 %v72_v53, 0.0 }
  0x29   :  { %89 = vst.msk [vmem:[%s208_s5 + $0x30] sm:$0xff] %vm82_vm0, %v79_v51  ;;  %90 = vst.msk [vmem:[%s208_s5 + $0x38] sm:$0xff] %vm82_vm0, %v80_v52 }
  0x2a   :  { %91 = vst.msk [vmem:[%s208_s5 + $0x40] sm:$0xff] %vm82_vm0, %v81_v54 }

// kernel: generator_forward.9
= control target key start
LH: loop header
LB: loop body
LE: loop exit
PB: predicated region body
PF: predicated region fallthrough
CT: control target
= control target key end

     0   :  { %vm19_vm0 = vcmask 253952   ;;  %vm1046_vm1 = vcmask 261120   ;;  %s2010_s1 = inlined_call_operand.vmem [shape: bf16[1024,32], index: 1, kind: input, shape index: {}]   ;;  %s2011_s0 = inlined_call_operand.vmem [shape: bf16[72,1024], index: 0, kind: input, shape index: {}]   ;;  %s2012_s3 = inlined_call_operand.vmem [shape: f32[1,32], index: 3, kind: output, shape index: {1}]   ;;  %s2013_s4 = inlined_call_operand.vmem [shape: f32[1,32], index: 4, kind: output, shape index: {2}]   ;;  %s2014_s2 = inlined_call_operand.vmem [shape: f32[72,32], index: 2, kind: output, shape index: {0}]  }
   0x1   :  { %v1476_v0 = vld [vmem:[%s2010_s1 + $0x78] sm:$0xff]   ;;  %v1480_v4 = vld [vmem:[%s2010_s1 + $0x70] sm:$0xff]   ;;  %v1484_v8 = vld [vmem:[%s2010_s1 + $0x68] sm:$0xff]  }
   0x2   :  { %v1477_v1 = vld [vmem:[%s2010_s1 + $0xf8] sm:$0xff]   ;;  %1291 = vmatprep.subr.bf16.mxu0 %v1476_v0  ;;  %v1481_v5 = vld [vmem:[%s2010_s1 + $0xf0] sm:$0xff]   ;;  %v1485_v9 = vld [vmem:[%s2010_s1 + $0xe8] sm:$0xff]  }
   0x3   :  { %v1478_v2 = vld [vmem:[%s2010_s1 + $0x38] sm:$0xff]   ;;  %1337 = vmatprep.subr.bf16.mxu1 %v1477_v1  ;;  %v1482_v6 = vld [vmem:[%s2010_s1 + $0x30] sm:$0xff]   ;;  %v1486_v10 = vld [vmem:[%s2010_s1 + $0x28] sm:$0xff]  }
   0x4   :  { %v1479_v3 = vld [vmem:[%s2010_s1 + $0xb8] sm:$0xff]   ;;  %1292 = vmatpush3.bf16.msra.mxu0 %v1478_v2  ;;  %v1483_v7 = vld [vmem:[%s2010_s1 + $0xb0] sm:$0xff]   ;;  %v1487_v11 = vld [vmem:[%s2010_s1 + $0xa8] sm:$0xff]  }
   0x5   :  { %1338 = vmatpush3.bf16.msra.mxu1 %v1479_v3  ;;  %1293 = vmatprep.subr.bf16.mxu0 %v1480_v4  ;;  %v1488_v12 = vld [vmem:[%s2010_s1 + $0x60] sm:$0xff]   ;;  %v1492_v16 = vld [vmem:[%s2010_s1 + $0x58] sm:$0xff]   ;;  %v1496_v20 = vld [vmem:[%s2010_s1 + $0x50] sm:$0xff]  }
   0x6   :  { %1339 = vmatprep.subr.bf16.mxu1 %v1481_v5  ;;  %v1489_v13 = vld [vmem:[%s2010_s1 + $0xe0] sm:$0xff]   ;;  %v1493_v17 = vld [vmem:[%s2010_s1 + $0xd8] sm:$0xff]   ;;  %v1497_v21 = vld [vmem:[%s2010_s1 + $0xd0] sm:$0xff]  }
   0x7   :  { %v1490_v14 = vld [vmem:[%s2010_s1 + $0x20] sm:$0xff]   ;;  %v1494_v18 = vld [vmem:[%s2010_s1 + $0x18] sm:$0xff]   ;;  %v1498_v22 = vld [vmem:[%s2010_s1 + $0x10] sm:$0xff]  }
   0x8   :  { %1294 = vmatpush3.bf16.msra.mxu0 %v1482_v6  ;;  %v1491_v15 = vld [vmem:[%s2010_s1 + $0xa0] sm:$0xff]   ;;  %v1495_v19 = vld [vmem:[%s2010_s1 + $0x98] sm:$0xff]   ;;  %v1499_v23 = vld [vmem:[%s2010_s1 + $0x90] sm:$0xff]  }
   0x9   :  { %1340 = vmatpush3.bf16.msra.mxu1 %v1483_v7  ;;  %1295 = vmatprep.subr.bf16.mxu0 %v1484_v8  ;;  %v1500_v24 = vld [vmem:[%s2010_s1 + $0x48] sm:$0xff]   ;;  %v1504_v28 = vld [vmem:[%s2010_s1 + $0x40] sm:$0xff]   ;;  %v1508_v40 = vld [vmem:[%s2010_s1 + $0x178] sm:$0xff]  }
   0xa   :  { %1341 = vmatprep.subr.bf16.mxu1 %v1485_v9  ;;  %v1501_v25 = vld [vmem:[%s2010_s1 + $0xc8] sm:$0xff]   ;;  %v1505_v29 = vld [vmem:[%s2010_s1 + $0xc0] sm:$0xff]   ;;  %v1509_v41 = vld [vmem:[%s2010_s1 + $0x138] sm:$0xff]  }
   0xb   :  { %v1502_v26 = vld [vmem:[%s2010_s1 + $0x8] sm:$0xff]   ;;  %v1506_v30 = vld [vmem:[%s2010_s1] sm:$0xff]   ;;  %v1510_v42 = vld [vmem:[%s2010_s1 + $0x1f8] sm:$0xff]  }
   0xc   :  { %1296 = vmatpush3.bf16.msra.mxu0 %v1486_v10  ;;  %v1503_v27 = vld [vmem:[%s2010_s1 + $0x88] sm:$0xff]   ;;  %v1507_v31 = vld [vmem:[%s2010_s1 + $0x80] sm:$0xff]   ;;  %v1511_v43 = vld [vmem:[%s2010_s1 + $0x1b8] sm:$0xff]  }
   0xd   :  { %1342 = vmatpush3.bf16.msra.mxu1 %v1487_v11  ;;  %1297 = vmatprep.subr.bf16.mxu0 %v1488_v12  ;;  %v22_v32 = vld [vmem:[%s2011_s0] sm:$0xff]  ;;  %v23_v34 = vld [vmem:[%s2011_s0 + $0x8] sm:$0xff]  ;;  %v1512_v44 = vld [vmem:[%s2010_s1 + $0x170] sm:$0xff]  }
   0xe   :  { %1343 = vmatprep.subr.bf16.mxu1 %v1489_v13  ;;  %v26_v33 = vld [vmem:[%s2011_s0 + $0x20] sm:$0xff]  ;;  %v27_v37 = vld [vmem:[%s2011_s0 + $0x28] sm:$0xff]  ;;  %v1513_v45 = vld [vmem:[%s2010_s1 + $0x130] sm:$0xff]  }
   0xf   :  { %v1187_v35 = vcombine.low %v22_v32, %v26_v33  ;;  %v1188_v36 = vcombine.high %v22_v32, %v26_v33  ;;  %v1189_v38 = vcombine.low %v23_v34, %v27_v37  ;;  %v1190_v39 = vcombine.high %v23_v34, %v27_v37  ;;  %v30_v46 = vld [vmem:[%s2011_s0 + $0x40] sm:$0xff]  ;;  %v31_v49 = vld [vmem:[%s2011_s0 + $0x48] sm:$0xff]  ;;  %v1514_v53 = vld [vmem:[%s2010_s1 + $0x1f0] sm:$0xff]  }
  0x10   :  { %1298 = vmatpush3.bf16.msra.mxu0 %v1490_v14  ;;  %v34_v47 = vld [vmem:[%s2011_s0 + $0x60] sm:$0xff]  ;;  %v35_v50 = vld [vmem:[%s2011_s0 + $0x68] sm:$0xff]  ;;  %v1515_v55 = vld [vmem:[%s2010_s1 + $0x1b0] sm:$0xff]  }
  0x11   :  { %1344 = vmatpush3.bf16.msra.mxu1 %v1491_v15  ;;  %1299 = vmatprep.subr.bf16.mxu0 %v1492_v16  ;;  %v1196_v48 = vcombine.high %v30_v46, %v34_v47  ;;  %v1195_v51 = vcombine.low %v30_v46, %v34_v47  ;;  %v1198_v52 = vcombine.high %v31_v49, %v35_v50  ;;  %v1516_v56 = vld [vmem:[%s2010_s1 + $0x168] sm:$0xff]   ;;  %v38_v60 = vld [vmem:[%s2011_s0 + $0x80] sm:$0xff]  ;;  %v1524_v8 = vld [vmem:[%s2010_s1 + $0x158] sm:$0xff]  }
  0x12   :  { %1345 = vmatprep.subr.bf16.mxu1 %v1493_v17  ;;  %790 = vmatprep.mubr.bf16.mxu0 %v1188_v36  ;;  %v1197_v54 = vcombine.low %v31_v49, %v35_v50  ;;  %v1517_v57 = vld [vmem:[%s2010_s1 + $0x128] sm:$0xff]   ;;  %v42_v61 = vld [vmem:[%s2011_s0 + $0xa0] sm:$0xff]  ;;  %v1525_v9 = vld [vmem:[%s2010_s1 + $0x118] sm:$0xff]  }
  0x13   :  { %862 = vmatprep.mubr.bf16.mxu1 %v1190_v39  ;;  %v1518_v58 = vld [vmem:[%s2010_s1 + $0x1e8] sm:$0xff]   ;;  %v1204_v0 = vcombine.high %v38_v60, %v42_v61  ;;  %v1520_v2 = vld [vmem:[%s2010_s1 + $0x160] sm:$0xff]   ;;  %v1203_v3 = vcombine.low %v38_v60, %v42_v61  ;;  %v1526_v10 = vld [vmem:[%s2010_s1 + $0x1d8] sm:$0xff]  }
  0x14   :  { %1300 = vmatpush3.bf16.msra.mxu0 %v1494_v18  ;;  %v1519_v59 = vld [vmem:[%s2010_s1 + $0x1a8] sm:$0xff]   ;;  %v1521_v5 = vld [vmem:[%s2010_s1 + $0x120] sm:$0xff]   ;;  %v1527_v18 = vld [vmem:[%s2010_s1 + $0x198] sm:$0xff]  }
  0x15   :  { %1346 = vmatpush3.bf16.msra.mxu1 %v1495_v19  ;;  %1301 = vmatprep.subr.bf16.mxu0 %v1496_v20  ;;  %v39_v62 = vld [vmem:[%s2011_s0 + $0x88] sm:$0xff]  ;;  %v1522_v6 = vld [vmem:[%s2010_s1 + $0x1e0] sm:$0xff]   ;;  %v1528_v20 = vld [vmem:[%s2010_s1 + $0x150] sm:$0xff]  }
  0x16   :  { %1347 = vmatprep.subr.bf16.mxu1 %v1497_v21  ;;  %v43_v63 = vld [vmem:[%s2011_s0 + $0xa8] sm:$0xff]  ;;  %v1523_v7 = vld [vmem:[%s2010_s1 + $0x1a0] sm:$0xff]   ;;  %v1529_v21 = vld [vmem:[%s2010_s1 + $0x110] sm:$0xff]  }
  0x17   :  { %v1206_v1 = vcombine.high %v39_v62, %v43_v63  ;;  %v1205_v4 = vcombine.low %v39_v62, %v43_v63  ;;  %v46_v11 = vld [vmem:[%s2011_s0 + $0xc0] sm:$0xff]  ;;  %v47_v13 = vld [vmem:[%s2011_s0 + $0xc8] sm:$0xff]  ;;  %v28_v39 = vld [vmem:[%s2011_s0 + $0x30] sm:$0xff] }
  0x18   :  { %1302 = vmatpush3.bf16.msra.mxu0 %v1498_v22  ;;  %v50_v12 = vld [vmem:[%s2011_s0 + $0xe0] sm:$0xff]  ;;  %v51_v15 = vld [vmem:[%s2011_s0 + $0xe8] sm:$0xff]  ;;  %v1530_v22 = vld [vmem:[%s2010_s1 + $0x1d0] sm:$0xff]  }
  0x19   :  { %1348 = vmatpush3.bf16.msra.mxu1 %v1499_v23  ;;  %1303 = vmatprep.subr.bf16.mxu0 %v1500_v24  ;;  %v1212_v14 = vcombine.high %v46_v11, %v50_v12  ;;  %v1211_v16 = vcombine.low %v46_v11, %v50_v12  ;;  %v1214_v17 = vcombine.high %v47_v13, %v51_v15  ;;  %v1531_v23 = vld [vmem:[%s2010_s1 + $0x190] sm:$0xff]   ;;  %v1532_v24 = vld [vmem:[%s2010_s1 + $0x148] sm:$0xff]   ;;  %v1540_v34 = vld [vmem:[%s2010_s1 + $0x140] sm:$0xff]   ;;  %v1548_v12 = vmov 0.0  }
  0x1a   :  { %1349 = vmatprep.subr.bf16.mxu1 %v1501_v25  ;;  %v1213_v19 = vcombine.low %v47_v13, %v51_v15  ;;  %v54_v25 = vld [vmem:[%s2011_s0 + $0x100] sm:$0xff]  ;;  %v1539_v33 = vld [vmem:[%s2010_s1 + $0x188] sm:$0xff]   ;;  %v33_v47 = vld [vmem:[%s2011_s0 + $0x58] sm:$0xff]  ;;  %20 = vst.msk [vmem:[%s2012_s3] sm:$0x1] %vm19_vm0, %v1548_v12 }
  0x1b   :  { %v1542_v36 = vld [vmem:[%s2010_s1 + $0x1c0] sm:$0xff]   ;;  %v48_v60 = vld [vmem:[%s2011_s0 + $0xd0] sm:$0xff]  ;;  %v49_v62 = vld [vmem:[%s2011_s0 + $0xd8] sm:$0xff]  ;;  %21 = vst.msk [vmem:[%s2013_s4] sm:$0x1] %vm19_vm0, %v1548_v12 }
  0x1c   :  { %1304 = vmatpush3.bf16.msra.mxu0 %v1502_v26  ;;  %v55_v26 = vld [vmem:[%s2011_s0 + $0x108] sm:$0xff]  ;;  %v1543_v37 = vld [vmem:[%s2010_s1 + $0x180] sm:$0xff]   ;;  %v52_v61 = vld [vmem:[%s2011_s0 + $0xf0] sm:$0xff] }
  0x1d   :  { %1350 = vmatpush3.bf16.msra.mxu1 %v1503_v27  ;;  %1305 = vmatprep.subr.bf16.mxu0 %v1504_v28  ;;  %v1220_v27 = vcombine.high %v54_v25, %v54_v25  ;;  %v1222_v28 = vcombine.high %v55_v26, %v55_v26  ;;  %v1221_v32 = vcombine.low %v55_v26, %v55_v26  ;;  %v53_v63 = vld [vmem:[%s2011_s0 + $0xf8] sm:$0xff] }
  0x1e   :  { %1351 = vmatprep.subr.bf16.mxu1 %v1505_v29  ;;  %v1535_v29 = vld [vmem:[%s2010_s1 + $0x108] sm:$0xff]  }
  0x20   :  { %1306 = vmatpush3.bf16.msra.mxu0 %v1506_v30  ;;  %v1219_v30 = vcombine.low %v54_v25, %v54_v25 }
  0x21   :  { %1352 = vmatpush3.bf16.msra.mxu1 %v1507_v31  ;;  %1383 = vmatprep.subr.bf16.mxu0 %v1508_v40  ;;  %v1538_v31 = vld [vmem:[%s2010_s1 + $0x1c8] sm:$0xff]   ;;  %v25_v40 = vld [vmem:[%s2011_s0 + $0x18] sm:$0xff] }
  0x22   :  { %1429 = vmatprep.subr.bf16.mxu1 %v1510_v42  ;;  %v29_v42 = vld [vmem:[%s2011_s0 + $0x38] sm:$0xff] }
  0x23   :  { %791 = vmatmul.mubr.bf16.vlgmr.msra.gmra.mxu0 %v1187_v35  ;;  %v1541_v35 = vld [vmem:[%s2010_s1 + $0x100] sm:$0xff]   ;;  %v1194_v46 = vcombine.high %v25_v40, %v29_v42  ;;  %v1193_v49 = vcombine.low %v25_v40, %v29_v42 }
  0x24   :  { %863 = vmatmul.mubr.bf16.vlgmr.msra.gmra.mxu1 %v1189_v38  ;;  %1384 = vmatpush3.bf16.msra.mxu0 %v1509_v41  ;;  %v24_v38 = vld [vmem:[%s2011_s0 + $0x10] sm:$0xff] }
  0x25   :  { %1430 = vmatpush3.bf16.msra.mxu1 %v1511_v43  ;;  %1385 = vmatprep.subr.bf16.mxu0 %v1512_v44  ;;  %v1192_v41 = vcombine.high %v24_v38, %v28_v39  ;;  %v32_v43 = vld [vmem:[%s2011_s0 + $0x50] sm:$0xff] }
  0x26   :  { %798 = vmatprep.mubr.bf16.mxu0 %v1196_v48  ;;  %870 = vmatprep.mubr.bf16.mxu1 %v1198_v52  ;;  %v36_v44 = vld [vmem:[%s2011_s0 + $0x70] sm:$0xff]  ;;  %v37_v48 = vld [vmem:[%s2011_s0 + $0x78] sm:$0xff] }
  0x27   :  { %1431 = vmatprep.subr.bf16.mxu1 %v1514_v53  ;;  %v1200_v50 = vcombine.high %v32_v43, %v36_v44  ;;  %v40_v52 = vld [vmem:[%s2011_s0 + $0x90] sm:$0xff] }
  0x28   :  { %1386 = vmatpush3.bf16.msra.mxu0 %v1513_v45  ;;  %v1191_v45 = vcombine.low %v24_v38, %v28_v39  ;;  %v44_v53 = vld [vmem:[%s2011_s0 + $0xb0] sm:$0xff] }
  0x29   :  { %1432 = vmatpush3.bf16.msra.mxu1 %v1515_v55  ;;  %1387 = vmatprep.subr.bf16.mxu0 %v1516_v56  ;;  %v45_v55 = vld [vmem:[%s2011_s0 + $0xb8] sm:$0xff]  ;;  %v1199_v56 = vcombine.low %v32_v43, %v36_v44 }
  0x2a   :  { %1433 = vmatprep.subr.bf16.mxu1 %v1518_v58  ;;  %v1208_v58 = vcombine.high %v40_v52, %v44_v53 }
  0x2b   :  { %799 = vmatmul.mubr.bf16.gmra.mxu0 %v1195_v51  ;;  %v1202_v51 = vcombine.high %v33_v47, %v37_v48 }
  0x2c   :  { %871 = vmatmul.mubr.bf16.gmra.mxu1 %v1197_v54  ;;  %1388 = vmatpush3.bf16.msra.mxu0 %v1517_v57  ;;  %v41_v54 = vld [vmem:[%s2011_s0 + $0x98] sm:$0xff]  ;;  %v1201_v57 = vcombine.low %v33_v47, %v37_v48 }
  0x2d   :  { %1434 = vmatpush3.bf16.msra.mxu1 %v1519_v59  ;;  %806 = vmatprep.mubr.bf16.mxu0 %v1204_v0  ;;  %v1210_v59 = vcombine.high %v41_v54, %v45_v55  ;;  %v1207_v0 = vcombine.low %v40_v52, %v44_v53 }
  0x2e   :  { %878 = vmatprep.mubr.bf16.mxu1 %v1206_v1  ;;  %1389 = vmatprep.subr.bf16.mxu0 %v1520_v2  ;;  %v1209_v1 = vcombine.low %v41_v54, %v45_v55  ;;  %v1216_v2 = vcombine.high %v48_v60, %v52_v61 }
  0x2f   :  { %1435 = vmatprep.subr.bf16.mxu1 %v1522_v6  ;;  %v1215_v6 = vcombine.low %v48_v60, %v52_v61 }
  0x30   :  { %1390 = vmatpush3.bf16.msra.mxu0 %v1521_v5  ;;  %v57_v5 = vld [vmem:[%s2011_s0 + $0x118] sm:$0xff] }
  0x31   :  { %1436 = vmatpush3.bf16.msra.mxu1 %v1523_v7  ;;  %1391 = vmatprep.subr.bf16.mxu0 %v1524_v8  ;;  %v1217_v7 = vcombine.low %v49_v62, %v53_v63  ;;  %v1225_v11 = vcombine.low %v57_v5, %v57_v5 }
  0x32   :  { %1437 = vmatprep.subr.bf16.mxu1 %v1526_v10 }
  0x33   :  { %807 = vmatmul.mubr.bf16.gmra.mxu0 %v1203_v3  ;;  %v1218_v3 = vcombine.high %v49_v62, %v53_v63 }
  0x34   :  { %879 = vmatmul.mubr.bf16.gmra.mxu1 %v1205_v4  ;;  %1392 = vmatpush3.bf16.msra.mxu0 %v1525_v9  ;;  %v56_v4 = vld [vmem:[%s2011_s0 + $0x110] sm:$0xff]  ;;  %v1226_v9 = vcombine.high %v57_v5, %v57_v5 }
  0x35   :  { %814 = vmatprep.mubr.bf16.mxu0 %v1212_v14  ;;  %886 = vmatprep.mubr.bf16.mxu1 %v1214_v17  ;;  %v1224_v8 = vcombine.high %v56_v4, %v56_v4  ;;  %v1223_v10 = vcombine.low %v56_v4, %v56_v4 }
  0x36   :  { %1438 = vmatpush3.bf16.msra.mxu1 %v1527_v18  ;;  %1393 = vmatprep.subr.bf16.mxu0 %v1528_v20 }
  0x37   :  { %1439 = vmatprep.subr.bf16.mxu1 %v1530_v22 }
  0x38   :  { %1394 = vmatpush3.bf16.msra.mxu0 %v1529_v21 }
  0x39   :  { %1395 = vmatprep.subr.bf16.mxu0 %v1532_v24 }
  0x3a   :  { %1440 = vmatpush3.bf16.msra.mxu1 %v1531_v23 }
  0x3b   :  { %815 = vmatmul.mubr.bf16.gmra.mxu0 %v1211_v16  ;;  %1441 = vmatprep.subr.bf16.mxu1 %v1538_v31 }
  0x3c   :  { %887 = vmatmul.mubr.bf16.gmra.mxu1 %v1213_v19  ;;  %822 = vmatprep.mubr.bf16.mxu0 %v1220_v27 }
  0x3d   :  { %894 = vmatprep.mubr.bf16.mxu1 %v1222_v28  ;;  %1396 = vmatpush3.bf16.msra.mxu0 %v1535_v29 }
  0x3e   :  { %1442 = vmatpush3.bf16.msra.mxu1 %v1539_v33  ;;  %1397 = vmatprep.subr.bf16.mxu0 %v1540_v34 }
  0x3f   :  { %1443 = vmatprep.subr.bf16.mxu1 %v1542_v36 }
  0x41   :  { %1398 = vmatpush3.bf16.msra.mxu0 %v1541_v35 }
  0x42   :  { %1444 = vmatpush3.bf16.msra.mxu1 %v1543_v37 }
  0x43   :  { %823 = vmatmul.mubr.bf16.gmra.mxu0 %v1219_v30 }
  0x44   :  { %895 = vmatmul.mubr.bf16.gmra.mxu1 %v1221_v32  ;;  %934 = vmatprep.mubr.bf16.mxu0 %v1192_v41 }
  0x45   :  { %1006 = vmatprep.mubr.bf16.mxu1 %v1194_v46 }
  0x4b   :  { %935 = vmatmul.mubr.bf16.vlgmr.msra.gmra.mxu0 %v1191_v45 }
  0x4c   :  { %1007 = vmatmul.mubr.bf16.vlgmr.msra.gmra.mxu1 %v1193_v49  ;;  %942 = vmatprep.mubr.bf16.mxu0 %v1200_v50 }
  0x4d   :  { %1014 = vmatprep.mubr.bf16.mxu1 %v1202_v51 }
  0x53   :  { %943 = vmatmul.mubr.bf16.gmra.mxu0 %v1199_v56 }
  0x54   :  { %1015 = vmatmul.mubr.bf16.gmra.mxu1 %v1201_v57  ;;  %950 = vmatprep.mubr.bf16.mxu0 %v1208_v58 }
  0x55   :  { %1022 = vmatprep.mubr.bf16.mxu1 %v1210_v59 }
  0x5b   :  { %951 = vmatmul.mubr.bf16.gmra.mxu0 %v1207_v0 }
  0x5c   :  { %1023 = vmatmul.mubr.bf16.gmra.mxu1 %v1209_v1  ;;  %958 = vmatprep.mubr.bf16.mxu0 %v1216_v2 }
  0x5d   :  { %1030 = vmatprep.mubr.bf16.mxu1 %v1218_v3 }
  0x63   :  { %959 = vmatmul.mubr.bf16.gmra.mxu0 %v1215_v6 }
  0x64   :  { %1031 = vmatmul.mubr.bf16.gmra.mxu1 %v1217_v7  ;;  %966 = vmatprep.mubr.bf16.mxu0 %v1224_v8 }
  0x65   :  { %1038 = vmatprep.mubr.bf16.mxu1 %v1226_v9 }
  0x6b   :  { %967 = vmatmul.mubr.bf16.gmra.mxu0 %v1223_v10 }
  0x6c   :  { %1039 = vmatmul.mubr.bf16.gmra.mxu1 %v1225_v11 }
  0xe3   :  { %v1307_v13 = vpop.f32.mrf.mxu0 }
  0xe4   :  { %v1353_v14 = vpop.f32.mrf.mxu1 }
  0xe5   :  { %v1308_v15 = vpop.f32.mrf.mxu0 }
  0xe6   :  { %v1354_v16 = vpop.f32.mrf.mxu1  ;;  %v1309_v52 = vadd.f32 %v1308_v15, %v1307_v13 }
  0xe7   :  { %v1310_v17 = vpop.f32.mrf.mxu0  ;;  %v1355_v53 = vadd.f32 %v1354_v16, %v1353_v14 }
  0xe8   :  { %v1356_v18 = vpop.f32.mrf.mxu1 }
  0xe9   :  { %v1311_v19 = vpop.f32.mrf.mxu0  ;;  %v865_v58 = vadd.f32 %v1355_v53, %v1309_v52 }
  0xea   :  { %v1357_v20 = vpop.f32.mrf.mxu1  ;;  %v1312_v59 = vadd.f32 %v1311_v19, %v1310_v17 }
  0xeb   :  { %v1313_v21 = vpop.f32.mrf.mxu0  ;;  %v1358_v60 = vadd.f32 %v1357_v20, %v1356_v18 }
  0xec   :  { %v1359_v22 = vpop.f32.mrf.mxu1 }
  0xed   :  { %v1314_v23 = vpop.f32.mrf.mxu0  ;;  %v868_v6 = vadd.f32 %v1358_v60, %v1312_v59 }
  0xee   :  { %v1360_v24 = vpop.f32.mrf.mxu1  ;;  %v1315_v3 = vadd.f32 %v1314_v23, %v1313_v21 }
  0xef   :  { %v1316_v25 = vpop.f32.mrf.mxu0  ;;  %v1361_v4 = vadd.f32 %v1360_v24, %v1359_v22 }
  0xf0   :  { %v1362_v26 = vpop.f32.mrf.mxu1 }
  0xf1   :  { %v1317_v27 = vpop.f32.mrf.mxu0  ;;  %v873_v14 = vadd.f32 %v1361_v4, %v1315_v3 }
  0xf2   :  { %v1363_v28 = vpop.f32.mrf.mxu1  ;;  %v1318_v16 = vadd.f32 %v1317_v27, %v1316_v25 }
  0xf3   :  { %v1882_v29 = vpop.f32.mrf.mxu0  ;;  %v1364_v17 = vadd.f32 %v1363_v28, %v1362_v26 }
  0xf4   :  { %v1884_v30 = vpop.f32.mrf.mxu1 }
  0xf5   :  { %v1320_v31 = vpop.f32.mrf.mxu0  ;;  %v876_v52 = vadd.f32 %v1364_v17, %v1318_v16 }
  0xf6   :  { %v1366_v32 = vpop.f32.mrf.mxu1 }
  0xf7   :  { %v1886_v33 = vpop.f32.mrf.mxu0 }
  0xf8   :  { %v1888_v34 = vpop.f32.mrf.mxu1 }
  0xf9   :  { %v1890_v35 = vpop.f32.mrf.mxu0 }
  0xfa   :  { %v1892_v36 = vpop.f32.mrf.mxu1 }
  0xfb   :  { %v1894_v37 = vpop.f32.mrf.mxu0 }
  0xfc   :  { %v1896_v38 = vpop.f32.mrf.mxu1 }
  0xfd   :  { %v1898_v39 = vpop.f32.mrf.mxu0 }
  0xfe   :  { %v1900_v40 = vpop.f32.mrf.mxu1 }
  0xff   :  { %v1902_v41 = vpop.f32.mrf.mxu0 }
 0x100   :  { %v1904_v42 = vpop.f32.mrf.mxu1 }
 0x101   :  { %v1906_v43 = vpop.f32.mrf.mxu0 }
 0x102   :  { %v1908_v44 = vpop.f32.mrf.mxu1 }
 0x103   :  { %v1910_v45 = vpop.f32.mrf.mxu0 }
 0x104   :  { %v1912_v46 = vpop.f32.mrf.mxu1 }
 0x105   :  { %v1914_v47 = vpop.f32.mrf.mxu0 }
 0x106   :  { %v1916_v48 = vpop.f32.mrf.mxu1 }
 0x107   :  { %v1334_v49 = vpop.f32.mrf.mxu0 }
 0x108   :  { %v1380_v50 = vpop.f32.mrf.mxu1  ;;  %v1321_v49 = vadd.f32 %v1320_v31, %v1882_v29  ;;  %v1324_v29 = vadd.f32 %v1890_v35, %v1886_v33  ;;  %v1373_v33 = vadd.f32 %v1900_v40, %v1896_v38  ;;  %v1376_v35 = vadd.f32 %v1908_v44, %v1904_v42 }
 0x109   :  { %v1335_v51 = vpop.f32.mrf.mxu0  ;;  %v1367_v50 = vadd.f32 %v1366_v32, %v1884_v30  ;;  %v1370_v30 = vadd.f32 %v1892_v36, %v1888_v34  ;;  %v1330_v34 = vadd.f32 %v1906_v43, %v1902_v41 }
 0x10a   :  { %v1381_v54 = vpop.f32.mrf.mxu1 }
 0x10b   :  { %v1399_v55 = vpop.f32.mrf.mxu0  ;;  %v892_v43 = vadd.f32 %v1376_v35, %v1330_v34 }
 0x10c   :  { %v1445_v56 = vpop.f32.mrf.mxu1 }
 0x10d   :  { %v1400_v57 = vpop.f32.mrf.mxu0 }
 0x10e   :  { %v1401_v61 = vadd.f32 %v1400_v57, %v1399_v55  ;;  %v1446_v62 = vpop.f32.mrf.mxu1 }
 0x10f   :  { %v1402_v63 = vpop.f32.mrf.mxu0  ;;  %v1447_v1 = vadd.f32 %v1446_v62, %v1445_v56  ;;  %v881_v56 = vadd.f32 %v1367_v50, %v1321_v49 }
 0x110   :  { %v937_v0 = vadd.f32 %v1401_v61, %v865_v58  ;;  %v1448_v2 = vpop.f32.mrf.mxu1 }
 0x111   :  { %v1403_v5 = vpop.f32.mrf.mxu0 }
 0x112   :  { %v1918_v7 = vadd.f32 %v1447_v1, %v937_v0  ;;  %v1404_v8 = vadd.f32 %v1403_v5, %v1402_v63  ;;  %v1449_v9 = vpop.f32.mrf.mxu1  ;;  %v1327_v63 = vadd.f32 %v1898_v39, %v1894_v37  ;;  %v884_v0 = vadd.f32 %v1370_v30, %v1324_v29 }
 0x113   :  { %v1405_v10 = vpop.f32.mrf.mxu0  ;;  %v1450_v12 = vadd.f32 %v1449_v9, %v1448_v2 }
 0x114   :  { %1047 = vst.msk [vmem:[%s2014_s2] sm:$0xff] %vm1046_vm1, %v1918_v7  ;;  %v940_v11 = vadd.f32 %v1404_v8, %v868_v6  ;;  %v1451_v13 = vpop.f32.mrf.mxu1  ;;  %v1141_v5 = vmul.f32 %v1918_v7, %v1918_v7  ;;  %v889_v42 = vadd.f32 %v1373_v33, %v1327_v63  ;;  %v1114_v44 = vsel %vm1046_vm1, %v1918_v7, 0.0 }
 0x115   :  { %v1406_v15 = vpop.f32.mrf.mxu0 }
 0x116   :  { %v1012_v18 = vadd.f32 %v1450_v12, %v940_v11  ;;  %v1407_v19 = vadd.f32 %v1406_v15, %v1405_v10  ;;  %v1452_v20 = vpop.f32.mrf.mxu1  ;;  %v1333_v15 = vadd.f32 %v1914_v47, %v1910_v45  ;;  %v1150_v16 = vsel %vm1046_vm1, %v1141_v5, 0.0 }
 0x117   :  { %v1408_v21 = vpop.f32.mrf.mxu0  ;;  %v1453_v23 = vadd.f32 %v1452_v20, %v1451_v13  ;;  %v1379_v45 = vadd.f32 %v1916_v48, %v1912_v46 }
 0x118   :  { %1048 = vst.msk [vmem:[%s2014_s2 + $0x8] sm:$0xff] %vm1046_vm1, %v1012_v18  ;;  %v945_v22 = vadd.f32 %v1407_v19, %v873_v14  ;;  %v1454_v24 = vpop.f32.mrf.mxu1  ;;  %v1142_v1 = vmul.f32 %v1012_v18, %v1012_v18  ;;  %v1115_v37 = vsel %vm1046_vm1, %v1012_v18, 0.0 }
 0x119   :  { %v1409_v51 = vpop.f32.mrf.mxu0  ;;  %v1116_v17 = vadd.f32 %v1115_v37, %v1114_v44  ;;  %v897_v30 = vadd.f32 %v1379_v45, %v1333_v15 }
 0x11a   :  { %v1017_v25 = vadd.f32 %v1453_v23, %v945_v22  ;;  %v1410_v26 = vadd.f32 %v1409_v51, %v1408_v21  ;;  %v1455_v27 = vpop.f32.mrf.mxu1  ;;  %v1151_v10 = vsel %vm1046_vm1, %v1142_v1, 0.0 }
 0x11b   :  { %v1411_v28 = vpop.f32.mrf.mxu0  ;;  %v1456_v54 = vadd.f32 %v1455_v27, %v1454_v24  ;;  %v1152_v47 = vadd.f32 %v1151_v10, %v1150_v16 }
 0x11c   :  { %1049 = vst.msk [vmem:[%s2014_s2 + $0x10] sm:$0xff] %vm1046_vm1, %v1017_v25  ;;  %v948_v53 = vadd.f32 %v1410_v26, %v876_v52  ;;  %v1457_v55 = vpop.f32.mrf.mxu1  ;;  %v1143_v39 = vmul.f32 %v1017_v25, %v1017_v25  ;;  %v1117_v11 = vsel %vm1046_vm1, %v1017_v25, 0.0 }
 0x11d   :  { %v1412_v57 = vpop.f32.mrf.mxu0  ;;  %v1118_v24 = vadd.f32 %v1117_v11, %v1116_v17 }
 0x11e   :  { %v1020_v31 = vadd.f32 %v1456_v54, %v948_v53  ;;  %v1413_v32 = vadd.f32 %v1412_v57, %v1411_v28  ;;  %v1458_v58 = vpop.f32.mrf.mxu1  ;;  %v1153_v20 = vsel %vm1046_vm1, %v1143_v39, 0.0 }
 0x11f   :  { %v1414_v59 = vpop.f32.mrf.mxu0  ;;  %v1459_v61 = vadd.f32 %v1458_v58, %v1457_v55  ;;  %v1154_v28 = vadd.f32 %v1153_v20, %v1152_v47 }
 0x120   :  { %1050 = vst.msk [vmem:[%s2014_s2 + $0x18] sm:$0xff] %vm1046_vm1, %v1020_v31  ;;  %v953_v60 = vadd.f32 %v1413_v32, %v881_v56  ;;  %v1460_v62 = vpop.f32.mrf.mxu1  ;;  %v1144_v8 = vmul.f32 %v1020_v31, %v1020_v31  ;;  %v1119_v7 = vsel %vm1046_vm1, %v1020_v31, 0.0 }
 0x121   :  { %v1415_v36 = vpop.f32.mrf.mxu0  ;;  %v1120_v53 = vadd.f32 %v1119_v7, %v1118_v24  ;;  %v1113_v7 = vld [vmem:[%s2012_s3] sm:$0x1] }
 0x122   :  { %v1025_v2 = vadd.f32 %v1459_v61, %v953_v60  ;;  %v1416_v3 = vadd.f32 %v1415_v36, %v1414_v59  ;;  %v1461_v4 = vpop.f32.mrf.mxu1  ;;  %v1155_v49 = vsel %vm1046_vm1, %v1144_v8, 0.0 }
 0x123   :  { %v1417_v6 = vpop.f32.mrf.mxu0  ;;  %v1462_v40 = vadd.f32 %v1461_v4, %v1460_v62  ;;  %v1156_v31 = vadd.f32 %v1155_v49, %v1154_v28 }
 0x124   :  { %1051 = vst.msk [vmem:[%s2014_s2 + $0x20] sm:$0xff] %vm1046_vm1, %v1025_v2  ;;  %v956_v38 = vadd.f32 %v1416_v3, %v884_v0  ;;  %v1463_v41 = vpop.f32.mrf.mxu1  ;;  %v1145_v18 = vmul.f32 %v1025_v2, %v1025_v2  ;;  %v1121_v51 = vsel %vm1046_vm1, %v1025_v2, 0.0 }
 0x125   :  { %v1418_v9 = vpop.f32.mrf.mxu0  ;;  %v1122_v32 = vadd.f32 %v1121_v51, %v1120_v53 }
 0x126   :  { %v1028_v12 = vadd.f32 %v1462_v40, %v956_v38  ;;  %v1419_v13 = vadd.f32 %v1418_v9, %v1417_v6  ;;  %v1464_v14 = vpop.f32.mrf.mxu1  ;;  %v1157_v54 = vsel %vm1046_vm1, %v1145_v18, 0.0 }
 0x127   :  { %v1420_v19 = vpop.f32.mrf.mxu0  ;;  %v1465_v22 = vadd.f32 %v1464_v14, %v1463_v41  ;;  %v1158_v33 = vadd.f32 %v1157_v54, %v1156_v31 }
 0x128   :  { %1052 = vst.msk [vmem:[%s2014_s2 + $0x28] sm:$0xff] %vm1046_vm1, %v1028_v12  ;;  %v961_v21 = vadd.f32 %v1419_v13, %v889_v42  ;;  %v1466_v23 = vpop.f32.mrf.mxu1  ;;  %v1146_v52 = vmul.f32 %v1028_v12, %v1028_v12  ;;  %v1123_v56 = vsel %vm1046_vm1, %v1028_v12, 0.0 }
 0x129   :  { %v1421_v50 = vpop.f32.mrf.mxu0  ;;  %v1124_v34 = vadd.f32 %v1123_v56, %v1122_v32 }
 0x12a   :  { %v1033_v25 = vadd.f32 %v1465_v22, %v961_v21  ;;  %v1422_v26 = vadd.f32 %v1421_v50, %v1420_v19  ;;  %v1467_v27 = vpop.f32.mrf.mxu1  ;;  %v1159_v59 = vsel %vm1046_vm1, %v1146_v52, 0.0 }
 0x12b   :  { %v1423_v55 = vpop.f32.mrf.mxu0  ;;  %v1468_v57 = vadd.f32 %v1467_v27, %v1466_v23  ;;  %v1160_v5 = vadd.f32 %v1159_v59, %v1158_v33  ;;  %v1140_v23 = vld [vmem:[%s2013_s4] sm:$0x1] }
 0x12c   :  { %1053 = vst.msk [vmem:[%s2014_s2 + $0x30] sm:$0xff] %vm1046_vm1, %v1033_v25  ;;  %v1147_v46 = vmul.f32 %v1033_v25, %v1033_v25  ;;  %v964_v48 = vadd.f32 %v1422_v26, %v892_v43  ;;  %v1469_v29 = vpop.f32.mrf.mxu1  ;;  %v1125_v60 = vsel %vm1046_vm1, %v1033_v25, 0.0 }
 0x12d   :  { %v1424_v58 = vpop.f32.mrf.mxu0  ;;  %v1126_v6 = vadd.f32 %v1125_v60, %v1124_v34 }
 0x12e   :  { %v1036_v61 = vadd.f32 %v1468_v57, %v964_v48  ;;  %v1425_v62 = vadd.f32 %v1424_v58, %v1423_v55  ;;  %v1470_v63 = vpop.f32.mrf.mxu1  ;;  %v1161_v35 = vsel %vm1046_vm1, %v1147_v46, 0.0 }
 0x12f   :  { %v1426_v36 = vpop.f32.mrf.mxu0  ;;  %v1471_v3 = vadd.f32 %v1470_v63, %v1469_v29  ;;  %v1162_v41 = vadd.f32 %v1161_v35, %v1160_v5 }
 0x130   :  { %1054 = vst.msk [vmem:[%s2014_s2 + $0x38] sm:$0xff] %vm1046_vm1, %v1036_v61  ;;  %v1127_v0 = vsel %vm1046_vm1, %v1036_v61, 0.0  ;;  %v1148_v1 = vmul.f32 %v1036_v61, %v1036_v61  ;;  %v969_v2 = vadd.f32 %v1425_v62, %v897_v30  ;;  %v1472_v4 = vpop.f32.mrf.mxu1 }
 0x131   :  { %v1427_v37 = vpop.f32.mrf.mxu0  ;;  %v1128_v42 = vadd.f32 %v1127_v0, %v1126_v6 }
 0x132   :  { %v1163_v39 = vsel %vm1046_vm1, %v1148_v1, 0.0  ;;  %v1041_v38 = vadd.f32 %v1471_v3, %v969_v2  ;;  %v1473_v40 = vpop.f32.mrf.mxu1 }
 0x133   :  { %v1164_v8 = vadd.f32 %v1163_v39, %v1162_v41 }
 0x134   :  { %1055 = vst.msk [vmem:[%s2014_s2 + $0x40] sm:$0xff] %vm1046_vm1, %v1041_v38  ;;  %v1129_v43 = vsel %vm1046_vm1, %v1041_v38, 0.0  ;;  %v1149_v44 = vmul.f32 %v1041_v38, %v1041_v38 }
 0x135   :  { %v1130_v9 = vadd.f32 %v1129_v43, %v1128_v42 }
 0x136   :  { %v1165_v10 = vsel %vm1046_vm1, %v1149_v44, 0.0 }
 0x137   :  { %v1131_v11 = vrot.slane %v1130_v9, 4  ;;  %v1166_v12 = vadd.f32 %v1165_v10, %v1164_v8 }
 0x139   :  { %v1132_v13 = vadd.f32 %v1131_v11, %v1130_v9  ;;  %v1167_v14 = vrot.slane %v1166_v12, 4 }
 0x13b   :  { %v1133_v15 = vrot.slane %v1132_v13, 2  ;;  %v1168_v16 = vadd.f32 %v1167_v14, %v1166_v12 }
 0x13d   :  { %v1134_v17 = vadd.f32 %v1133_v15, %v1132_v13  ;;  %v1169_v18 = vrot.slane %v1168_v16, 2 }
 0x13f   :  { %v1135_v19 = vrot.slane %v1134_v17, 1  ;;  %v1170_v20 = vadd.f32 %v1169_v18, %v1168_v16 }
 0x141   :  { %v1136_v21 = vadd.f32 %v1135_v19, %v1134_v17  ;;  %v1171_v22 = vrot.slane %v1170_v20, 1 }
 0x143   :  { %v1137_v45 = vadd.f32 %v1136_v21, %v1113_v7  ;;  %v1172_v47 = vadd.f32 %v1171_v22, %v1170_v20 }
 0x145   :  { %1139 = vst.msk [vmem:[%s2012_s3] sm:$0x1] %vm19_vm0, %v1137_v45  ;;  %v1173_v24 = vadd.f32 %v1172_v47, %v1140_v23 }
 0x147   :  { %1174 = vst.msk [vmem:[%s2013_s4] sm:$0x1] %vm19_vm0, %v1173_v24 }

// kernel: generator_forward.12
= control target key start
LH: loop header
LB: loop body
LE: loop exit
PB: predicated region body
PF: predicated region fallthrough
CT: control target
= control target key end

     0   :  { %v78_v8 = vlaneseq  ;;  %vm218_vm0 = vcmask 130048   ;;  %vm261_vm1 = vcmask 123904   ;;  %s701_s1 = inlined_call_operand.vmem [shape: f32[1,16], index: 1, kind: input, shape index: {}]   ;;  %s702_s2 = inlined_call_operand.vmem [shape: f32[1,16], index: 2, kind: input, shape index: {}]   ;;  %s703_s3 = inlined_call_operand.vmem [shape: f32[1,16], index: 3, kind: input, shape index: {}]   ;;  %s704_s0 = inlined_call_operand.vmem [shape: f32[338,16], index: 0, kind: input, shape index: {}]   ;;  %s705_s4 = inlined_call_operand.vmem [shape: f32[1,16], index: 4, kind: input, shape index: {}]   ;;  %s706_s5 = inlined_call_operand.vmem [shape: f32[338,16], index: 5, kind: output, shape index: {}]  }
   0x1   :  { %v20_v0 = vld [vmem:[%s701_s1] sm:$0x1]  ;;  %v35_v16 = vld [vmem:[%s704_s0 + $0x8] sm:$0xff]  ;;  %v36_v17 = vld [vmem:[%s704_s0 + $0x10] sm:$0xff] }
   0x2   :  { %v22_v1 = vld [vmem:[%s702_s2] sm:$0x1]  ;;  %v21_v2 = vmul.f32 0.00295858, %v20_v0  ;;  %v79_v9 = vshrl.u32 %v78_v8, 7  ;;  %v37_v18 = vld [vmem:[%s704_s0 + $0x18] sm:$0xff] }
   0x3   :  { %v23_v3 = vmul.f32 0.00295858, %v22_v1  ;;  %v27_v10 = vld [vmem:[%s703_s3] sm:$0x1]  ;;  %v39_v22 = vld [vmem:[%s704_s0 + $0x28] sm:$0xff]  ;;  %v40_v23 = vld [vmem:[%s704_s0 + $0x30] sm:$0xff] }
   0x4   :  { %v24_v4 = vmul.f32 %v21_v2, %v21_v2  ;;  %v80_v11 = vsub.s32 0, %v79_v9  ;;  %v31_v14 = vld [vmem:[%s705_s4] sm:$0x1]  ;;  %v41_v24 = vld [vmem:[%s704_s0 + $0x38] sm:$0xff]  ;;  %v43_v26 = vld [vmem:[%s704_s0 + $0x48] sm:$0xff] }
   0x5   :  { %v34_v15 = vld [vmem:[%s704_s0] sm:$0xff]  ;;  %v44_v27 = vld [vmem:[%s704_s0 + $0x50] sm:$0xff]  ;;  %v45_v32 = vld [vmem:[%s704_s0 + $0x58] sm:$0xff] }
   0x6   :  { %v25_v5 = vsub.f32 %v23_v3, %v24_v4  ;;  %v38_v19 = vld [vmem:[%s704_s0 + $0x20] sm:$0xff]  ;;  %v47_v34 = vld [vmem:[%s704_s0 + $0x68] sm:$0xff]  ;;  %v48_v59 = vld [vmem:[%s704_s0 + $0x70] sm:$0xff] }
   0x7   :  { %v42_v25 = vld [vmem:[%s704_s0 + $0x40] sm:$0xff]  ;;  %v49_v60 = vld [vmem:[%s704_s0 + $0x78] sm:$0xff] }
   0x8   :  { %v26_v6 = vmax.f32 %v25_v5, 0.0  ;;  %v46_v33 = vld [vmem:[%s704_s0 + $0x60] sm:$0xff] }
   0x9   :  { %v50_v5 = vld [vmem:[%s704_s0 + $0x80] sm:$0xff] }
   0xa   :  { %v28_v7 = vadd.f32 1e-05, %v26_v6 }
   0xc   :  { %267 = vrsqrt.f32 %v28_v7 }
  0x19   :  { %v268_v12 = vpop.eup %267 }
  0x1a   :  { %v30_v13 = vmul.f32 %v268_v12, %v27_v10  ;;  %v51_v10 = vld [vmem:[%s704_s0 + $0x88] sm:$0xff]  ;;  %v53_v12 = vld [vmem:[%s704_s0 + $0x98] sm:$0xff] }
  0x1c   :  { %v32_v20 = vmul.f32 %v30_v13, %v21_v2  ;;  %v326_v21 = vrot.slane %v30_v13, %v80_v11 }
  0x1e   :  { %v33_v28 = vsub.f32 %v31_v14, %v32_v20  ;;  %v83_v29 = vmul.f32 %v326_v21, %v34_v15  ;;  %v84_v30 = vmul.f32 %v326_v21, %v35_v16  ;;  %v85_v31 = vmul.f32 %v326_v21, %v36_v17  ;;  %v54_v17 = vld [vmem:[%s704_s0 + $0xa0] sm:$0xff] }
  0x1f   :  { %v86_v35 = vmul.f32 %v326_v21, %v37_v18  ;;  %v87_v36 = vmul.f32 %v326_v21, %v38_v19  ;;  %v88_v37 = vmul.f32 %v326_v21, %v39_v22  ;;  %v89_v38 = vmul.f32 %v326_v21, %v40_v23  ;;  %v55_v18 = vld [vmem:[%s704_s0 + $0xa8] sm:$0xff] }
  0x20   :  { %v362_v39 = vrot.slane %v33_v28, %v80_v11  ;;  %v90_v40 = vmul.f32 %v326_v21, %v41_v24  ;;  %v91_v41 = vmul.f32 %v326_v21, %v42_v25  ;;  %v92_v42 = vmul.f32 %v326_v21, %v43_v26  ;;  %v52_v11 = vld [vmem:[%s704_s0 + $0x90] sm:$0xff] }
  0x21   :  { %v93_v43 = vmul.f32 %v326_v21, %v44_v27  ;;  %v94_v44 = vmul.f32 %v326_v21, %v45_v32  ;;  %v95_v45 = vmul.f32 %v326_v21, %v46_v33  ;;  %v96_v46 = vmul.f32 %v326_v21, %v47_v34  ;;  %v56_v28 = vld [vmem:[%s704_s0 + $0xb0] sm:$0xff] }
  0x22   :  { %v132_v47 = vadd.f32 %v362_v39, %v83_v29  ;;  %v133_v48 = vadd.f32 %v362_v39, %v84_v30  ;;  %v134_v49 = vadd.f32 %v362_v39, %v85_v31  ;;  %v135_v50 = vadd.f32 %v362_v39, %v86_v35  ;;  %v57_v29 = vld [vmem:[%s704_s0 + $0xb8] sm:$0xff] }
  0x23   :  { %v136_v51 = vadd.f32 %v362_v39, %v87_v36  ;;  %v137_v52 = vadd.f32 %v362_v39, %v88_v37  ;;  %v138_v53 = vadd.f32 %v362_v39, %v89_v38  ;;  %v139_v54 = vadd.f32 %v362_v39, %v90_v40  ;;  %v58_v38 = vld [vmem:[%s704_s0 + $0xc0] sm:$0xff] }
  0x24   :  { %v175_v55 = vmax.f32 %v132_v47, 0.0  ;;  %v176_v56 = vmax.f32 %v133_v48, 0.0  ;;  %v177_v57 = vmax.f32 %v134_v49, 0.0  ;;  %v178_v58 = vmax.f32 %v135_v50, 0.0 }
  0x25   :  { %v179_v61 = vmax.f32 %v136_v51, 0.0  ;;  %v180_v62 = vmax.f32 %v137_v52, 0.0  ;;  %v181_v63 = vmax.f32 %v138_v53, 0.0  ;;  %v182_v0 = vmax.f32 %v139_v54, 0.0  ;;  %v62_v51 = vld [vmem:[%s704_s0 + $0xe0] sm:$0xff]  ;;  %v63_v52 = vld [vmem:[%s704_s0 + $0xe8] sm:$0xff] }
  0x26   :  { %219 = vst.msk [vmem:[%s706_s5] sm:$0xff] %vm218_vm0, %v175_v55  ;;  %220 = vst.msk [vmem:[%s706_s5 + $0x8] sm:$0xff] %vm218_vm0, %v176_v56  ;;  %v140_v1 = vadd.f32 %v362_v39, %v91_v41  ;;  %v141_v2 = vadd.f32 %v362_v39, %v92_v42  ;;  %v142_v3 = vadd.f32 %v362_v39, %v93_v43 }
  0x27   :  { %221 = vst.msk [vmem:[%s706_s5 + $0x10] sm:$0xff] %vm218_vm0, %v177_v57  ;;  %222 = vst.msk [vmem:[%s706_s5 + $0x18] sm:$0xff] %vm218_vm0, %v178_v58  ;;  %v143_v4 = vadd.f32 %v362_v39, %v94_v44  ;;  %v144_v6 = vadd.f32 %v362_v39, %v95_v45  ;;  %v145_v7 = vadd.f32 %v362_v39, %v96_v46  ;;  %v59_v44 = vld [vmem:[%s704_s0 + $0xc8] sm:$0xff]  ;;  %v60_v45 = vld [vmem:[%s704_s0 + $0xd0] sm:$0xff] }
  0x28   :  { %223 = vst.msk [vmem:[%s706_s5 + $0x20] sm:$0xff] %vm218_vm0, %v179_v61  ;;  %224 = vst.msk [vmem:[%s706_s5 + $0x28] sm:$0xff] %vm218_vm0, %v180_v62  ;;  %v97_v8 = vmul.f32 %v326_v21, %v48_v59  ;;  %v98_v9 = vmul.f32 %v326_v21, %v49_v60  ;;  %v183_v13 = vmax.f32 %v140_v1, 0.0  ;;  %v184_v14 = vmax.f32 %v141_v2, 0.0  ;;  %v61_v46 = vld [vmem:[%s704_s0 + $0xd8] sm:$0xff]  ;;  %v64_v61 = vld [vmem:[%s704_s0 + $0xf0] sm:$0xff] }
  0x29   :  { %225 = vst.msk [vmem:[%s706_s5 + $0x30] sm:$0xff] %vm218_vm0, %v181_v63  ;;  %226 = vst.msk [vmem:[%s706_s5 + $0x38] sm:$0xff] %vm218_vm0, %v182_v0  ;;  %v185_v15 = vmax.f32 %v142_v3, 0.0  ;;  %v186_v16 = vmax.f32 %v143_v4, 0.0  ;;  %v187_v19 = vmax.f32 %v144_v6, 0.0  ;;  %v188_v20 = vmax.f32 %v145_v7, 0.0 }
  0x2a   :  { %v146_v22 = vadd.f32 %v362_v39, %v97_v8  ;;  %v147_v23 = vadd.f32 %v362_v39, %v98_v9  ;;  %227 = vst.msk [vmem:[%s706_s5 + $0x40] sm:$0xff] %vm218_vm0, %v183_v13  ;;  %228 = vst.msk [vmem:[%s706_s5 + $0x48] sm:$0xff] %vm218_vm0, %v184_v14  ;;  %v99_v24 = vmul.f32 %v326_v21, %v50_v5  ;;  %v65_v62 = vld [vmem:[%s704_s0 + $0xf8] sm:$0xff]  ;;  %v66_v7 = vld [vmem:[%s704_s0 + $0x100] sm:$0xff] }
  0x2b   :  { %229 = vst.msk [vmem:[%s706_s5 + $0x50] sm:$0xff] %vm218_vm0, %v185_v15  ;;  %230 = vst.msk [vmem:[%s706_s5 + $0x58] sm:$0xff] %vm218_vm0, %v186_v16  ;;  %v100_v25 = vmul.f32 %v326_v21, %v51_v10  ;;  %v101_v26 = vmul.f32 %v326_v21, %v52_v11  ;;  %v102_v27 = vmul.f32 %v326_v21, %v53_v12  ;;  %v67_v12 = vld [vmem:[%s704_s0 + $0x108] sm:$0xff]  ;;  %v68_v13 = vld [vmem:[%s704_s0 + $0x110] sm:$0xff] }
  0x2c   :  { %231 = vst.msk [vmem:[%s706_s5 + $0x60] sm:$0xff] %vm218_vm0, %v187_v19  ;;  %232 = vst.msk [vmem:[%s706_s5 + $0x68] sm:$0xff] %vm218_vm0, %v188_v20  ;;  %v189_v30 = vmax.f32 %v146_v22, 0.0  ;;  %v190_v31 = vmax.f32 %v147_v23, 0.0  ;;  %v103_v32 = vmul.f32 %v326_v21, %v54_v17  ;;  %v104_v33 = vmul.f32 %v326_v21, %v55_v18  ;;  %v69_v14 = vld [vmem:[%s704_s0 + $0x118] sm:$0xff]  ;;  %v70_v19 = vld [vmem:[%s704_s0 + $0x120] sm:$0xff] }
  0x2d   :  { %v148_v34 = vadd.f32 %v362_v39, %v99_v24  ;;  %v149_v35 = vadd.f32 %v362_v39, %v100_v25  ;;  %v150_v36 = vadd.f32 %v362_v39, %v101_v26  ;;  %v151_v37 = vadd.f32 %v362_v39, %v102_v27  ;;  %v71_v20 = vld [vmem:[%s704_s0 + $0x128] sm:$0xff] }
  0x2e   :  { %233 = vst.msk [vmem:[%s706_s5 + $0x70] sm:$0xff] %vm218_vm0, %v189_v30  ;;  %234 = vst.msk [vmem:[%s706_s5 + $0x78] sm:$0xff] %vm218_vm0, %v190_v31  ;;  %v152_v40 = vadd.f32 %v362_v39, %v103_v32  ;;  %v153_v41 = vadd.f32 %v362_v39, %v104_v33  ;;  %v105_v42 = vmul.f32 %v326_v21, %v56_v28  ;;  %v72_v30 = vld [vmem:[%s704_s0 + $0x130] sm:$0xff]  ;;  %v73_v31 = vld [vmem:[%s704_s0 + $0x138] sm:$0xff] }
  0x2f   :  { %v106_v43 = vmul.f32 %v326_v21, %v57_v29  ;;  %v191_v47 = vmax.f32 %v148_v34, 0.0  ;;  %v192_v48 = vmax.f32 %v149_v35, 0.0  ;;  %v193_v49 = vmax.f32 %v150_v36, 0.0 }
  0x30   :  { %v194_v50 = vmax.f32 %v151_v37, 0.0  ;;  %v195_v53 = vmax.f32 %v152_v40, 0.0  ;;  %v196_v54 = vmax.f32 %v153_v41, 0.0  ;;  %v154_v55 = vadd.f32 %v362_v39, %v105_v42 }
  0x31   :  { %v155_v56 = vadd.f32 %v362_v39, %v106_v43  ;;  %235 = vst.msk [vmem:[%s706_s5 + $0x80] sm:$0xff] %vm218_vm0, %v191_v47  ;;  %236 = vst.msk [vmem:[%s706_s5 + $0x88] sm:$0xff] %vm218_vm0, %v192_v48  ;;  %v107_v57 = vmul.f32 %v326_v21, %v58_v38  ;;  %v108_v58 = vmul.f32 %v326_v21, %v59_v44  ;;  %v76_v47 = vld [vmem:[%s704_s0 + $0x150] sm:$0x3] }
  0x32   :  { %237 = vst.msk [vmem:[%s706_s5 + $0x90] sm:$0xff] %vm218_vm0, %v193_v49  ;;  %238 = vst.msk [vmem:[%s706_s5 + $0x98] sm:$0xff] %vm218_vm0, %v194_v50  ;;  %v109_v59 = vmul.f32 %v326_v21, %v60_v45  ;;  %v110_v60 = vmul.f32 %v326_v21, %v61_v46  ;;  %v197_v63 = vmax.f32 %v154_v55, 0.0  ;;  %v111_v1 = vmul.f32 %v326_v21, %v62_v51  ;;  %v74_v45 = vld [vmem:[%s704_s0 + $0x140] sm:$0xff]  ;;  %v75_v46 = vld [vmem:[%s704_s0 + $0x148] sm:$0xff] }
  0x33   :  { %239 = vst.msk [vmem:[%s706_s5 + $0xa0] sm:$0xff] %vm218_vm0, %v195_v53  ;;  %240 = vst.msk [vmem:[%s706_s5 + $0xa8] sm:$0xff] %vm218_vm0, %v196_v54  ;;  %v198_v0 = vmax.f32 %v155_v56, 0.0  ;;  %v112_v2 = vmul.f32 %v326_v21, %v63_v52  ;;  %v156_v3 = vadd.f32 %v362_v39, %v107_v57  ;;  %v157_v4 = vadd.f32 %v362_v39, %v108_v58 }
  0x34   :  { %v158_v5 = vadd.f32 %v362_v39, %v109_v59  ;;  %v159_v6 = vadd.f32 %v362_v39, %v110_v60  ;;  %241 = vst.msk [vmem:[%s706_s5 + $0xb0] sm:$0xff] %vm218_vm0, %v197_v63  ;;  %v160_v8 = vadd.f32 %v362_v39, %v111_v1  ;;  %v113_v10 = vmul.f32 %v326_v21, %v64_v61 }
  0x35   :  { %242 = vst.msk [vmem:[%s706_s5 + $0xb8] sm:$0xff] %vm218_vm0, %v198_v0  ;;  %v161_v9 = vadd.f32 %v362_v39, %v112_v2  ;;  %v114_v11 = vmul.f32 %v326_v21, %v65_v62  ;;  %v199_v15 = vmax.f32 %v156_v3, 0.0  ;;  %v200_v16 = vmax.f32 %v157_v4, 0.0 }
  0x36   :  { %v201_v17 = vmax.f32 %v158_v5, 0.0  ;;  %v202_v18 = vmax.f32 %v159_v6, 0.0  ;;  %v203_v22 = vmax.f32 %v160_v8, 0.0  ;;  %v162_v24 = vadd.f32 %v362_v39, %v113_v10 }
  0x37   :  { %v204_v23 = vmax.f32 %v161_v9, 0.0  ;;  %v163_v25 = vadd.f32 %v362_v39, %v114_v11  ;;  %243 = vst.msk [vmem:[%s706_s5 + $0xc0] sm:$0xff] %vm218_vm0, %v199_v15  ;;  %244 = vst.msk [vmem:[%s706_s5 + $0xc8] sm:$0xff] %vm218_vm0, %v200_v16  ;;  %v115_v26 = vmul.f32 %v326_v21, %v66_v7  ;;  %v116_v27 = vmul.f32 %v326_v21, %v67_v12 }
  0x38   :  { %245 = vst.msk [vmem:[%s706_s5 + $0xd0] sm:$0xff] %vm218_vm0, %v201_v17  ;;  %246 = vst.msk [vmem:[%s706_s5 + $0xd8] sm:$0xff] %vm218_vm0, %v202_v18  ;;  %v117_v28 = vmul.f32 %v326_v21, %v68_v13  ;;  %v118_v29 = vmul.f32 %v326_v21, %v69_v14  ;;  %v205_v32 = vmax.f32 %v162_v24, 0.0  ;;  %v119_v34 = vmul.f32 %v326_v21, %v70_v19 }
  0x39   :  { %247 = vst.msk [vmem:[%s706_s5 + $0xe0] sm:$0xff] %vm218_vm0, %v203_v22  ;;  %248 = vst.msk [vmem:[%s706_s5 + $0xe8] sm:$0xff] %vm218_vm0, %v204_v23  ;;  %v206_v33 = vmax.f32 %v163_v25, 0.0  ;;  %v120_v35 = vmul.f32 %v326_v21, %v71_v20  ;;  %v164_v36 = vadd.f32 %v362_v39, %v115_v26  ;;  %v165_v37 = vadd.f32 %v362_v39, %v116_v27 }
  0x3a   :  { %v166_v38 = vadd.f32 %v362_v39, %v117_v28  ;;  %v167_v40 = vadd.f32 %v362_v39, %v118_v29  ;;  %249 = vst.msk [vmem:[%s706_s5 + $0xf0] sm:$0xff] %vm218_vm0, %v205_v32  ;;  %v168_v41 = vadd.f32 %v362_v39, %v119_v34  ;;  %v121_v43 = vmul.f32 %v326_v21, %v72_v30 }
  0x3b   :  { %250 = vst.msk [vmem:[%s706_s5 + $0xf8] sm:$0xff] %vm218_vm0, %v206_v33  ;;  %v169_v42 = vadd.f32 %v362_v39, %v120_v35  ;;  %v122_v44 = vmul.f32 %v326_v21, %v73_v31  ;;  %v207_v48 = vmax.f32 %v164_v36, 0.0  ;;  %v208_v49 = vmax.f32 %v165_v37, 0.0 }
  0x3c   :  { %v209_v50 = vmax.f32 %v166_v38, 0.0  ;;  %v210_v51 = vmax.f32 %v167_v40, 0.0  ;;  %v211_v52 = vmax.f32 %v168_v41, 0.0  ;;  %v170_v54 = vadd.f32 %v362_v39, %v121_v43 }
  0x3d   :  { %v212_v53 = vmax.f32 %v169_v42, 0.0  ;;  %v171_v55 = vadd.f32 %v362_v39, %v122_v44  ;;  %251 = vst.msk [vmem:[%s706_s5 + $0x100] sm:$0xff] %vm218_vm0, %v207_v48  ;;  %252 = vst.msk [vmem:[%s706_s5 + $0x108] sm:$0xff] %vm218_vm0, %v208_v49  ;;  %v123_v56 = vmul.f32 %v326_v21, %v74_v45  ;;  %v124_v57 = vmul.f32 %v326_v21, %v75_v46 }
  0x3e   :  { %253 = vst.msk [vmem:[%s706_s5 + $0x110] sm:$0xff] %vm218_vm0, %v209_v50  ;;  %254 = vst.msk [vmem:[%s706_s5 + $0x118] sm:$0xff] %vm218_vm0, %v210_v51  ;;  %v125_v58 = vmul.f32 %v326_v21, %v76_v47  ;;  %v213_v59 = vmax.f32 %v170_v54, 0.0 }
  0x3f   :  { %255 = vst.msk [vmem:[%s706_s5 + $0x120] sm:$0xff] %vm218_vm0, %v211_v52  ;;  %256 = vst.msk [vmem:[%s706_s5 + $0x128] sm:$0xff] %vm218_vm0, %v212_v53  ;;  %v214_v60 = vmax.f32 %v171_v55, 0.0  ;;  %v172_v61 = vadd.f32 %v362_v39, %v123_v56  ;;  %v173_v62 = vadd.f32 %v362_v39, %v124_v57 }
  0x40   :  { %v174_v63 = vadd.f32 %v362_v39, %v125_v58  ;;  %257 = vst.msk [vmem:[%s706_s5 + $0x130] sm:$0xff] %vm218_vm0, %v213_v59 }
  0x41   :  { %258 = vst.msk [vmem:[%s706_s5 + $0x138] sm:$0xff] %vm218_vm0, %v214_v60  ;;  %v215_v21 = vmax.f32 %v172_v61, 0.0  ;;  %v216_v0 = vmax.f32 %v173_v62, 0.0 }
  0x42   :  { %v217_v1 = vmax.f32 %v174_v63, 0.0 }
  0x43   :  { %259 = vst.msk [vmem:[%s706_s5 + $0x140] sm:$0xff] %vm218_vm0, %v215_v21  ;;  %260 = vst.msk [vmem:[%s706_s5 + $0x148] sm:$0xff] %vm218_vm0, %v216_v0 }
  0x44   :  { %262 = vst.msk [vmem:[%s706_s5 + $0x150] sm:$0x3] %vm261_vm1, %v217_v1 }

// kernel: generator_forward.11
= control target key start
LH: loop header
LB: loop body
LE: loop exit
PB: predicated region body
PF: predicated region fallthrough
CT: control target
= control target key end

     0   :  { %v1927_v0 = vmov 0   ;;  %vm577_vm0 = vcmask 261120   ;;  %vm19_vm1 = vcmask 122880   ;;  %vm1060_vm2 = vcmask 130048   ;;  %s2664_s1 = inlined_call_operand.vmem [shape: bf16[288,16], index: 1, kind: input, shape index: {}]   ;;  %s2665_s0 = inlined_call_operand.vmem [shape: bf16[338,288], index: 0, kind: input, shape index: {}]   ;;  %s2666_s3 = inlined_call_operand.vmem [shape: f32[1,16], index: 3, kind: output, shape index: {1}]   ;;  %s2667_s4 = inlined_call_operand.vmem [shape: f32[1,16], index: 4, kind: output, shape index: {2}]   ;;  %s2668_s2 = inlined_call_operand.vmem [shape: f32[338,16], index: 2, kind: output, shape index: {0}]  }
   0x1   :  { %644 = vmatprep.subr.bf16.mxu0 %v1927_v0  ;;  %1788 = vmatprep.subr.bf16.mxu1 %v1927_v0  ;;  %v1822_v1 = vld [vmem:[%s2664_s1 + $0x38] sm:$0xff]   ;;  %v1823_v2 = vld [vmem:[%s2664_s1 + $0x30] sm:$0xff]   ;;  %v1824_v3 = vld [vmem:[%s2664_s1 + $0x28] sm:$0xff]   ;;  %vm1103_vm3 = vcmask 123904  }
   0x2   :  { %645 = vmatpush1.bf16.msra.mxu0 %v1822_v1  ;;  %1804 = vmatpush1.bf16.msra.mxu1 %v1822_v1  ;;  %v1825_v4 = vld [vmem:[%s2664_s1 + $0x20] sm:$0xff]   ;;  %v1826_v5 = vld [vmem:[%s2664_s1 + $0x18] sm:$0xff]   ;;  %v1827_v7 = vld [vmem:[%s2664_s1 + $0x10] sm:$0xff]  }
   0x3   :  { %646 = vmatprep.subr.bf16.mxu0 %v1927_v0  ;;  %1789 = vmatprep.subr.bf16.mxu1 %v1927_v0  ;;  %v1840_v6 = vld [vmem:[%s2665_s0 + $0x4] ss:$12 sps:$4 sm:$0xff]   ;;  %v1843_v8 = vld [vmem:[%s2665_s0 + $0x19c] ss:$12 sps:$4 sm:$0xff]   ;;  %v1838_v20 = vld [vmem:[%s2665_s0] ss:$12 sps:$4 sm:$0xff]  }
   0x4   :  { %676 = vmatprep.mubr.bf16.mxu0 %v1840_v6  ;;  %812 = vmatprep.mubr.bf16.mxu1 %v1843_v8  ;;  %v1828_v9 = vld [vmem:[%s2664_s1 + $0x8] sm:$0xff]   ;;  %v1829_v10 = vld [vmem:[%s2664_s1] sm:$0xff]   ;;  %v1830_v11 = vld [vmem:[%s2664_s1 + $0x78] sm:$0xff]  }
   0x5   :  { %v1831_v12 = vld [vmem:[%s2664_s1 + $0x70] sm:$0xff]   ;;  %v1832_v13 = vld [vmem:[%s2664_s1 + $0x68] sm:$0xff]   ;;  %v1833_v14 = vld [vmem:[%s2664_s1 + $0x60] sm:$0xff]  }
   0x6   :  { %647 = vmatpush1.bf16.msra.mxu0 %v1823_v2  ;;  %1805 = vmatpush1.bf16.msra.mxu1 %v1823_v2  ;;  %v1834_v15 = vld [vmem:[%s2664_s1 + $0x58] sm:$0xff]   ;;  %v1835_v16 = vld [vmem:[%s2664_s1 + $0x50] sm:$0xff]   ;;  %v1836_v17 = vld [vmem:[%s2664_s1 + $0x48] sm:$0xff]  }
   0x7   :  { %648 = vmatprep.subr.bf16.mxu0 %v1927_v0  ;;  %1790 = vmatprep.subr.bf16.mxu1 %v1927_v0  ;;  %v1837_v18 = vld [vmem:[%s2664_s1 + $0x40] sm:$0xff]   ;;  %v1856_v19 = vld [vmem:[%s2664_s1 + $0x88] sm:$0xff]   ;;  %v1849_v26 = vld [vmem:[%s2665_s0 + $0x1b0] ss:$12 sps:$4 sm:$0xff]  }
   0x8   :  { %v1841_v21 = vld [vmem:[%s2665_s0 + $0x198] ss:$12 sps:$4 sm:$0xff]   ;;  %v1844_v22 = vld [vmem:[%s2665_s0 + $0x1c] ss:$12 sps:$4 sm:$0xff]   ;;  %v1846_v23 = vld [vmem:[%s2665_s0 + $0x1b4] ss:$12 sps:$4 sm:$0xff]  }
   0x9   :  { %v1868_v24 = vld [vmem:[%s2664_s1 + $0x80] sm:$0xff]   ;;  %v1852_v28 = vld [vmem:[%s2665_s0 + $0x1cc] ss:$12 sps:$4 sm:$0xff]   ;;  %v1854_v29 = vld [vmem:[%s2665_s0 + $0x30] ss:$12 sps:$4 sm:$0xff]  }
   0xa   :  { %649 = vmatpush1.bf16.msra.mxu0 %v1824_v3  ;;  %1806 = vmatpush1.bf16.msra.mxu1 %v1824_v3  ;;  %v1848_v25 = vld [vmem:[%s2665_s0 + $0x18] ss:$12 sps:$4 sm:$0xff]   ;;  %v1850_v27 = vld [vmem:[%s2665_s0 + $0x34] ss:$12 sps:$4 sm:$0xff]   ;;  %v1869_v40 = vld [vmem:[%s2665_s0 + $0x7c] ss:$12 sps:$4 sm:$0xff]  }
   0xb   :  { %650 = vmatprep.subr.bf16.mxu0 %v1927_v0  ;;  %1791 = vmatprep.subr.bf16.mxu1 %v1927_v0  ;;  %v1855_v30 = vld [vmem:[%s2665_s0 + $0x1c8] ss:$12 sps:$4 sm:$0xff]   ;;  %v1857_v31 = vld [vmem:[%s2665_s0 + $0x4c] ss:$12 sps:$4 sm:$0xff]   ;;  %v1859_v32 = vld [vmem:[%s2665_s0 + $0x1e4] ss:$12 sps:$4 sm:$0xff]  }
   0xc   :  { %v106_v33 = vld [vmem:[%s2665_s0 + $0x1f8] sm:$0x11]  ;;  %v1861_v34 = vld [vmem:[%s2665_s0 + $0x48] ss:$12 sps:$4 sm:$0xff]   ;;  %v1862_v35 = vld [vmem:[%s2665_s0 + $0x1e0] ss:$12 sps:$4 sm:$0xff]  }
   0xd   :  { %v1863_v36 = vld [vmem:[%s2665_s0 + $0x64] ss:$12 sps:$4 sm:$0xff]   ;;  %v1674_v37 = vcombine.high %v106_v33, %v106_v33  ;;  %v1866_v38 = vld [vmem:[%s2665_s0 + $0x60] ss:$12 sps:$4 sm:$0xff]   ;;  %v1673_v39 = vcombine.low %v106_v33, %v106_v33  ;;  %v1871_v41 = vld [vmem:[%s2665_s0 + $0x8] ss:$12 sps:$4 sm:$0xff]  }
   0xe   :  { %651 = vmatpush1.bf16.msra.mxu0 %v1825_v4  ;;  %1807 = vmatpush1.bf16.msra.mxu1 %v1825_v4  ;;  %v1872_v42 = vld [vmem:[%s2665_s0 + $0x78] ss:$12 sps:$4 sm:$0xff]   ;;  %v1873_v43 = vld [vmem:[%s2665_s0 + $0x20] ss:$12 sps:$4 sm:$0xff]   ;;  %v1877_v46 = vld [vmem:[%s2665_s0 + $0x90] ss:$12 sps:$4 sm:$0xff]  }
   0xf   :  { %652 = vmatprep.subr.bf16.mxu0 %v1927_v0  ;;  %1792 = vmatprep.subr.bf16.mxu1 %v1927_v0  ;;  %v1874_v44 = vld [vmem:[%s2665_s0 + $0x94] ss:$12 sps:$4 sm:$0xff]   ;;  %v1876_v45 = vld [vmem:[%s2665_s0 + $0x38] ss:$12 sps:$4 sm:$0xff]   ;;  %v1878_v47 = vld [vmem:[%s2665_s0 + $0x50] ss:$12 sps:$4 sm:$0xff]  }
  0x10   :  { %v1879_v48 = vld [vmem:[%s2665_s0 + $0xac] ss:$12 sps:$4 sm:$0xff]   ;;  %v1881_v49 = vld [vmem:[%s2665_s0 + $0x68] ss:$12 sps:$4 sm:$0xff]   ;;  %v1884_v52 = vld [vmem:[%s2665_s0 + $0xc4] ss:$12 sps:$4 sm:$0xff]  }
  0x11   :  { %v1882_v50 = vld [vmem:[%s2665_s0 + $0xa8] ss:$12 sps:$4 sm:$0xff]   ;;  %v1883_v51 = vld [vmem:[%s2665_s0 + $0x80] ss:$12 sps:$4 sm:$0xff]   ;;  %v1886_v53 = vld [vmem:[%s2665_s0 + $0x98] ss:$12 sps:$4 sm:$0xff]  }
  0x12   :  { %653 = vmatpush1.bf16.msra.mxu0 %v1826_v5  ;;  %1808 = vmatpush1.bf16.msra.mxu1 %v1826_v5  ;;  %v1887_v54 = vld [vmem:[%s2665_s0 + $0xc0] ss:$12 sps:$4 sm:$0xff]   ;;  %v1888_v55 = vld [vmem:[%s2665_s0 + $0xb0] ss:$12 sps:$4 sm:$0xff]   ;;  %v1891_v57 = vld [vmem:[%s2665_s0 + $0xc8] ss:$12 sps:$4 sm:$0xff]  }
  0x13   :  { %654 = vmatprep.subr.bf16.mxu0 %v1927_v0  ;;  %1793 = vmatprep.subr.bf16.mxu1 %v1927_v0  ;;  %v1889_v56 = vld [vmem:[%s2665_s0 + $0xdc] ss:$12 sps:$4 sm:$0xff]   ;;  %v1892_v58 = vld [vmem:[%s2665_s0 + $0xd8] ss:$12 sps:$4 sm:$0xff]   ;;  %v1893_v59 = vld [vmem:[%s2665_s0 + $0xe0] ss:$12 sps:$4 sm:$0xff]  }
  0x14   :  { %v1894_v60 = vld [vmem:[%s2665_s0 + $0xf4] ss:$12 sps:$4 sm:$0xff]   ;;  %v1896_v61 = vld [vmem:[%s2665_s0 + $0xf8] ss:$12 sps:$4 sm:$0xff]   ;;  %v1897_v62 = vld [vmem:[%s2665_s0 + $0xf0] ss:$12 sps:$4 sm:$0xff]  }
  0x15   :  { %v1898_v63 = vld [vmem:[%s2665_s0 + $0x110] ss:$12 sps:$4 sm:$0xff]   ;;  %v1901_v1 = vld [vmem:[%s2665_s0 + $0x128] ss:$12 sps:$4 sm:$0xff]   ;;  %v1903_v3 = vld [vmem:[%s2665_s0 + $0x140] ss:$12 sps:$4 sm:$0xff]  }
  0x16   :  { %655 = vmatpush1.bf16.msra.mxu0 %v1827_v7  ;;  %1809 = vmatpush1.bf16.msra.mxu1 %v1827_v7  ;;  %v1902_v2 = vld [vmem:[%s2665_s0 + $0x108] ss:$12 sps:$4 sm:$0xff]   ;;  %v1904_v4 = vld [vmem:[%s2665_s0 + $0x124] ss:$12 sps:$4 sm:$0xff]   ;;  %v1907_v6 = vld [vmem:[%s2665_s0 + $0x120] ss:$12 sps:$4 sm:$0xff]  }
  0x17   :  { %656 = vmatprep.subr.bf16.mxu0 %v1927_v0  ;;  %1794 = vmatprep.subr.bf16.mxu1 %v1927_v0  ;;  %v1906_v5 = vld [vmem:[%s2665_s0 + $0x158] ss:$12 sps:$4 sm:$0xff]   ;;  %v1908_v7 = vld [vmem:[%s2665_s0 + $0x170] ss:$12 sps:$4 sm:$0xff]  }
  0x18   :  { %v1909_v8 = vld [vmem:[%s2665_s0 + $0x13c] ss:$12 sps:$4 sm:$0xff]  }
  0x1a   :  { %657 = vmatpush1.bf16.msra.mxu0 %v1828_v9  ;;  %1810 = vmatpush1.bf16.msra.mxu1 %v1828_v9  ;;  %v1911_v9 = vld [vmem:[%s2665_s0 + $0x188] ss:$12 sps:$4 sm:$0xff]  }
  0x1b   :  { %658 = vmatprep.subr.bf16.mxu0 %v1927_v0  ;;  %1795 = vmatprep.subr.bf16.mxu1 %v1927_v0 }
  0x1e   :  { %659 = vmatpush1.bf16.msra.mxu0 %v1829_v10  ;;  %1811 = vmatpush1.bf16.msra.mxu1 %v1829_v10  ;;  %v1912_v10 = vld [vmem:[%s2665_s0 + $0x138] ss:$12 sps:$4 sm:$0xff]  }
  0x1f   :  { %660 = vmatprep.subr.bf16.mxu0 %v1927_v0  ;;  %1796 = vmatprep.subr.bf16.mxu1 %v1927_v0 }
  0x22   :  { %661 = vmatpush2.bf16.msra.mxu0 %v1830_v11  ;;  %1812 = vmatpush2.bf16.msra.mxu1 %v1830_v11  ;;  %v1913_v11 = vld [vmem:[%s2665_s0 + $0x1a0] ss:$12 sps:$4 sm:$0xff]  }
  0x23   :  { %662 = vmatprep.subr.bf16.mxu0 %v1927_v0  ;;  %1797 = vmatprep.subr.bf16.mxu1 %v1927_v0 }
  0x26   :  { %663 = vmatpush2.bf16.msra.mxu0 %v1831_v12  ;;  %1813 = vmatpush2.bf16.msra.mxu1 %v1831_v12  ;;  %v1914_v12 = vld [vmem:[%s2665_s0 + $0x154] ss:$12 sps:$4 sm:$0xff]  }
  0x27   :  { %664 = vmatprep.subr.bf16.mxu0 %v1927_v0  ;;  %1798 = vmatprep.subr.bf16.mxu1 %v1927_v0 }
  0x2a   :  { %665 = vmatpush2.bf16.msra.mxu0 %v1832_v13  ;;  %1814 = vmatpush2.bf16.msra.mxu1 %v1832_v13  ;;  %v1916_v13 = vld [vmem:[%s2665_s0 + $0x1b8] ss:$12 sps:$4 sm:$0xff]  }
  0x2b   :  { %666 = vmatprep.subr.bf16.mxu0 %v1927_v0  ;;  %1799 = vmatprep.subr.bf16.mxu1 %v1927_v0 }
  0x2e   :  { %667 = vmatpush2.bf16.msra.mxu0 %v1833_v14  ;;  %1815 = vmatpush2.bf16.msra.mxu1 %v1833_v14  ;;  %v1917_v14 = vld [vmem:[%s2665_s0 + $0x150] ss:$12 sps:$4 sm:$0xff]  }
  0x2f   :  { %668 = vmatprep.subr.bf16.mxu0 %v1927_v0  ;;  %1800 = vmatprep.subr.bf16.mxu1 %v1927_v0 }
  0x32   :  { %669 = vmatpush2.bf16.msra.mxu0 %v1834_v15  ;;  %1816 = vmatpush2.bf16.msra.mxu1 %v1834_v15  ;;  %v1918_v15 = vld [vmem:[%s2665_s0 + $0x1d0] ss:$12 sps:$4 sm:$0xff]  }
  0x33   :  { %670 = vmatprep.subr.bf16.mxu0 %v1927_v0  ;;  %1801 = vmatprep.subr.bf16.mxu1 %v1927_v0 }
  0x36   :  { %671 = vmatpush2.bf16.msra.mxu0 %v1835_v16  ;;  %1817 = vmatpush2.bf16.msra.mxu1 %v1835_v16  ;;  %v1919_v16 = vld [vmem:[%s2665_s0 + $0x16c] ss:$12 sps:$4 sm:$0xff]  }
  0x37   :  { %672 = vmatprep.subr.bf16.mxu0 %v1927_v0  ;;  %1802 = vmatprep.subr.bf16.mxu1 %v1927_v0 }
  0x3a   :  { %673 = vmatpush2.bf16.msra.mxu0 %v1836_v17  ;;  %1818 = vmatpush2.bf16.msra.mxu1 %v1836_v17  ;;  %v1921_v17 = vld [vmem:[%s2665_s0 + $0x1e8] ss:$12 sps:$4 sm:$0xff]  }
  0x3b   :  { %674 = vmatprep.subr.bf16.mxu0 %v1927_v0  ;;  %1803 = vmatprep.subr.bf16.mxu1 %v1927_v0  ;;  %v1899_v0 = vld [vmem:[%s2665_s0 + $0x10c] ss:$12 sps:$4 sm:$0xff]  }
  0x3e   :  { %675 = vmatpush2.bf16.msra.mxu0 %v1837_v18  ;;  %1819 = vmatpush2.bf16.msra.mxu1 %v1837_v18  ;;  %v1922_v18 = vld [vmem:[%s2665_s0 + $0x168] ss:$12 sps:$4 sm:$0xff]  }
  0x3f   :  { %1740 = vmatprep.subr.bf16.mxu1 %v1856_v19 }
  0x41   :  { %677 = vmatmul.mubr.bf16.vlgmr.msra.gmra.mxu0 %v1838_v20  ;;  %813 = vmatmul.mubr.bf16.vlgmr.msra.gmra.mxu1 %v1841_v21  ;;  %v1924_v20 = vld [vmem:[%s2665_s0 + $0x184] ss:$12 sps:$4 sm:$0xff]   ;;  %v1926_v21 = vld [vmem:[%s2665_s0 + $0x180] ss:$12 sps:$4 sm:$0xff]  }
  0x42   :  { %684 = vmatprep.mubr.bf16.mxu0 %v1844_v22  ;;  %820 = vmatprep.mubr.bf16.mxu1 %v1846_v23 }
  0x43   :  { %1741 = vmatpush3.bf16.msra.mxu1 %v1856_v19  ;;  %v1923_v19 = vld [vmem:[%s2665_s0 + $0x200] ss:$0 sps:$4 sm:$0x11]  }
  0x44   :  { %1742 = vmatprep.subr.bf16.mxu1 %v1868_v24 }
  0x47   :  { %1743 = vmatpush3.bf16.msra.mxu1 %v1868_v24 }
  0x49   :  { %685 = vmatmul.mubr.bf16.gmra.mxu0 %v1848_v25  ;;  %821 = vmatmul.mubr.bf16.gmra.mxu1 %v1849_v26 }
  0x4a   :  { %692 = vmatprep.mubr.bf16.mxu0 %v1850_v27  ;;  %828 = vmatprep.mubr.bf16.mxu1 %v1852_v28 }
  0x51   :  { %693 = vmatmul.mubr.bf16.gmra.mxu0 %v1854_v29  ;;  %829 = vmatmul.mubr.bf16.gmra.mxu1 %v1855_v30  ;;  %v1928_v30 = vmov 0.0  }
  0x52   :  { %700 = vmatprep.mubr.bf16.mxu0 %v1857_v31  ;;  %836 = vmatprep.mubr.bf16.mxu1 %v1859_v32  ;;  %20 = vst.msk [vmem:[%s2666_s3] sm:$0x1] %vm19_vm1, %v1928_v30  ;;  %21 = vst.msk [vmem:[%s2667_s4] sm:$0x1] %vm19_vm1, %v1928_v30 }
  0x59   :  { %701 = vmatmul.mubr.bf16.gmra.mxu0 %v1861_v34  ;;  %837 = vmatmul.mubr.bf16.gmra.mxu1 %v1862_v35 }
  0x5a   :  { %708 = vmatprep.mubr.bf16.mxu0 %v1863_v36  ;;  %844 = vmatprep.mubr.bf16.mxu1 %v1674_v37 }
  0x61   :  { %709 = vmatmul.mubr.bf16.gmra.mxu0 %v1866_v38  ;;  %845 = vmatmul.mubr.bf16.gmra.mxu1 %v1673_v39 }
  0x62   :  { %716 = vmatprep.mubr.bf16.mxu0 %v1869_v40  ;;  %1744 = vmatprep.mubr.msk.bf16.mxu1 %vm577_vm0, %v1871_v41 }
  0x69   :  { %717 = vmatmul.mubr.bf16.gmra.mxu0 %v1872_v42  ;;  %1745 = vmatmul.mubr.msk.bf16.vlgmr.msra.gmra.mxu1 %vm577_vm0, %v1873_v43 }
  0x6a   :  { %724 = vmatprep.mubr.bf16.mxu0 %v1874_v44  ;;  %1748 = vmatprep.mubr.msk.bf16.mxu1 %vm577_vm0, %v1876_v45 }
  0x71   :  { %725 = vmatmul.mubr.bf16.gmra.mxu0 %v1877_v46  ;;  %1749 = vmatmul.mubr.msk.bf16.gmra.mxu1 %vm577_vm0, %v1878_v47 }
  0x72   :  { %732 = vmatprep.mubr.bf16.mxu0 %v1879_v48  ;;  %1752 = vmatprep.mubr.msk.bf16.mxu1 %vm577_vm0, %v1881_v49 }
  0x79   :  { %733 = vmatmul.mubr.bf16.gmra.mxu0 %v1882_v50  ;;  %1753 = vmatmul.mubr.msk.bf16.gmra.mxu1 %vm577_vm0, %v1883_v51 }
  0x7a   :  { %740 = vmatprep.mubr.bf16.mxu0 %v1884_v52  ;;  %1756 = vmatprep.mubr.msk.bf16.mxu1 %vm577_vm0, %v1886_v53 }
  0x81   :  { %741 = vmatmul.mubr.bf16.gmra.mxu0 %v1887_v54  ;;  %1757 = vmatmul.mubr.msk.bf16.gmra.mxu1 %vm577_vm0, %v1888_v55 }
  0x82   :  { %748 = vmatprep.mubr.bf16.mxu0 %v1889_v56  ;;  %1760 = vmatprep.mubr.msk.bf16.mxu1 %vm577_vm0, %v1891_v57 }
  0x89   :  { %749 = vmatmul.mubr.bf16.gmra.mxu0 %v1892_v58  ;;  %1761 = vmatmul.mubr.msk.bf16.gmra.mxu1 %vm577_vm0, %v1893_v59 }
  0x8a   :  { %756 = vmatprep.mubr.bf16.mxu0 %v1894_v60  ;;  %1764 = vmatprep.mubr.msk.bf16.mxu1 %vm577_vm0, %v1896_v61 }
  0x91   :  { %757 = vmatmul.mubr.bf16.gmra.mxu0 %v1897_v62  ;;  %1765 = vmatmul.mubr.msk.bf16.gmra.mxu1 %vm577_vm0, %v1898_v63 }
  0x92   :  { %764 = vmatprep.mubr.bf16.mxu0 %v1899_v0  ;;  %1768 = vmatprep.mubr.msk.bf16.mxu1 %vm577_vm0, %v1901_v1 }
  0x99   :  { %765 = vmatmul.mubr.bf16.gmra.mxu0 %v1902_v2  ;;  %1769 = vmatmul.mubr.msk.bf16.gmra.mxu1 %vm577_vm0, %v1903_v3 }
  0x9a   :  { %772 = vmatprep.mubr.bf16.mxu0 %v1904_v4  ;;  %1772 = vmatprep.mubr.msk.bf16.mxu1 %vm577_vm0, %v1906_v5 }
  0xa1   :  { %773 = vmatmul.mubr.bf16.gmra.mxu0 %v1907_v6  ;;  %1773 = vmatmul.mubr.msk.bf16.gmra.mxu1 %vm577_vm0, %v1908_v7 }
  0xa2   :  { %780 = vmatprep.mubr.bf16.mxu0 %v1909_v8  ;;  %1776 = vmatprep.mubr.msk.bf16.mxu1 %vm577_vm0, %v1911_v9 }
  0xa9   :  { %781 = vmatmul.mubr.bf16.gmra.mxu0 %v1912_v10  ;;  %1777 = vmatmul.mubr.msk.bf16.gmra.mxu1 %vm577_vm0, %v1913_v11 }
  0xaa   :  { %788 = vmatprep.mubr.bf16.mxu0 %v1914_v12  ;;  %1780 = vmatprep.mubr.msk.bf16.mxu1 %vm577_vm0, %v1916_v13 }
  0xb1   :  { %789 = vmatmul.mubr.bf16.gmra.mxu0 %v1917_v14  ;;  %1781 = vmatmul.mubr.msk.bf16.gmra.mxu1 %vm577_vm0, %v1918_v15 }
  0xb2   :  { %796 = vmatprep.mubr.bf16.mxu0 %v1919_v16  ;;  %1784 = vmatprep.mubr.msk.bf16.mxu1 %vm577_vm0, %v1921_v17 }
  0xb9   :  { %797 = vmatmul.mubr.bf16.gmra.mxu0 %v1922_v18  ;;  %1785 = vmatmul.mubr.msk.bf16.gmra.mxu1 %vm577_vm0, %v1923_v19 }
  0xba   :  { %804 = vmatprep.mubr.bf16.mxu0 %v1924_v20 }
  0xc1   :  { %805 = vmatmul.mubr.bf16.gmra.mxu0 %v1926_v21 }
 0x101   :  { %v678_v22 = vpop.f32.mrf.mxu0  ;;  %v2257_v23 = vpop.f32.mrf.mxu1 }
 0x103   :  { %v680_v24 = vpop.f32.mrf.mxu0  ;;  %v816_v25 = vpop.f32.mrf.mxu1 }
 0x105   :  { %v681_v26 = vpop.f32.mrf.mxu0  ;;  %v2259_v27 = vpop.f32.mrf.mxu1 }
 0x107   :  { %v683_v28 = vpop.f32.mrf.mxu0  ;;  %v819_v29 = vpop.f32.mrf.mxu1 }
 0x109   :  { %v686_v31 = vpop.f32.mrf.mxu0  ;;  %v2269_v32 = vpop.f32.mrf.mxu1 }
 0x10b   :  { %v688_v33 = vpop.f32.mrf.mxu0  ;;  %v824_v34 = vpop.f32.mrf.mxu1 }
 0x10d   :  { %v689_v35 = vpop.f32.mrf.mxu0  ;;  %v2271_v36 = vpop.f32.mrf.mxu1 }
 0x10f   :  { %v691_v37 = vpop.f32.mrf.mxu0  ;;  %v827_v38 = vpop.f32.mrf.mxu1 }
 0x111   :  { %v694_v39 = vpop.f32.mrf.mxu0  ;;  %v2273_v40 = vpop.f32.mrf.mxu1 }
 0x113   :  { %v696_v41 = vpop.f32.mrf.mxu0  ;;  %v832_v42 = vpop.f32.mrf.mxu1 }
 0x115   :  { %v2275_v43 = vpop.f32.mrf.mxu0  ;;  %v2277_v44 = vpop.f32.mrf.mxu1 }
 0x117   :  { %v699_v45 = vpop.f32.mrf.mxu0  ;;  %v835_v46 = vpop.f32.mrf.mxu1 }
 0x119   :  { %v702_v47 = vpop.f32.mrf.mxu0  ;;  %v2279_v48 = vpop.f32.mrf.mxu1 }
 0x11b   :  { %v704_v49 = vpop.f32.mrf.mxu0  ;;  %v840_v50 = vpop.f32.mrf.mxu1 }
 0x11d   :  { %v705_v51 = vpop.f32.mrf.mxu0  ;;  %v2281_v52 = vpop.f32.mrf.mxu1 }
 0x11f   :  { %v707_v53 = vpop.f32.mrf.mxu0  ;;  %v843_v54 = vpop.f32.mrf.mxu1 }
 0x121   :  { %v2283_v55 = vpop.f32.mrf.mxu0  ;;  %v2285_v56 = vpop.f32.mrf.mxu1 }
 0x123   :  { %v712_v57 = vpop.f32.mrf.mxu0  ;;  %v848_v58 = vpop.f32.mrf.mxu1 }
 0x125   :  { %v2287_v59 = vpop.f32.mrf.mxu0  ;;  %v849_v60 = vpop.f32.mrf.mxu1 }
 0x127   :  { %v715_v61 = vpop.f32.mrf.mxu0  ;;  %v850_v62 = vpop.f32.mrf.mxu1 }
 0x129   :  { %v718_v63 = vpop.f32.mrf.mxu0  ;;  %v1746_v0 = vpop.f32.mrf.mxu1 }
 0x12a   :  { %v895_v1 = vadd.f32 %v1746_v0, %v686_v31 }
 0x12b   :  { %v720_v2 = vpop.f32.mrf.mxu0  ;;  %v886_v3 = vpop.f32.mrf.mxu1 }
 0x12c   :  { %1063 = vst.msk [vmem:[%s2668_s2 + $0x10] sm:$0xff] %vm1060_vm2, %v895_v1  ;;  %v887_v4 = vadd.f32 %v886_v3, %v678_v22  ;;  %v1464_v12 = vmul.f32 %v895_v1, %v895_v1  ;;  %v1370_v19 = vsel %vm1060_vm2, %v895_v1, 0.0 }
 0x12d   :  { %v2293_v5 = vpop.f32.mrf.mxu0  ;;  %v1747_v6 = vpop.f32.mrf.mxu1 }
 0x12e   :  { %1061 = vst.msk [vmem:[%s2668_s2] sm:$0xff] %vm1060_vm2, %v887_v4  ;;  %v898_v7 = vadd.f32 %v1747_v6, %v689_v35  ;;  %v1462_v10 = vmul.f32 %v887_v4, %v887_v4  ;;  %v1367_v15 = vsel %vm1060_vm2, %v887_v4, 0.0  ;;  %v1508_v34 = vsel %vm1060_vm2, %v1464_v12, 0.0 }
 0x12f   :  { %v723_v8 = vpop.f32.mrf.mxu0  ;;  %v889_v9 = vpop.f32.mrf.mxu1 }
 0x130   :  { %1064 = vst.msk [vmem:[%s2668_s2 + $0x18] sm:$0xff] %vm1060_vm2, %v898_v7  ;;  %v890_v11 = vadd.f32 %v889_v9, %v681_v26  ;;  %v1505_v24 = vsel %vm1060_vm2, %v1462_v10, 0.0  ;;  %v1465_v25 = vmul.f32 %v898_v7, %v898_v7  ;;  %v1372_v35 = vsel %vm1060_vm2, %v898_v7, 0.0 }
 0x131   :  { %v2303_v13 = vpop.f32.mrf.mxu0  ;;  %v1750_v14 = vpop.f32.mrf.mxu1 }
 0x132   :  { %1062 = vst.msk [vmem:[%s2668_s2 + $0x8] sm:$0xff] %vm1060_vm2, %v890_v11  ;;  %v1368_v16 = vsel %vm1060_vm2, %v890_v11, 0.0  ;;  %v1463_v17 = vmul.f32 %v890_v11, %v890_v11  ;;  %v911_v18 = vadd.f32 %v1750_v14, %v702_v47  ;;  %v1510_v46 = vsel %vm1060_vm2, %v1465_v25, 0.0 }
 0x133   :  { %v1369_v20 = vadd.f32 %v1368_v16, %v1367_v15  ;;  %v728_v21 = vpop.f32.mrf.mxu0  ;;  %v902_v22 = vpop.f32.mrf.mxu1 }
 0x134   :  { %v1506_v26 = vsel %vm1060_vm2, %v1463_v17, 0.0  ;;  %1067 = vst.msk [vmem:[%s2668_s2 + $0x30] sm:$0xff] %vm1060_vm2, %v911_v18  ;;  %v903_v28 = vadd.f32 %v902_v22, %v694_v39  ;;  %v1468_v50 = vmul.f32 %v911_v18, %v911_v18  ;;  %v1378_v3 = vsel %vm1060_vm2, %v911_v18, 0.0 }
 0x135   :  { %v1371_v29 = vadd.f32 %v1370_v19, %v1369_v20  ;;  %v1507_v30 = vadd.f32 %v1506_v26, %v1505_v24  ;;  %v2318_v31 = vpop.f32.mrf.mxu0  ;;  %v1751_v33 = vpop.f32.mrf.mxu1 }
 0x136   :  { %1065 = vst.msk [vmem:[%s2668_s2 + $0x20] sm:$0xff] %vm1060_vm2, %v903_v28  ;;  %v1466_v37 = vmul.f32 %v903_v28, %v903_v28  ;;  %v914_v38 = vadd.f32 %v1751_v33, %v705_v51  ;;  %v1374_v47 = vsel %vm1060_vm2, %v903_v28, 0.0  ;;  %v1516_v11 = vsel %vm1060_vm2, %v1468_v50, 0.0 }
 0x137   :  { %v1509_v41 = vadd.f32 %v1508_v34, %v1507_v30  ;;  %v1373_v42 = vadd.f32 %v1372_v35, %v1371_v29  ;;  %v731_v45 = vpop.f32.mrf.mxu0  ;;  %v905_v39 = vpop.f32.mrf.mxu1 }
 0x138   :  { %1068 = vst.msk [vmem:[%s2668_s2 + $0x38] sm:$0xff] %vm1060_vm2, %v914_v38  ;;  %v906_v49 = vadd.f32 %v905_v39, %v2275_v43  ;;  %v1512_v58 = vsel %vm1060_vm2, %v1466_v37, 0.0  ;;  %v1469_v4 = vmul.f32 %v914_v38, %v914_v38  ;;  %v1380_v12 = vsel %vm1060_vm2, %v914_v38, 0.0 }
 0x139   :  { %v1375_v53 = vadd.f32 %v1374_v47, %v1373_v42  ;;  %v1511_v54 = vadd.f32 %v1510_v46, %v1509_v41  ;;  %v734_v57 = vpop.f32.mrf.mxu0  ;;  %v1754_v51 = vpop.f32.mrf.mxu1 }
 0x13a   :  { %1066 = vst.msk [vmem:[%s2668_s2 + $0x28] sm:$0xff] %vm1060_vm2, %v906_v49  ;;  %v1376_v60 = vsel %vm1060_vm2, %v906_v49, 0.0  ;;  %v1467_v61 = vmul.f32 %v906_v49, %v906_v49  ;;  %v927_v62 = vadd.f32 %v1754_v51, %v718_v63  ;;  %v1518_v19 = vsel %vm1060_vm2, %v1469_v4, 0.0 }
 0x13b   :  { %v1513_v0 = vadd.f32 %v1512_v58, %v1511_v54  ;;  %v1377_v1 = vadd.f32 %v1376_v60, %v1375_v53  ;;  %v736_v2 = vpop.f32.mrf.mxu0  ;;  %v918_v43 = vpop.f32.mrf.mxu1 }
 0x13c   :  { %v1514_v6 = vsel %vm1060_vm2, %v1467_v61, 0.0  ;;  %1071 = vst.msk [vmem:[%s2668_s2 + $0x50] sm:$0xff] %vm1060_vm2, %v927_v62  ;;  %v919_v7 = vadd.f32 %v918_v43, %v2283_v55  ;;  %v1472_v22 = vmul.f32 %v927_v62, %v927_v62  ;;  %v1386_v38 = vsel %vm1060_vm2, %v927_v62, 0.0 }
 0x13d   :  { %v1379_v8 = vadd.f32 %v1378_v3, %v1377_v1  ;;  %v1515_v9 = vadd.f32 %v1514_v6, %v1513_v0  ;;  %v737_v10 = vpop.f32.mrf.mxu0  ;;  %v1755_v63 = vpop.f32.mrf.mxu1 }
 0x13e   :  { %1069 = vst.msk [vmem:[%s2668_s2 + $0x40] sm:$0xff] %vm1060_vm2, %v919_v7  ;;  %v1470_v14 = vmul.f32 %v919_v7, %v919_v7  ;;  %v930_v15 = vadd.f32 %v1755_v63, %v2293_v5  ;;  %v1382_v20 = vsel %vm1060_vm2, %v919_v7, 0.0  ;;  %v1524_v50 = vsel %vm1060_vm2, %v1472_v22, 0.0 }
 0x13f   :  { %v1517_v16 = vadd.f32 %v1516_v11, %v1515_v9  ;;  %v1381_v17 = vadd.f32 %v1380_v12, %v1379_v8  ;;  %v739_v18 = vpop.f32.mrf.mxu0  ;;  %v921_v55 = vpop.f32.mrf.mxu1 }
 0x140   :  { %1072 = vst.msk [vmem:[%s2668_s2 + $0x58] sm:$0xff] %vm1060_vm2, %v930_v15  ;;  %v922_v21 = vadd.f32 %v921_v55, %v2287_v59  ;;  %v1520_v28 = vsel %vm1060_vm2, %v1470_v14, 0.0  ;;  %v1473_v41 = vmul.f32 %v930_v15, %v930_v15  ;;  %v1388_v53 = vsel %vm1060_vm2, %v930_v15, 0.0 }
 0x141   :  { %v1383_v24 = vadd.f32 %v1382_v20, %v1381_v17  ;;  %v1519_v25 = vadd.f32 %v1518_v19, %v1517_v16  ;;  %v742_v26 = vpop.f32.mrf.mxu0  ;;  %v1758_v5 = vpop.f32.mrf.mxu1 }
 0x142   :  { %1070 = vst.msk [vmem:[%s2668_s2 + $0x48] sm:$0xff] %vm1060_vm2, %v922_v21  ;;  %v1384_v29 = vsel %vm1060_vm2, %v922_v21, 0.0  ;;  %v1471_v30 = vmul.f32 %v922_v21, %v922_v21  ;;  %v943_v33 = vadd.f32 %v1758_v5, %v734_v57 }
 0x143   :  { %v1521_v34 = vadd.f32 %v1520_v28, %v1519_v25  ;;  %v1385_v35 = vadd.f32 %v1384_v29, %v1383_v24  ;;  %v744_v37 = vpop.f32.mrf.mxu0  ;;  %v934_v59 = vpop.f32.mrf.mxu1 }
 0x144   :  { %v1522_v42 = vsel %vm1060_vm2, %v1471_v30, 0.0  ;;  %1075 = vst.msk [vmem:[%s2668_s2 + $0x70] sm:$0xff] %vm1060_vm2, %v943_v33  ;;  %v935_v45 = vadd.f32 %v934_v59, %v2303_v13  ;;  %v1526_v13 = vsel %vm1060_vm2, %v1473_v41, 0.0  ;;  %v1476_v55 = vmul.f32 %v943_v33, %v943_v33 }
 0x145   :  { %v1387_v39 = vadd.f32 %v1386_v38, %v1385_v35  ;;  %v1523_v46 = vadd.f32 %v1522_v42, %v1521_v34  ;;  %v745_v47 = vpop.f32.mrf.mxu0  ;;  %v1759_v49 = vpop.f32.mrf.mxu1  ;;  %v1394_v24 = vsel %vm1060_vm2, %v943_v33, 0.0 }
 0x146   :  { %1073 = vst.msk [vmem:[%s2668_s2 + $0x60] sm:$0xff] %vm1060_vm2, %v935_v45  ;;  %v946_v54 = vadd.f32 %v1759_v49, %v737_v10  ;;  %v1474_v61 = vmul.f32 %v935_v45, %v935_v45  ;;  %v1390_v43 = vsel %vm1060_vm2, %v935_v45, 0.0  ;;  %v1532_v28 = vsel %vm1060_vm2, %v1476_v55, 0.0 }
 0x147   :  { %v1525_v57 = vadd.f32 %v1524_v50, %v1523_v46  ;;  %v1389_v51 = vadd.f32 %v1388_v53, %v1387_v39  ;;  %v747_v58 = vpop.f32.mrf.mxu0  ;;  %v937_v60 = vpop.f32.mrf.mxu1 }
 0x148   :  { %1076 = vst.msk [vmem:[%s2668_s2 + $0x78] sm:$0xff] %vm1060_vm2, %v946_v54  ;;  %v938_v62 = vadd.f32 %v937_v60, %v2318_v31  ;;  %v1528_v9 = vsel %vm1060_vm2, %v1474_v61, 0.0  ;;  %v1477_v29 = vmul.f32 %v946_v54, %v946_v54  ;;  %v1396_v59 = vsel %vm1060_vm2, %v946_v54, 0.0 }
 0x149   :  { %v1527_v0 = vadd.f32 %v1526_v13, %v1525_v57  ;;  %v750_v1 = vpop.f32.mrf.mxu0  ;;  %v1762_v2 = vpop.f32.mrf.mxu1  ;;  %v1391_v6 = vadd.f32 %v1390_v43, %v1389_v51 }
 0x14a   :  { %1074 = vst.msk [vmem:[%s2668_s2 + $0x68] sm:$0xff] %vm1060_vm2, %v938_v62  ;;  %v1475_v3 = vmul.f32 %v938_v62, %v938_v62  ;;  %v2390_v4 = vadd.f32 %v1762_v2, %v750_v1  ;;  %v1392_v31 = vsel %vm1060_vm2, %v938_v62, 0.0  ;;  %v1534_v42 = vsel %vm1060_vm2, %v1477_v29, 0.0 }
 0x14b   :  { %v752_v7 = vpop.f32.mrf.mxu0  ;;  %v950_v8 = vpop.f32.mrf.mxu1  ;;  %v1529_v63 = vadd.f32 %v1528_v9, %v1527_v0  ;;  %v1393_v16 = vadd.f32 %v1392_v31, %v1391_v6 }
 0x14c   :  { %1079 = vst.msk [vmem:[%s2668_s2 + $0x90] sm:$0xff] %vm1060_vm2, %v2390_v4  ;;  %v951_v10 = vadd.f32 %v950_v8, %v742_v26  ;;  %v1530_v14 = vsel %vm1060_vm2, %v1475_v3, 0.0  ;;  %v1480_v7 = vmul.f32 %v2390_v4, %v2390_v4 }
 0x14d   :  { %v753_v11 = vpop.f32.mrf.mxu0  ;;  %v1763_v12 = vpop.f32.mrf.mxu1  ;;  %v1531_v20 = vadd.f32 %v1530_v14, %v1529_v63  ;;  %v1395_v25 = vadd.f32 %v1394_v24, %v1393_v16 }
 0x14e   :  { %1077 = vst.msk [vmem:[%s2668_s2 + $0x80] sm:$0xff] %vm1060_vm2, %v951_v10  ;;  %v2404_v15 = vadd.f32 %v1763_v12, %v753_v11  ;;  %v1478_v45 = vmul.f32 %v951_v10, %v951_v10  ;;  %v1398_v50 = vsel %vm1060_vm2, %v951_v10, 0.0  ;;  %v1402_v10 = vsel %vm1060_vm2, %v2390_v4, 0.0 }
 0x14f   :  { %v755_v17 = vpop.f32.mrf.mxu0  ;;  %v953_v18 = vpop.f32.mrf.mxu1  ;;  %v1533_v34 = vadd.f32 %v1532_v28, %v1531_v20  ;;  %v1397_v33 = vadd.f32 %v1396_v59, %v1395_v25  ;;  %v1540_v16 = vsel %vm1060_vm2, %v1480_v7, 0.0 }
 0x150   :  { %1080 = vst.msk [vmem:[%s2668_s2 + $0x98] sm:$0xff] %vm1060_vm2, %v2404_v15  ;;  %v954_v19 = vadd.f32 %v953_v18, %v745_v47  ;;  %v1536_v60 = vsel %vm1060_vm2, %v1478_v45, 0.0  ;;  %v1481_v17 = vmul.f32 %v2404_v15, %v2404_v15  ;;  %v1404_v4 = vsel %vm1060_vm2, %v2404_v15, 0.0 }
 0x151   :  { %v758_v21 = vpop.f32.mrf.mxu0  ;;  %v1766_v22 = vpop.f32.mrf.mxu1  ;;  %v1535_v46 = vadd.f32 %v1534_v42, %v1533_v34  ;;  %v1399_v57 = vadd.f32 %v1398_v50, %v1397_v33 }
 0x152   :  { %1078 = vst.msk [vmem:[%s2668_s2 + $0x88] sm:$0xff] %vm1060_vm2, %v954_v19  ;;  %v1479_v53 = vmul.f32 %v954_v19, %v954_v19  ;;  %v1400_v13 = vsel %vm1060_vm2, %v954_v19, 0.0  ;;  %v1542_v25 = vsel %vm1060_vm2, %v1481_v17, 0.0 }
 0x153   :  { %v760_v26 = vpop.f32.mrf.mxu0  ;;  %v966_v5 = vpop.f32.mrf.mxu1  ;;  %v1537_v61 = vadd.f32 %v1536_v60, %v1535_v46  ;;  %v1401_v43 = vadd.f32 %v1400_v13, %v1399_v57 }
 0x154   :  { %v967_v30 = vadd.f32 %v966_v5, %v758_v21  ;;  %v1538_v1 = vsel %vm1060_vm2, %v1479_v53, 0.0 }
 0x155   :  { %v761_v35 = vpop.f32.mrf.mxu0  ;;  %v1767_v37 = vpop.f32.mrf.mxu1  ;;  %v1539_v8 = vadd.f32 %v1538_v1, %v1537_v61  ;;  %v1403_v11 = vadd.f32 %v1402_v10, %v1401_v43 }
 0x156   :  { %1081 = vst.msk [vmem:[%s2668_s2 + $0xa0] sm:$0xff] %vm1060_vm2, %v967_v30  ;;  %v1482_v26 = vmul.f32 %v967_v30, %v967_v30  ;;  %v1406_v34 = vsel %vm1060_vm2, %v967_v30, 0.0 }
 0x157   :  { %v763_v38 = vpop.f32.mrf.mxu0  ;;  %v969_v41 = vpop.f32.mrf.mxu1  ;;  %v1541_v18 = vadd.f32 %v1540_v16, %v1539_v8  ;;  %v1405_v21 = vadd.f32 %v1404_v4, %v1403_v11 }
 0x158   :  { %v970_v39 = vadd.f32 %v969_v41, %v761_v35  ;;  %v1544_v41 = vsel %vm1060_vm2, %v1482_v26, 0.0 }
 0x159   :  { %v766_v47 = vpop.f32.mrf.mxu0  ;;  %v1770_v49 = vpop.f32.mrf.mxu1  ;;  %v1543_v5 = vadd.f32 %v1542_v25, %v1541_v18  ;;  %v1407_v59 = vadd.f32 %v1406_v34, %v1405_v21 }
 0x15a   :  { %1082 = vst.msk [vmem:[%s2668_s2 + $0xa8] sm:$0xff] %vm1060_vm2, %v970_v39  ;;  %v2428_v54 = vadd.f32 %v1766_v22, %v766_v47  ;;  %v1483_v35 = vmul.f32 %v970_v39, %v970_v39  ;;  %v1408_v42 = vsel %vm1060_vm2, %v970_v39, 0.0 }
 0x15b   :  { %v768_v51 = vpop.f32.mrf.mxu0  ;;  %v982_v58 = vpop.f32.mrf.mxu1  ;;  %v1409_v50 = vadd.f32 %v1408_v42, %v1407_v59 }
 0x15c   :  { %1083 = vst.msk [vmem:[%s2668_s2 + $0xb0] sm:$0xff] %vm1060_vm2, %v2428_v54  ;;  %v1484_v30 = vmul.f32 %v2428_v54, %v2428_v54  ;;  %v1546_v47 = vsel %vm1060_vm2, %v1483_v35, 0.0  ;;  %v1410_v51 = vsel %vm1060_vm2, %v2428_v54, 0.0 }
 0x15d   :  { %v769_v62 = vpop.f32.mrf.mxu0  ;;  %v1771_v0 = vpop.f32.mrf.mxu1  ;;  %v1411_v43 = vadd.f32 %v1410_v51, %v1409_v50 }
 0x15e   :  { %v978_v2 = vadd.f32 %v1767_v37, %v769_v62  ;;  %v1548_v60 = vsel %vm1060_vm2, %v1484_v30, 0.0 }
 0x15f   :  { %v771_v3 = vpop.f32.mrf.mxu0  ;;  %v985_v6 = vpop.f32.mrf.mxu1 }
 0x160   :  { %1084 = vst.msk [vmem:[%s2668_s2 + $0xb8] sm:$0xff] %vm1060_vm2, %v978_v2  ;;  %v1412_v62 = vsel %vm1060_vm2, %v978_v2, 0.0 }
 0x161   :  { %v774_v9 = vpop.f32.mrf.mxu0  ;;  %v2444_v31 = vpop.f32.mrf.mxu1 }
 0x162   :  { %v983_v63 = vadd.f32 %v982_v58, %v774_v9  ;;  %v1485_v58 = vmul.f32 %v978_v2, %v978_v2  ;;  %v1413_v2 = vadd.f32 %v1412_v62, %v1411_v43 }
 0x163   :  { %v776_v12 = vpop.f32.mrf.mxu0  ;;  %v998_v14 = vpop.f32.mrf.mxu1 }
 0x164   :  { %1085 = vst.msk [vmem:[%s2668_s2 + $0xc0] sm:$0xff] %vm1060_vm2, %v983_v63  ;;  %v1486_v54 = vmul.f32 %v983_v63, %v983_v63  ;;  %v1550_v7 = vsel %vm1060_vm2, %v1485_v58, 0.0  ;;  %v1414_v8 = vsel %vm1060_vm2, %v983_v63, 0.0 }
 0x165   :  { %v777_v55 = vpop.f32.mrf.mxu0  ;;  %v2455_v19 = vpop.f32.mrf.mxu1  ;;  %v1415_v4 = vadd.f32 %v1414_v8, %v1413_v2 }
 0x166   :  { %v986_v20 = vadd.f32 %v985_v6, %v777_v55 }
 0x167   :  { %v779_v22 = vpop.f32.mrf.mxu0  ;;  %v1001_v24 = vpop.f32.mrf.mxu1 }
 0x168   :  { %1086 = vst.msk [vmem:[%s2668_s2 + $0xc8] sm:$0xff] %vm1060_vm2, %v986_v20  ;;  %v1487_v9 = vmul.f32 %v986_v20, %v986_v20  ;;  %v1416_v16 = vsel %vm1060_vm2, %v986_v20, 0.0 }
 0x169   :  { %v782_v28 = vpop.f32.mrf.mxu0  ;;  %v1778_v29 = vpop.f32.mrf.mxu1  ;;  %v1417_v20 = vadd.f32 %v1416_v16, %v1415_v4 }
 0x16a   :  { %v991_v37 = vadd.f32 %v1770_v49, %v782_v28  ;;  %v2466_v15 = vadd.f32 %v1778_v29, %v2257_v23  ;;  %v1545_v23 = vadd.f32 %v1544_v41, %v1543_v5  ;;  %v1554_v22 = vsel %vm1060_vm2, %v1487_v9, 0.0 }
 0x16b   :  { %v784_v33 = vpop.f32.mrf.mxu0  ;;  %v2468_v38 = vpop.f32.mrf.mxu1 }
 0x16c   :  { %1087 = vst.msk [vmem:[%s2668_s2 + $0xd0] sm:$0xff] %vm1060_vm2, %v991_v37  ;;  %1095 = vst.msk [vmem:[%s2668_s2 + $0x110] sm:$0xff] %vm1060_vm2, %v2466_v15  ;;  %v1488_v10 = vmul.f32 %v991_v37, %v991_v37  ;;  %v1418_v25 = vsel %vm1060_vm2, %v991_v37, 0.0 }
 0x16d   :  { %v785_v45 = vpop.f32.mrf.mxu0  ;;  %v1779_v46 = vpop.f32.mrf.mxu1  ;;  %v1419_v41 = vadd.f32 %v1418_v25, %v1417_v20 }
 0x16e   :  { %v994_v39 = vadd.f32 %v1771_v0, %v785_v45  ;;  %v2485_v49 = vadd.f32 %v1779_v46, %v2259_v27  ;;  %v1547_v27 = vadd.f32 %v1546_v47, %v1545_v23 }
 0x16f   :  { %v787_v53 = vpop.f32.mrf.mxu0  ;;  %v2487_v57 = vpop.f32.mrf.mxu1 }
 0x170   :  { %1088 = vst.msk [vmem:[%s2668_s2 + $0xd8] sm:$0xff] %vm1060_vm2, %v994_v39  ;;  %1096 = vst.msk [vmem:[%s2668_s2 + $0x118] sm:$0xff] %vm1060_vm2, %v2485_v49  ;;  %v1489_v26 = vmul.f32 %v994_v39, %v994_v39  ;;  %v1420_v34 = vsel %vm1060_vm2, %v994_v39, 0.0 }
 0x171   :  { %v790_v13 = vpop.f32.mrf.mxu0  ;;  %v1782_v61 = vpop.f32.mrf.mxu1  ;;  %v1421_v46 = vadd.f32 %v1420_v34, %v1419_v41 }
 0x172   :  { %v999_v0 = vadd.f32 %v998_v14, %v790_v13  ;;  %v2503_v1 = vadd.f32 %v1782_v61, %v2273_v40  ;;  %v1549_v40 = vadd.f32 %v1548_v60, %v1547_v27  ;;  %v1552_v14 = vsel %vm1060_vm2, %v1486_v54, 0.0 }
 0x173   :  { %v792_v3 = vpop.f32.mrf.mxu0  ;;  %v1030_v6 = vpop.f32.mrf.mxu1  ;;  %v1558_v23 = vsel %vm1060_vm2, %v1489_v26, 0.0 }
 0x174   :  { %1089 = vst.msk [vmem:[%s2668_s2 + $0xe0] sm:$0xff] %vm1060_vm2, %v999_v0  ;;  %1099 = vst.msk [vmem:[%s2668_s2 + $0x130] sm:$0xff] %vm1060_vm2, %v2503_v1  ;;  %v2517_v11 = vadd.f32 %v1030_v6, %v2269_v32  ;;  %v1551_v55 = vadd.f32 %v1550_v7, %v1549_v40  ;;  %v1490_v35 = vmul.f32 %v999_v0, %v999_v0  ;;  %v1422_v30 = vsel %vm1060_vm2, %v999_v0, 0.0 }
 0x175   :  { %v793_v12 = vpop.f32.mrf.mxu0  ;;  %v1783_v63 = vpop.f32.mrf.mxu1 }
 0x176   :  { %v1002_v17 = vadd.f32 %v1001_v24, %v793_v12  ;;  %v2522_v18 = vadd.f32 %v1783_v63, %v2277_v44  ;;  %1097 = vst.msk [vmem:[%s2668_s2 + $0x120] sm:$0xff] %vm1060_vm2, %v2517_v11  ;;  %v1553_v44 = vadd.f32 %v1552_v14, %v1551_v55  ;;  %v1556_v24 = vsel %vm1060_vm2, %v1488_v10, 0.0 }
 0x177   :  { %v795_v32 = vpop.f32.mrf.mxu0  ;;  %v1033_v21 = vpop.f32.mrf.mxu1  ;;  %v1560_v50 = vsel %vm1060_vm2, %v1490_v35, 0.0  ;;  %v1498_v41 = vmul.f32 %v2517_v11, %v2517_v11 }
 0x178   :  { %1090 = vst.msk [vmem:[%s2668_s2 + $0xe8] sm:$0xff] %vm1060_vm2, %v1002_v17  ;;  %1100 = vst.msk [vmem:[%s2668_s2 + $0x138] sm:$0xff] %vm1060_vm2, %v2522_v18  ;;  %v2542_v5 = vadd.f32 %v1033_v21, %v2271_v36  ;;  %v1555_v33 = vadd.f32 %v1554_v22, %v1553_v44  ;;  %v1491_v45 = vmul.f32 %v1002_v17, %v1002_v17  ;;  %v1424_v53 = vsel %vm1060_vm2, %v1002_v17, 0.0 }
 0x179   :  { %v798_v28 = vpop.f32.mrf.mxu0  ;;  %v1786_v29 = vpop.f32.mrf.mxu1  ;;  %v1105_v17 = vlaneseq  ;;  %v1496_v22 = vmul.f32 %v2466_v15, %v2466_v15 }
 0x17a   :  { %v1007_v37 = vadd.f32 %v2444_v31, %v798_v28  ;;  %v2547_v59 = vadd.f32 %v1786_v29, %v2285_v56  ;;  %1098 = vst.msk [vmem:[%s2668_s2 + $0x128] sm:$0xff] %vm1060_vm2, %v2542_v5  ;;  %v1557_v31 = vadd.f32 %v1556_v24, %v1555_v33  ;;  %v1562_v61 = vsel %vm1060_vm2, %v1491_v45, 0.0 }
 0x17b   :  { %v800_v36 = vpop.f32.mrf.mxu0  ;;  %v1046_v42 = vpop.f32.mrf.mxu1  ;;  %v1434_v24 = vsel %vm1060_vm2, %v2466_v15, 0.0  ;;  %v1106_v28 = vshrl.u32 %v1105_v17, 7  ;;  %v1436_v33 = vsel %vm1060_vm2, %v2485_v49, 0.0 }
 0x17c   :  { %1091 = vst.msk [vmem:[%s2668_s2 + $0xf0] sm:$0xff] %vm1060_vm2, %v1007_v37  ;;  %v2566_v56 = vadd.f32 %v1046_v42, %v2279_v48  ;;  %v1492_v51 = vmul.f32 %v1007_v37, %v1007_v37  ;;  %v1559_v27 = vadd.f32 %v1558_v23, %v1557_v31  ;;  %v1423_v48 = vadd.f32 %v1422_v30, %v1421_v46 }
 0x17d   :  { %1104 = vst.msk [vmem:[%s2668_s2 + $0x150] sm:$0x3] %vm1103_vm3, %v2547_v59  ;;  %v801_v47 = vpop.f32.mrf.mxu0  ;;  %v1787_v39 = vpop.f32.mrf.mxu1  ;;  %v1426_v62 = vsel %vm1060_vm2, %v1007_v37, 0.0  ;;  %v1572_v37 = vsel %vm1060_vm2, %v1496_v22, 0.0  ;;  %v1438_v23 = vsel %vm1060_vm2, %v2517_v11, 0.0  ;;  %v1499_v30 = vmul.f32 %v2542_v5, %v2542_v5 }
 0x17e   :  { %1101 = vst.msk [vmem:[%s2668_s2 + $0x140] sm:$0xff] %vm1060_vm2, %v2566_v56  ;;  %v1010_v58 = vadd.f32 %v2455_v19, %v801_v47  ;;  %v1561_v43 = vadd.f32 %v1560_v50, %v1559_v27  ;;  %v1425_v3 = vadd.f32 %v1424_v53, %v1423_v48  ;;  %v1564_v6 = vsel %vm1060_vm2, %v1492_v51, 0.0 }
 0x17f   :  { %v803_v60 = vpop.f32.mrf.mxu0  ;;  %v1049_v13 = vpop.f32.mrf.mxu1  ;;  %v1148_v45 = vadd.s32 336, %v1106_v28  ;;  %v1500_v47 = vmul.f32 %v2503_v1, %v2503_v1  ;;  %v1440_v39 = vsel %vm1060_vm2, %v2542_v5, 0.0  ;;  %v1442_v51 = vsel %vm1060_vm2, %v2503_v1, 0.0 }
 0x180   :  { %1092 = vst.msk [vmem:[%s2668_s2 + $0xf8] sm:$0xff] %vm1060_vm2, %v1010_v58  ;;  %v1493_v54 = vmul.f32 %v1010_v58, %v1010_v58  ;;  %v2583_v0 = vadd.f32 %v1049_v13, %v2281_v52  ;;  %v1428_v7 = vsel %vm1060_vm2, %v1010_v58, 0.0  ;;  %v1563_v9 = vadd.f32 %v1562_v61, %v1561_v43 }
 0x181   :  { %v806_v19 = vpop.f32.mrf.mxu0  ;;  %v1427_v40 = vadd.f32 %v1426_v62, %v1425_v3  ;;  %v1501_v11 = vmul.f32 %v2522_v18, %v2522_v18  ;;  %v1578_v58 = vsel %vm1060_vm2, %v1499_v30, 0.0  ;;  %vm1236_vm4 = vcmp.lt.s32.totalorder %v1148_v45, 338 }
 0x182   :  { %1102 = vst.msk [vmem:[%s2668_s2 + $0x148] sm:$0xff] %vm1060_vm2, %v2583_v0  ;;  %v1015_v8 = vadd.f32 %v2468_v38, %v806_v19  ;;  %v1566_v52 = vsel %vm1060_vm2, %v1493_v54, 0.0  ;;  %v1565_v63 = vadd.f32 %v1564_v6, %v1563_v9  ;;  %v1580_v60 = vsel %vm1060_vm2, %v1500_v47, 0.0 }
 0x183   :  { %v808_v2 = vpop.f32.mrf.mxu0  ;;  %v1429_v14 = vadd.f32 %v1428_v7, %v1427_v40  ;;  %v1444_v13 = vsel %vm1060_vm2, %v2522_v18, 0.0  ;;  %v1502_v5 = vmul.f32 %v2566_v56, %v2566_v56  ;;  %v1365_v61 = vsel %vm1236_vm4, %v2547_v59, 0.0 }
 0x184   :  { %1093 = vst.msk [vmem:[%s2668_s2 + $0x100] sm:$0xff] %vm1060_vm2, %v1015_v8  ;;  %v1430_v10 = vsel %vm1060_vm2, %v1015_v8, 0.0  ;;  %v1494_v12 = vmul.f32 %v1015_v8, %v1015_v8  ;;  %v1567_v4 = vadd.f32 %v1566_v52, %v1565_v63  ;;  %v1582_v54 = vsel %vm1060_vm2, %v1501_v11, 0.0 }
 0x185   :  { %v809_v16 = vpop.f32.mrf.mxu0  ;;  %v1431_v32 = vadd.f32 %v1430_v10, %v1429_v14  ;;  %v1446_v43 = vsel %vm1060_vm2, %v2566_v56, 0.0  ;;  %v1503_v3 = vmul.f32 %v2583_v0, %v2583_v0  ;;  %v1504_v7 = vmul.f32 %v1365_v61, %v1365_v61 }
 0x186   :  { %v1568_v55 = vsel %vm1060_vm2, %v1494_v12, 0.0  ;;  %v1018_v38 = vadd.f32 %v2487_v57, %v809_v16  ;;  %v1497_v57 = vmul.f32 %v2485_v49, %v2485_v49  ;;  %v1576_v49 = vsel %vm1060_vm2, %v1498_v41, 0.0 }
 0x187   :  { %v811_v21 = vpop.f32.mrf.mxu0  ;;  %v1569_v44 = vadd.f32 %v1568_v55, %v1567_v4  ;;  %v1584_v18 = vsel %vm1060_vm2, %v1502_v5, 0.0  ;;  %v1448_v8 = vsel %vm1060_vm2, %v2583_v0, 0.0  ;;  %v1450_v40 = vsel %vm1103_vm3, %v1365_v61, 0.0 }
 0x188   :  { %1094 = vst.msk [vmem:[%s2668_s2 + $0x108] sm:$0xff] %vm1060_vm2, %v1018_v38  ;;  %v1432_v25 = vsel %vm1060_vm2, %v1018_v38, 0.0  ;;  %v1495_v26 = vmul.f32 %v1018_v38, %v1018_v38  ;;  %v1574_v15 = vsel %vm1060_vm2, %v1497_v57, 0.0  ;;  %v1586_v2 = vsel %vm1060_vm2, %v1503_v3, 0.0  ;;  %v1366_v21 = vld [vmem:[%s2666_s3] sm:$0x1] }
 0x189   :  { %v1433_v20 = vadd.f32 %v1432_v25, %v1431_v32  ;;  %v1588_v56 = vsel %vm1103_vm3, %v1504_v7, 0.0 }
 0x18a   :  { %v1570_v29 = vsel %vm1060_vm2, %v1495_v26, 0.0  ;;  %v1461_v26 = vld [vmem:[%s2667_s4] sm:$0x1] }
 0x18b   :  { %v1435_v34 = vadd.f32 %v1434_v24, %v1433_v20  ;;  %v1571_v35 = vadd.f32 %v1570_v29, %v1569_v44 }
 0x18d   :  { %v1437_v36 = vadd.f32 %v1436_v33, %v1435_v34  ;;  %v1573_v42 = vadd.f32 %v1572_v37, %v1571_v35 }
 0x18f   :  { %v1439_v31 = vadd.f32 %v1438_v23, %v1437_v36  ;;  %v1575_v46 = vadd.f32 %v1574_v15, %v1573_v42 }
 0x191   :  { %v1441_v50 = vadd.f32 %v1440_v39, %v1439_v31  ;;  %v1577_v53 = vadd.f32 %v1576_v49, %v1575_v46 }
 0x193   :  { %v1443_v27 = vadd.f32 %v1442_v51, %v1441_v50  ;;  %v1579_v48 = vadd.f32 %v1578_v58, %v1577_v53 }
 0x195   :  { %v1445_v62 = vadd.f32 %v1444_v13, %v1443_v27  ;;  %v1581_v1 = vadd.f32 %v1580_v60, %v1579_v48 }
 0x197   :  { %v1447_v19 = vadd.f32 %v1446_v43, %v1445_v62  ;;  %v1583_v6 = vadd.f32 %v1582_v54, %v1581_v1 }
 0x199   :  { %v1449_v9 = vadd.f32 %v1448_v8, %v1447_v19  ;;  %v1585_v59 = vadd.f32 %v1584_v18, %v1583_v6 }
 0x19b   :  { %v1451_v52 = vadd.f32 %v1450_v40, %v1449_v9  ;;  %v1587_v10 = vadd.f32 %v1586_v2, %v1585_v59 }
 0x19d   :  { %v1452_v12 = vrot.slane %v1451_v52, 4  ;;  %v1589_v63 = vadd.f32 %v1588_v56, %v1587_v10 }
 0x19f   :  { %v1453_v14 = vadd.f32 %v1452_v12, %v1451_v52  ;;  %v1590_v16 = vrot.slane %v1589_v63, 4 }
 0x1a1   :  { %v1454_v17 = vrot.slane %v1453_v14, 2  ;;  %v1591_v55 = vadd.f32 %v1590_v16, %v1589_v63 }
 0x1a3   :  { %v1455_v38 = vadd.f32 %v1454_v17, %v1453_v14  ;;  %v1592_v4 = vrot.slane %v1591_v55, 2 }
 0x1a5   :  { %v1456_v32 = vrot.slane %v1455_v38, 1  ;;  %v1593_v0 = vadd.f32 %v1592_v4, %v1591_v55 }
 0x1a7   :  { %v1457_v22 = vadd.f32 %v1456_v32, %v1455_v38  ;;  %v1594_v25 = vrot.slane %v1593_v0, 1 }
 0x1a9   :  { %v1458_v44 = vadd.f32 %v1457_v22, %v1366_v21  ;;  %v1595_v20 = vadd.f32 %v1594_v25, %v1593_v0 }
 0x1ab   :  { %1460 = vst.msk [vmem:[%s2666_s3] sm:$0x1] %vm19_vm1, %v1458_v44  ;;  %v1596_v24 = vadd.f32 %v1595_v20, %v1461_v26 }
 0x1ad   :  { %1597 = vst.msk [vmem:[%s2667_s4] sm:$0x1] %vm19_vm1, %v1596_v24 }

// kernel: generator_forward.13
= control target key start
LH: loop header
LB: loop body
LE: loop exit
PB: predicated region body
PF: predicated region fallthrough
CT: control target
= control target key end

     0   :  { %s3124_s0 = inlined_call_operand.vmem [shape: bf16[1568,256], index: 0, kind: input, shape index: {}]   ;;  %s3125_s1 = inlined_call_operand.vmem [shape: bf16[1,256], index: 1, kind: input, shape index: {}]   ;;  %s3126_s2 = inlined_call_operand.<no memory space> [shape: f32[1,1], index: 2, kind: input, shape index: {}]   ;;  %s3127_s3 = inlined_call_operand.vmem [shape: f32[1,1568], index: 3, kind: output, shape index: {}]  }
   0x1   :  { %v8_v0 = vstv %s3126_s2 }
   0x2   :  { %9 = vst [vmem:[#allocation2] sm:$0x1] %v8_v0 }
   0x3   :  { %s2501_s14 = smov 0   ;;  %s2503_s15 = smov 0  }
   0x4   :  { %s2505_s16 = smov 0  }
   0x5 LB: > { %s2514_s2 = sadd.s32 4294967295, %s2408_s16   ;;  %s2516_s17 = sadd.s32 1, %s2408_s16   ;;  %s2408_s16 = sphi %s2505_s16, %s3141_s16   ;;  %s2404_s15 = sphi %s2503_s15, %s3140_s15   ;;  %s2400_s14 = sphi %s2501_s14, %s3139_s14  }
   0x6   : > { %s87_s18 = ssub.s32 %s2408_s16, %s2516_s17  ;;  %s90_s19 = sadd.s32 1, %s2404_s15 }
   0x7   : > { %p88_p0 = scmp.eq.s32.totalorder %s87_s18, 0  ;;  %p100_p1 = scmp.ne.s32.totalorder %s2404_s15, %s2400_s14 }
   0x8   : > { %p101_p2 = scmp.eq.s32.totalorder %s2514_s2, 1  ;;  %p1789_p3 = scmp.ge.s32.totalorder %s2408_s16, 1 }
   0x9   : > { %s2524_s20 = scalar_select %p88_p0, %s2404_s15, %s90_s19  }
   0xa   : > { %p2526_p4 = por %p101_p2, %p100_p1  ;;  %p151_p5 = scmp.lt.s32.totalorder %s2408_s16, 3 }
   0xc   : > { %p152_p6 = pnand %p1789_p3, %p151_p5 }
   0xd   : > { %s1791_s22 = sshll.u32 (!%p152_p6), %s2514_s2, 7  ;;  %s177_s29 = sand.u32 (!%p152_p6), 1, %s2400_s14  }
   0xe   : > { %155 = sbr.rel (%p152_p6) target bundleno = 648 (0x288), region = 32  ;;  %p186_p7 = scmp.lt.s32.totalorder (!%p152_p6), %s1791_s22, 195 }
   0xf   : > { %s1790_s30 = sshll.u32 (!%p152_p6), %s177_s29, 3 }
  0x10   : > { %s2699_s4 = scalar_lea.vmem (!%p152_p6), [#allocation3], %s1790_s30  }
  0x13   : > { %v337_v1 = vlaneseq  ;;  %v2474_v2 = vmov 1966171168   ;;  %s3143_s22 = smov (!%p186_p7, %s1791_s22), 195  ;;  %v331_v48 = vld [vmem:[#allocation2] sm:$0x1]  ;;  %v2475_v51 = vmov 0  }
  0x14   : > { %v351_v3 = vunpack.c.l.s4 %v2474_v2  ;;  %v2534_v4 = vld.sshfl [vmem:[%s3125_s1] sm:$0x11 pattern:$0x75316420]  ;;  %s1952_s25 = sshll.u32 %s3143_s22, 3  ;;  %2113 = vset.pattern.permute.xlu0 %v2475_v51  ;;  %s1924_s5 = sshll.u32 (%p2526_p4), %s2514_s2, 3 }
  0x15   : > { %v2536_v5 = vshrl.u32 %v337_v1, 7  ;;  %v349_v7 = vcombine.high %v2534_v4, %v2534_v4  ;;  %s2546_s28 = scalar_lea.vmem %s3124_s0, %s1952_s25  ;;  %334 = vperm.xlu0 %2113, %v331_v48   ;;  %s1245_s6 = ssub.s32 (%p2526_p4), 13, %s1924_s5 }
  0x16   : > { %v352_v6 = vunpack.c.0.s8 %v351_v3  ;;  %v2114_v9 = vld [vmem:[%s2546_s28 + $0x74] ss:$8 sps:$4 sm:$0xff]   ;;  %v2118_v12 = vld [vmem:[%s2546_s28 + $0x70] ss:$8 sps:$4 sm:$0xff]   ;;  %v2120_v14 = vld [vmem:[%s2546_s28 + $0x64] ss:$8 sps:$4 sm:$0xff]   ;;  %s2708_s9 = scalar_lea.vmem (%p2526_p4), %s3127_s3, %s1924_s5  }
  0x17   : > { %v2116_v11 = vld [vmem:[%s2546_s28 + $0x174] ss:$8 sps:$4 sm:$0xff]   ;;  %1006 = vmatprep.subr.bf16.mxu0 %v2114_v9  ;;  %v2119_v13 = vld [vmem:[%s2546_s28 + $0x170] ss:$8 sps:$4 sm:$0xff]   ;;  %v2122_v15 = vld [vmem:[%s2546_s28 + $0x164] ss:$8 sps:$4 sm:$0xff]  }
  0x18   : > { %v2541_v8 = vsub.s32 %v352_v6, %v2536_v5  ;;  %1047 = vmatprep.subr.bf16.mxu1 %v2116_v11  ;;  %1007 = vmatpush1.bf16.xpose.msra.mxu0 %v2118_v12  ;;  %v2124_v16 = vld [vmem:[%s2546_s28 + $0x60] ss:$8 sps:$4 sm:$0xff]   ;;  %v2126_v18 = vld [vmem:[%s2546_s28 + $0x54] ss:$8 sps:$4 sm:$0xff]   ;;  %v2130_v20 = vld [vmem:[%s2546_s28 + $0x50] ss:$8 sps:$4 sm:$0xff]  }
  0x19   : > { %1048 = vmatpush1.bf16.xpose.msra.mxu1 %v2119_v13  ;;  %1008 = vmatprep.subr.bf16.mxu0 %v2120_v14  ;;  %v2125_v17 = vld [vmem:[%s2546_s28 + $0x160] ss:$8 sps:$4 sm:$0xff]   ;;  %v2128_v19 = vld [vmem:[%s2546_s28 + $0x154] ss:$8 sps:$4 sm:$0xff]   ;;  %v2131_v21 = vld [vmem:[%s2546_s28 + $0x150] ss:$8 sps:$4 sm:$0xff]  }
  0x1a   : > { %v2550_v10 = vrot.slane %v349_v7, %v2541_v8  ;;  %1049 = vmatprep.subr.bf16.mxu1 %v2122_v15  ;;  %v2132_v22 = vld [vmem:[%s2546_s28 + $0x44] ss:$8 sps:$4 sm:$0xff]   ;;  %v2136_v24 = vld [vmem:[%s2546_s28 + $0x40] ss:$8 sps:$4 sm:$0xff]   ;;  %v2138_v26 = vld [vmem:[%s2546_s28 + $0x34] ss:$8 sps:$4 sm:$0xff]  }
  0x1b   : > { %v2134_v23 = vld [vmem:[%s2546_s28 + $0x144] ss:$8 sps:$4 sm:$0xff]   ;;  %v2137_v25 = vld [vmem:[%s2546_s28 + $0x140] ss:$8 sps:$4 sm:$0xff]   ;;  %v2140_v27 = vld [vmem:[%s2546_s28 + $0x134] ss:$8 sps:$4 sm:$0xff]  }
  0x1c   : > { %1038 = vmatprep.mubr.bf16.mxu0 %v2550_v10  ;;  %1079 = vmatprep.mubr.bf16.mxu1 %v2550_v10  ;;  %v2142_v28 = vld [vmem:[%s2546_s28 + $0x30] ss:$8 sps:$4 sm:$0xff]   ;;  %v2144_v30 = vld [vmem:[%s2546_s28 + $0x24] ss:$8 sps:$4 sm:$0xff]   ;;  %v2148_v32 = vld [vmem:[%s2546_s28 + $0x20] ss:$8 sps:$4 sm:$0xff]  }
  0x1d   : > { %v2143_v29 = vld [vmem:[%s2546_s28 + $0x130] ss:$8 sps:$4 sm:$0xff]   ;;  %v2146_v31 = vld [vmem:[%s2546_s28 + $0x124] ss:$8 sps:$4 sm:$0xff]   ;;  %v2149_v33 = vld [vmem:[%s2546_s28 + $0x120] ss:$8 sps:$4 sm:$0xff]  }
  0x1e   : > { %v2150_v34 = vld [vmem:[%s2546_s28 + $0x14] ss:$8 sps:$4 sm:$0xff]   ;;  %v2154_v36 = vld [vmem:[%s2546_s28 + $0x10] ss:$8 sps:$4 sm:$0xff]   ;;  %v2156_v38 = vld [vmem:[%s2546_s28 + $0x4] ss:$8 sps:$4 sm:$0xff]  }
  0x1f   : > { %v2152_v35 = vld [vmem:[%s2546_s28 + $0x114] ss:$8 sps:$4 sm:$0xff]   ;;  %v2155_v37 = vld [vmem:[%s2546_s28 + $0x110] ss:$8 sps:$4 sm:$0xff]   ;;  %v2158_v39 = vld [vmem:[%s2546_s28 + $0x104] ss:$8 sps:$4 sm:$0xff]  }
  0x20   : > { %1009 = vmatpush1.bf16.xpose.msra.mxu0 %v2124_v16  ;;  %v2160_v40 = vld [vmem:[%s2546_s28] ss:$8 sps:$4 sm:$0xff]   ;;  %v2162_v42 = vld [vmem:[%s2546_s28 + $0xf4] ss:$8 sps:$4 sm:$0xff]   ;;  %v2166_v44 = vld [vmem:[%s2546_s28 + $0xf0] ss:$8 sps:$4 sm:$0xff]  }
  0x21   : > { %1050 = vmatpush1.bf16.xpose.msra.mxu1 %v2125_v17  ;;  %1010 = vmatprep.subr.bf16.mxu0 %v2126_v18  ;;  %v2161_v41 = vld [vmem:[%s2546_s28 + $0x100] ss:$8 sps:$4 sm:$0xff]   ;;  %v2164_v43 = vld [vmem:[%s2546_s28 + $0x1f4] ss:$8 sps:$4 sm:$0xff]   ;;  %v2167_v45 = vld [vmem:[%s2546_s28 + $0x1f0] ss:$8 sps:$4 sm:$0xff]   ;;  %v2621_v18 = vrot.slane %v2534_v4, %v2541_v8 }
  0x22   : > { %1051 = vmatprep.subr.bf16.mxu1 %v2128_v19  ;;  %v2168_v46 = vld [vmem:[%s2546_s28 + $0xe4] ss:$8 sps:$4 sm:$0xff]   ;;  %v2172_v49 = vld [vmem:[%s2546_s28 + $0xe0] ss:$8 sps:$4 sm:$0xff]   ;;  %v2174_v52 = vld [vmem:[%s2546_s28 + $0xd4] ss:$8 sps:$4 sm:$0xff]  }
  0x23   : > { %v2170_v47 = vld [vmem:[%s2546_s28 + $0x1e4] ss:$8 sps:$4 sm:$0xff]   ;;  %v2173_v50 = vld [vmem:[%s2546_s28 + $0x1e0] ss:$8 sps:$4 sm:$0xff]   ;;  %v2176_v53 = vld [vmem:[%s2546_s28 + $0x1d4] ss:$8 sps:$4 sm:$0xff]  }
  0x24   : > { %v2178_v54 = vld [vmem:[%s2546_s28 + $0xd0] ss:$8 sps:$4 sm:$0xff]   ;;  %v2180_v56 = vld [vmem:[%s2546_s28 + $0xc4] ss:$8 sps:$4 sm:$0xff]   ;;  %v2184_v58 = vld [vmem:[%s2546_s28 + $0xc0] ss:$8 sps:$4 sm:$0xff]  }
  0x25   : > { %v2179_v55 = vld [vmem:[%s2546_s28 + $0x1d0] ss:$8 sps:$4 sm:$0xff]   ;;  %v2182_v57 = vld [vmem:[%s2546_s28 + $0x1c4] ss:$8 sps:$4 sm:$0xff]   ;;  %v2185_v59 = vld [vmem:[%s2546_s28 + $0x1c0] ss:$8 sps:$4 sm:$0xff]  }
  0x26   : > { %v2186_v60 = vld [vmem:[%s2546_s28 + $0xb4] ss:$8 sps:$4 sm:$0xff]   ;;  %v2190_v62 = vld [vmem:[%s2546_s28 + $0xb0] ss:$8 sps:$4 sm:$0xff]   ;;  %v2192_v0 = vld [vmem:[%s2546_s28 + $0xa4] ss:$8 sps:$4 sm:$0xff]  }
  0x27   : > { %v2188_v61 = vld [vmem:[%s2546_s28 + $0x1b4] ss:$8 sps:$4 sm:$0xff]   ;;  %v2191_v63 = vld [vmem:[%s2546_s28 + $0x1b0] ss:$8 sps:$4 sm:$0xff]   ;;  %v2194_v1 = vld [vmem:[%s2546_s28 + $0x1a4] ss:$8 sps:$4 sm:$0xff]  }
  0x28   : > { %1011 = vmatpush1.bf16.xpose.msra.mxu0 %v2130_v20  ;;  %v2196_v2 = vld [vmem:[%s2546_s28 + $0xa0] ss:$8 sps:$4 sm:$0xff]   ;;  %v2198_v6 = vld [vmem:[%s2546_s28 + $0x94] ss:$8 sps:$4 sm:$0xff]   ;;  %v2202_v9 = vld [vmem:[%s2546_s28 + $0x90] ss:$8 sps:$4 sm:$0xff]  }
  0x29   : > { %1052 = vmatpush1.bf16.xpose.msra.mxu1 %v2131_v21  ;;  %1012 = vmatprep.subr.bf16.mxu0 %v2132_v22  ;;  %v2197_v3 = vld [vmem:[%s2546_s28 + $0x1a0] ss:$8 sps:$4 sm:$0xff]   ;;  %v2200_v7 = vld [vmem:[%s2546_s28 + $0x194] ss:$8 sps:$4 sm:$0xff]   ;;  %v2203_v11 = vld [vmem:[%s2546_s28 + $0x190] ss:$8 sps:$4 sm:$0xff]  }
  0x2a   : > { %1053 = vmatprep.subr.bf16.mxu1 %v2134_v23  ;;  %v2204_v12 = vld [vmem:[%s2546_s28 + $0x84] ss:$8 sps:$4 sm:$0xff]   ;;  %v2208_v14 = vld [vmem:[%s2546_s28 + $0x80] ss:$8 sps:$4 sm:$0xff]   ;;  %v2212_v16 = vld [vmem:[%s2546_s28 + $0x274] ss:$8 sps:$4 sm:$0xff]  }
  0x2b   : > { %v2206_v13 = vld [vmem:[%s2546_s28 + $0x184] ss:$8 sps:$4 sm:$0xff]   ;;  %v2209_v15 = vld [vmem:[%s2546_s28 + $0x180] ss:$8 sps:$4 sm:$0xff]   ;;  %v2215_v17 = vld [vmem:[%s2546_s28 + $0x374] ss:$8 sps:$4 sm:$0xff]  }
  0x2c   : > { %v2210_v19 = vld [vmem:[%s2546_s28 + $0x270] ss:$8 sps:$4 sm:$0xff]   ;;  %v2218_v21 = vld [vmem:[%s2546_s28 + $0x264] ss:$8 sps:$4 sm:$0xff]   ;;  %v2216_v4 = vld [vmem:[%s2546_s28 + $0x260] ss:$8 sps:$4 sm:$0xff]  }
  0x2d   : > { %v2213_v20 = vld [vmem:[%s2546_s28 + $0x370] ss:$8 sps:$4 sm:$0xff]   ;;  %v2221_v22 = vld [vmem:[%s2546_s28 + $0x364] ss:$8 sps:$4 sm:$0xff]   ;;  %v2219_v23 = vld [vmem:[%s2546_s28 + $0x360] ss:$8 sps:$4 sm:$0xff]  }
  0x2e   : > { %v2263_v48 = vld [vmem:[%s2546_s28 + $0x3f4] ss:$8 sps:$4 sm:$0xff]   ;;  %v2266_v51 = vld [vmem:[%s2546_s28 + $0x2e4] ss:$8 sps:$4 sm:$0xff]   ;;  %p1246_p8 = scmp.lt.s32.totalorder (%p2526_p4), %s1245_s6, 8 }
  0x30   : > { %1013 = vmatpush1.bf16.xpose.msra.mxu0 %v2136_v24  ;;  %v2224_v24 = vld [vmem:[%s2546_s28 + $0x254] ss:$8 sps:$4 sm:$0xff]  }
  0x31   : > { %1054 = vmatpush1.bf16.xpose.msra.mxu1 %v2137_v25  ;;  %1014 = vmatprep.subr.bf16.mxu0 %v2138_v26  ;;  %v2227_v25 = vld [vmem:[%s2546_s28 + $0x354] ss:$8 sps:$4 sm:$0xff]   ;;  %v2222_v26 = vld [vmem:[%s2546_s28 + $0x250] ss:$8 sps:$4 sm:$0xff]  }
  0x32   : > { %1055 = vmatprep.subr.bf16.mxu1 %v2140_v27  ;;  %v2225_v27 = vld [vmem:[%s2546_s28 + $0x350] ss:$8 sps:$4 sm:$0xff]  }
  0x38   : > { %1015 = vmatpush1.bf16.xpose.msra.mxu0 %v2142_v28  ;;  %v2230_v28 = vld [vmem:[%s2546_s28 + $0x244] ss:$8 sps:$4 sm:$0xff]  }
  0x39   : > { %1056 = vmatpush1.bf16.xpose.msra.mxu1 %v2143_v29  ;;  %1016 = vmatprep.subr.bf16.mxu0 %v2144_v30  ;;  %v2233_v29 = vld [vmem:[%s2546_s28 + $0x344] ss:$8 sps:$4 sm:$0xff]   ;;  %v2231_v30 = vld [vmem:[%s2546_s28 + $0x340] ss:$8 sps:$4 sm:$0xff]  }
  0x3a   : > { %1057 = vmatprep.subr.bf16.mxu1 %v2146_v31  ;;  %v2236_v31 = vld [vmem:[%s2546_s28 + $0x234] ss:$8 sps:$4 sm:$0xff]  }
  0x40   : > { %1017 = vmatpush1.bf16.xpose.msra.mxu0 %v2148_v32  ;;  %v2239_v32 = vld [vmem:[%s2546_s28 + $0x334] ss:$8 sps:$4 sm:$0xff]  }
  0x41   : > { %1058 = vmatpush1.bf16.xpose.msra.mxu1 %v2149_v33  ;;  %1018 = vmatprep.subr.bf16.mxu0 %v2150_v34  ;;  %v2234_v33 = vld [vmem:[%s2546_s28 + $0x230] ss:$8 sps:$4 sm:$0xff]  }
  0x42   : > { %1059 = vmatprep.subr.bf16.mxu1 %v2152_v35  ;;  %v2237_v34 = vld [vmem:[%s2546_s28 + $0x330] ss:$8 sps:$4 sm:$0xff]   ;;  %v2242_v35 = vld [vmem:[%s2546_s28 + $0x224] ss:$8 sps:$4 sm:$0xff]  }
  0x48   : > { %1019 = vmatpush1.bf16.xpose.msra.mxu0 %v2154_v36  ;;  %v2245_v36 = vld [vmem:[%s2546_s28 + $0x324] ss:$8 sps:$4 sm:$0xff]  }
  0x49   : > { %1060 = vmatpush1.bf16.xpose.msra.mxu1 %v2155_v37  ;;  %1020 = vmatprep.subr.bf16.mxu0 %v2156_v38  ;;  %v2240_v37 = vld [vmem:[%s2546_s28 + $0x220] ss:$8 sps:$4 sm:$0xff]  }
  0x4a   : > { %1061 = vmatprep.subr.bf16.mxu1 %v2158_v39  ;;  %v2243_v38 = vld [vmem:[%s2546_s28 + $0x320] ss:$8 sps:$4 sm:$0xff]   ;;  %v2248_v39 = vld [vmem:[%s2546_s28 + $0x214] ss:$8 sps:$4 sm:$0xff]  }
  0x50   : > { %1021 = vmatpush1.bf16.xpose.msra.mxu0 %v2160_v40  ;;  %v2251_v40 = vld [vmem:[%s2546_s28 + $0x314] ss:$8 sps:$4 sm:$0xff]  }
  0x51   : > { %1062 = vmatpush1.bf16.xpose.msra.mxu1 %v2161_v41  ;;  %1022 = vmatprep.subr.bf16.mxu0 %v2162_v42  ;;  %v2246_v41 = vld [vmem:[%s2546_s28 + $0x210] ss:$8 sps:$4 sm:$0xff]  }
  0x52   : > { %1063 = vmatprep.subr.bf16.mxu1 %v2164_v43  ;;  %v2249_v42 = vld [vmem:[%s2546_s28 + $0x310] ss:$8 sps:$4 sm:$0xff]   ;;  %v2254_v43 = vld [vmem:[%s2546_s28 + $0x204] ss:$8 sps:$4 sm:$0xff]  }
  0x58   : > { %1023 = vmatpush2.bf16.xpose.msra.mxu0 %v2166_v44  ;;  %v2257_v44 = vld [vmem:[%s2546_s28 + $0x304] ss:$8 sps:$4 sm:$0xff]  }
  0x59   : > { %1064 = vmatpush2.bf16.xpose.msra.mxu1 %v2167_v45  ;;  %1024 = vmatprep.subr.bf16.mxu0 %v2168_v46  ;;  %v2252_v45 = vld [vmem:[%s2546_s28 + $0x200] ss:$8 sps:$4 sm:$0xff]  }
  0x5a   : > { %1065 = vmatprep.subr.bf16.mxu1 %v2170_v47  ;;  %v2255_v46 = vld [vmem:[%s2546_s28 + $0x300] ss:$8 sps:$4 sm:$0xff]   ;;  %v2260_v47 = vld [vmem:[%s2546_s28 + $0x2f4] ss:$8 sps:$4 sm:$0xff]  }
  0x60   : > { %1025 = vmatpush2.bf16.xpose.msra.mxu0 %v2172_v49  ;;  %v2258_v49 = vld [vmem:[%s2546_s28 + $0x2f0] ss:$8 sps:$4 sm:$0xff]  }
  0x61   : > { %1066 = vmatpush2.bf16.xpose.msra.mxu1 %v2173_v50  ;;  %1026 = vmatprep.subr.bf16.mxu0 %v2174_v52  ;;  %v2261_v50 = vld [vmem:[%s2546_s28 + $0x3f0] ss:$8 sps:$4 sm:$0xff]   ;;  %v2269_v52 = vld [vmem:[%s2546_s28 + $0x3e4] ss:$8 sps:$4 sm:$0xff]  }
  0x62   : > { %1067 = vmatprep.subr.bf16.mxu1 %v2176_v53  ;;  %v2264_v53 = vld [vmem:[%s2546_s28 + $0x2e0] ss:$8 sps:$4 sm:$0xff]  }
  0x68   : > { %1027 = vmatpush2.bf16.xpose.msra.mxu0 %v2178_v54  ;;  %v2267_v54 = vld [vmem:[%s2546_s28 + $0x3e0] ss:$8 sps:$4 sm:$0xff]  }
  0x69   : > { %1068 = vmatpush2.bf16.xpose.msra.mxu1 %v2179_v55  ;;  %1028 = vmatprep.subr.bf16.mxu0 %v2180_v56  ;;  %v2272_v55 = vld [vmem:[%s2546_s28 + $0x2d4] ss:$8 sps:$4 sm:$0xff]  }
  0x6a   : > { %1069 = vmatprep.subr.bf16.mxu1 %v2182_v57  ;;  %v2275_v56 = vld [vmem:[%s2546_s28 + $0x3d4] ss:$8 sps:$4 sm:$0xff]   ;;  %v2270_v57 = vld [vmem:[%s2546_s28 + $0x2d0] ss:$8 sps:$4 sm:$0xff]  }
  0x70   : > { %1029 = vmatpush2.bf16.xpose.msra.mxu0 %v2184_v58  ;;  %v2273_v58 = vld [vmem:[%s2546_s28 + $0x3d0] ss:$8 sps:$4 sm:$0xff]  }
  0x71   : > { %1070 = vmatpush2.bf16.xpose.msra.mxu1 %v2185_v59  ;;  %1030 = vmatprep.subr.bf16.mxu0 %v2186_v60  ;;  %v2278_v59 = vld [vmem:[%s2546_s28 + $0x2c4] ss:$8 sps:$4 sm:$0xff]  }
  0x72   : > { %1071 = vmatprep.subr.bf16.mxu1 %v2188_v61  ;;  %v2281_v60 = vld [vmem:[%s2546_s28 + $0x3c4] ss:$8 sps:$4 sm:$0xff]   ;;  %v2276_v61 = vld [vmem:[%s2546_s28 + $0x2c0] ss:$8 sps:$4 sm:$0xff]  }
  0x78   : > { %1031 = vmatpush2.bf16.xpose.msra.mxu0 %v2190_v62  ;;  %v2279_v62 = vld [vmem:[%s2546_s28 + $0x3c0] ss:$8 sps:$4 sm:$0xff]  }
  0x79   : > { %1072 = vmatpush2.bf16.xpose.msra.mxu1 %v2191_v63  ;;  %1032 = vmatprep.subr.bf16.mxu0 %v2192_v0  ;;  %v2284_v63 = vld [vmem:[%s2546_s28 + $0x2b4] ss:$8 sps:$4 sm:$0xff]  }
  0x7a   : > { %1073 = vmatprep.subr.bf16.mxu1 %v2194_v1  ;;  %v2287_v0 = vld [vmem:[%s2546_s28 + $0x3b4] ss:$8 sps:$4 sm:$0xff]   ;;  %v2282_v1 = vld [vmem:[%s2546_s28 + $0x2b0] ss:$8 sps:$4 sm:$0xff]  }
  0x80   : > { %1033 = vmatpush2.bf16.xpose.msra.mxu0 %v2196_v2  ;;  %v2285_v2 = vld [vmem:[%s2546_s28 + $0x3b0] ss:$8 sps:$4 sm:$0xff]  }
  0x81   : > { %1074 = vmatpush2.bf16.xpose.msra.mxu1 %v2197_v3  ;;  %1034 = vmatprep.subr.bf16.mxu0 %v2198_v6  ;;  %v2290_v3 = vld [vmem:[%s2546_s28 + $0x2a4] ss:$8 sps:$4 sm:$0xff]  }
  0x82   : > { %1075 = vmatprep.subr.bf16.mxu1 %v2200_v7  ;;  %v2293_v6 = vld [vmem:[%s2546_s28 + $0x3a4] ss:$8 sps:$4 sm:$0xff]   ;;  %v2288_v7 = vld [vmem:[%s2546_s28 + $0x2a0] ss:$8 sps:$4 sm:$0xff]  }
  0x88   : > { %1035 = vmatpush2.bf16.xpose.msra.mxu0 %v2202_v9  ;;  %v2291_v9 = vld [vmem:[%s2546_s28 + $0x3a0] ss:$8 sps:$4 sm:$0xff]  }
  0x89   : > { %1076 = vmatpush2.bf16.xpose.msra.mxu1 %v2203_v11  ;;  %1036 = vmatprep.subr.bf16.mxu0 %v2204_v12  ;;  %v2296_v11 = vld [vmem:[%s2546_s28 + $0x294] ss:$8 sps:$4 sm:$0xff]  }
  0x8a   : > { %1077 = vmatprep.subr.bf16.mxu1 %v2206_v13  ;;  %v2299_v12 = vld [vmem:[%s2546_s28 + $0x394] ss:$8 sps:$4 sm:$0xff]   ;;  %v2294_v13 = vld [vmem:[%s2546_s28 + $0x290] ss:$8 sps:$4 sm:$0xff]  }
  0x90   : > { %1037 = vmatpush2.bf16.xpose.msra.mxu0 %v2208_v14  ;;  %v2297_v14 = vld [vmem:[%s2546_s28 + $0x390] ss:$8 sps:$4 sm:$0xff]  }
  0x91   : > { %1078 = vmatpush2.bf16.xpose.msra.mxu1 %v2209_v15  ;;  %1088 = vmatprep.subr.bf16.mxu0 %v2212_v16  ;;  %v2302_v15 = vld [vmem:[%s2546_s28 + $0x284] ss:$8 sps:$4 sm:$0xff]  }
  0x92   : > { %1129 = vmatprep.subr.bf16.mxu1 %v2215_v17  ;;  %v2305_v16 = vld [vmem:[%s2546_s28 + $0x384] ss:$8 sps:$4 sm:$0xff]   ;;  %v2300_v17 = vld [vmem:[%s2546_s28 + $0x280] ss:$8 sps:$4 sm:$0xff]  }
  0x97   : > { %1039 = vmatmul.mubr.bf16.vlgmr.msra.gmra.mxu0 %v2621_v18 }
  0x98   : > { %1080 = vmatmul.mubr.bf16.vlgmr.msra.gmra.mxu1 %v2621_v18  ;;  %1089 = vmatpush1.bf16.xpose.msra.mxu0 %v2210_v19  ;;  %v2303_v19 = vld [vmem:[%s2546_s28 + $0x380] ss:$8 sps:$4 sm:$0xff]  }
  0x99   : > { %1130 = vmatpush1.bf16.xpose.msra.mxu1 %v2213_v20  ;;  %1090 = vmatprep.subr.bf16.mxu0 %v2218_v21  ;;  %v339_v20 = vsub.s32 0, %v2536_v5  ;;  %v335_v21 = vpop.permute.xlu0 %334 }
  0x9a   : > { %1131 = vmatprep.subr.bf16.mxu1 %v2221_v22  ;;  %1120 = vmatprep.mubr.bf16.mxu0 %v2550_v10 }
  0x9b   : > { %1161 = vmatprep.mubr.bf16.mxu1 %v2550_v10  ;;  %v2228_v10 = vld [vmem:[%s2546_s28 + $0x240] ss:$8 sps:$4 sm:$0xff]   ;;  %v340_v22 = vrot.slane %v335_v21, %v339_v20 }
  0xa0   : > { %1091 = vmatpush1.bf16.xpose.msra.mxu0 %v2216_v4 }
  0xa1   : > { %1132 = vmatpush1.bf16.xpose.msra.mxu1 %v2219_v23  ;;  %1092 = vmatprep.subr.bf16.mxu0 %v2224_v24 }
  0xa2   : > { %1133 = vmatprep.subr.bf16.mxu1 %v2227_v25 }
  0xa8   : > { %1093 = vmatpush1.bf16.xpose.msra.mxu0 %v2222_v26 }
  0xa9   : > { %1134 = vmatpush1.bf16.xpose.msra.mxu1 %v2225_v27  ;;  %1094 = vmatprep.subr.bf16.mxu0 %v2230_v28 }
  0xaa   : > { %1135 = vmatprep.subr.bf16.mxu1 %v2233_v29 }
  0xb0   : > { %1095 = vmatpush1.bf16.xpose.msra.mxu0 %v2228_v10 }
  0xb1   : > { %1136 = vmatpush1.bf16.xpose.msra.mxu1 %v2231_v30  ;;  %1096 = vmatprep.subr.bf16.mxu0 %v2236_v31 }
  0xb2   : > { %1137 = vmatprep.subr.bf16.mxu1 %v2239_v32 }
  0xb8   : > { %1097 = vmatpush1.bf16.xpose.msra.mxu0 %v2234_v33 }
  0xb9   : > { %1138 = vmatpush1.bf16.xpose.msra.mxu1 %v2237_v34  ;;  %1098 = vmatprep.subr.bf16.mxu0 %v2242_v35 }
  0xba   : > { %1139 = vmatprep.subr.bf16.mxu1 %v2245_v36 }
  0xc0   : > { %1099 = vmatpush1.bf16.xpose.msra.mxu0 %v2240_v37 }
  0xc1   : > { %1140 = vmatpush1.bf16.xpose.msra.mxu1 %v2243_v38  ;;  %1100 = vmatprep.subr.bf16.mxu0 %v2248_v39 }
  0xc2   : > { %1141 = vmatprep.subr.bf16.mxu1 %v2251_v40 }
  0xc8   : > { %1101 = vmatpush1.bf16.xpose.msra.mxu0 %v2246_v41 }
  0xc9   : > { %1142 = vmatpush1.bf16.xpose.msra.mxu1 %v2249_v42  ;;  %1102 = vmatprep.subr.bf16.mxu0 %v2254_v43 }
  0xca   : > { %1143 = vmatprep.subr.bf16.mxu1 %v2257_v44 }
  0xd0   : > { %1103 = vmatpush1.bf16.xpose.msra.mxu0 %v2252_v45 }
  0xd1   : > { %1144 = vmatpush1.bf16.xpose.msra.mxu1 %v2255_v46  ;;  %1104 = vmatprep.subr.bf16.mxu0 %v2260_v47 }
  0xd2   : > { %1145 = vmatprep.subr.bf16.mxu1 %v2263_v48 }
  0xd8   : > { %1105 = vmatpush2.bf16.xpose.msra.mxu0 %v2258_v49 }
  0xd9   : > { %1146 = vmatpush2.bf16.xpose.msra.mxu1 %v2261_v50  ;;  %1106 = vmatprep.subr.bf16.mxu0 %v2266_v51 }
  0xda   : > { %1147 = vmatprep.subr.bf16.mxu1 %v2269_v52 }
  0xe0   : > { %1107 = vmatpush2.bf16.xpose.msra.mxu0 %v2264_v53 }
  0xe1   : > { %1148 = vmatpush2.bf16.xpose.msra.mxu1 %v2267_v54  ;;  %1108 = vmatprep.subr.bf16.mxu0 %v2272_v55 }
  0xe2   : > { %1149 = vmatprep.subr.bf16.mxu1 %v2275_v56 }
  0xe8   : > { %1109 = vmatpush2.bf16.xpose.msra.mxu0 %v2270_v57 }
  0xe9   : > { %1150 = vmatpush2.bf16.xpose.msra.mxu1 %v2273_v58  ;;  %1110 = vmatprep.subr.bf16.mxu0 %v2278_v59 }
  0xea   : > { %1151 = vmatprep.subr.bf16.mxu1 %v2281_v60 }
  0xf0   : > { %1111 = vmatpush2.bf16.xpose.msra.mxu0 %v2276_v61 }
  0xf1   : > { %1152 = vmatpush2.bf16.xpose.msra.mxu1 %v2279_v62  ;;  %1112 = vmatprep.subr.bf16.mxu0 %v2284_v63 }
  0xf2   : > { %1153 = vmatprep.subr.bf16.mxu1 %v2287_v0 }
  0xf8   : > { %1113 = vmatpush2.bf16.xpose.msra.mxu0 %v2282_v1 }
  0xf9   : > { %1154 = vmatpush2.bf16.xpose.msra.mxu1 %v2285_v2  ;;  %1114 = vmatprep.subr.bf16.mxu0 %v2290_v3 }
  0xfa   : > { %1155 = vmatprep.subr.bf16.mxu1 %v2293_v6 }
 0x100   : > { %1115 = vmatpush2.bf16.xpose.msra.mxu0 %v2288_v7 }
 0x101   : > { %1156 = vmatpush2.bf16.xpose.msra.mxu1 %v2291_v9  ;;  %1116 = vmatprep.subr.bf16.mxu0 %v2296_v11 }
 0x102   : > { %1157 = vmatprep.subr.bf16.mxu1 %v2299_v12 }
 0x108   : > { %1117 = vmatpush2.bf16.xpose.msra.mxu0 %v2294_v13 }
 0x109   : > { %1158 = vmatpush2.bf16.xpose.msra.mxu1 %v2297_v14  ;;  %1118 = vmatprep.subr.bf16.mxu0 %v2302_v15 }
 0x10a   : > { %1159 = vmatprep.subr.bf16.mxu1 %v2305_v16 }
 0x110   : > { %1119 = vmatpush2.bf16.xpose.msra.mxu0 %v2300_v17 }
 0x111   : > { %1160 = vmatpush2.bf16.xpose.msra.mxu1 %v2303_v19 }
 0x117   : > { %1121 = vmatmul.mubr.bf16.vlgmr.msra.gmra.mxu0 %v2621_v18 }
 0x118   : > { %1162 = vmatmul.mubr.bf16.vlgmr.msra.gmra.mxu1 %v2621_v18 }
 0x157   : > { %v1040_v4 = vpop.f32.mrf.mxu0 }
 0x158   : > { %v1081_v23 = vpop.f32.mrf.mxu1  ;;  %v1041_v24 = vadd.f32 %v1040_v4, %v340_v22 }
 0x159   : > { %v1082_v25 = vadd.f32 %v1081_v23, %v340_v22  ;;  %v1042_v26 = vpop.f32.mrf.mxu0 }
 0x15a   : > { %v1083_v27 = vpop.f32.mrf.mxu1  ;;  %2306 = vtanh.f32 %v1041_v24  ;;  %v1043_v28 = vadd.f32 %v1042_v26, %v340_v22 }
 0x15b   : > { %v1084_v29 = vadd.f32 %v1083_v27, %v340_v22  ;;  %2308 = vtanh.f32 %v1082_v25  ;;  %v1044_v10 = vpop.f32.mrf.mxu0 }
 0x15c   : > { %v1085_v30 = vpop.f32.mrf.mxu1  ;;  %2310 = vtanh.f32 %v1043_v28 }
 0x15d   : > { %2312 = vtanh.f32 %v1084_v29  ;;  %v1045_v31 = vpop.f32.mrf.mxu0 }
 0x15e   : > { %v1086_v18 = vpop.f32.mrf.mxu1 }
 0x167   : > { %v2307_v32 = vpop.eup %2306 }
 0x168   : > { %v2309_v5 = vpop.eup %2308 }
 0x169   : > { %v2311_v33 = vpop.eup %2310 }
 0x16a   : > { %v2313_v34 = vpop.eup %2312  ;;  %v1186_v35 = vcombine.low %v2307_v32, %v2311_v33 }
 0x16b   : > { %v1187_v36 = vcombine.low %v2309_v5, %v2313_v34 }
 0x16c   : > { %v1196_v37 = vrot.slane %v1186_v35, %v2541_v8 }
 0x16d   : > { %v1203_v38 = vrot.slane %v1187_v36, %v2541_v8 }
 0x16f   : > { %v1218_v39 = vcombine.low %v1196_v37, %v1203_v38 }
 0x171   : > { %v1226_v61 = vrot.slane %v1218_v39, %v2541_v8 }
 0x1d7   : > { %v1122_v40 = vpop.f32.mrf.mxu0 }
 0x1d8   : > { %v1163_v41 = vpop.f32.mrf.mxu1  ;;  %v1123_v42 = vadd.f32 %v1122_v40, %v340_v22 }
 0x1d9   : > { %v1164_v43 = vadd.f32 %v1163_v41, %v340_v22  ;;  %v1124_v44 = vpop.f32.mrf.mxu0 }
 0x1da   : > { %v1165_v45 = vpop.f32.mrf.mxu1  ;;  %2314 = vtanh.f32 %v1123_v42  ;;  %v1125_v46 = vadd.f32 %v1124_v44, %v340_v22 }
 0x1db   : > { %v1166_v47 = vadd.f32 %v1165_v45, %v340_v22  ;;  %2316 = vtanh.f32 %v1164_v43  ;;  %v1126_v48 = vpop.f32.mrf.mxu0 }
 0x1dc   : > { %v1167_v49 = vpop.f32.mrf.mxu1  ;;  %2318 = vtanh.f32 %v1125_v46 }
 0x1dd   : > { %2320 = vtanh.f32 %v1166_v47  ;;  %v1127_v50 = vpop.f32.mrf.mxu0 }
 0x1de   : > { %v1168_v51 = vpop.f32.mrf.mxu1 }
 0x1e7   : > { %v2315_v52 = vpop.eup %2314 }
 0x1e8   : > { %v2317_v53 = vpop.eup %2316 }
 0x1e9   : > { %v2319_v54 = vpop.eup %2318 }
 0x1ea   : > { %v2321_v55 = vpop.eup %2320  ;;  %v1188_v56 = vcombine.low %v2315_v52, %v2319_v54 }
 0x1eb   : > { %v1189_v57 = vcombine.low %v2317_v53, %v2321_v55 }
 0x1ec   : > { %v1210_v58 = vrot.slane %v1188_v56, %v2541_v8 }
 0x1ed   : > { %v1217_v59 = vrot.slane %v1189_v57, %v2541_v8 }
 0x1ef   : > { %v1219_v60 = vcombine.low %v1210_v58, %v1217_v59 }
 0x1f1   : > { %v1233_v62 = vrot.slane %v1219_v60, %v2541_v8  ;;  %1243 = sbr.rel (!%p2526_p4) target bundleno = 648 (0x288), region = 36 }
 0x1f3   : > { %v1234_v63 = vcombine.low %v1226_v61, %v1233_v62 }
 0x1f5   : > { %1236 = vst [vmem:[%s2699_s4] sm:$0xff] %v1234_v63 }
 0x1f6   : > { %s3145_s6 = smov (!%p1246_p8, %s1245_s6), 8 }
 0x1f7   : > { %s1925_s10 = sshll.u32 %s3145_s6, 4 }
 0x1f8   : > { %p1927_p9 = scmp.eq.s32.totalorder %s1925_s10, 0 }
 0x1f9   : > { %p1254_p10 = scmp.lt.u32.totalorder (!%p1927_p9), %s3145_s6, 8 }
 0x1fa   : > { %1253 = sbr.rel (%p1927_p9) target bundleno = 648 (0x288), region = 40 }
 0x1ff   : > { %1257 = sbr.rel (%p1254_p10) target bundleno = 639 (0x27f), region = 44  ;;  %s2715_s11 = sand.u32 (!%p1254_p10), 7, %s3145_s6  }
 0x200   : > { %p1274_p11 = scmp.eq.s32.totalorder (!%p1254_p10), %s2715_s11, 0  ;;  %p1928_p12 = scmp.ne.s32.totalorder (!%p1254_p10), %s2715_s11, 0 }
 0x204   : > { %1277 = sbr.rel (%p1928_p12) target bundleno = 575 (0x23f), region = 59  ;;  %s1278_s12 = sshrl.u32 (!%p1928_p12), %s3145_s6, 3 }
 0x205   : > { %s2722_s13 = sshrl.u32 (!%p1928_p12), %s1278_s12, 6 }
 0x206   : > { %p1929_p13 = scmp.le.s32.totalorder (!%p1928_p12), %s2722_s13, 0 }
 0x209   : > { %1714 = sbr.rel (%p1929_p13) target bundleno = 559 (0x22f), region = 140  ;;  %s3129_s14 = smov (!%p1929_p13), %s2708_s9 }
 0x20a   : > { %s3130_s16 = smov (!%p1929_p13), %s2699_s4  ;;  %s2731_s2 = smov (!%p1929_p13), 0  }
 0x20b   : > { %s2733_s18 = smov (!%p1929_p13), 0  }
 0x20e LB: >> { %v1291_v8 = vld [vmem:[%s2416_s16] sm:$0xff]  ;;  %v1293_v0 = vld [vmem:[%s2416_s16 + $0x8] sm:$0xff]  ;;  %v1295_v1 = vld [vmem:[%s2416_s16 + $0x10] sm:$0xff]  ;;  %s1419_s19 = sadd.s32 1, %s2420_s2  ;;  %s1285_s18 = sadd.s32 1, %s2424_s18   ;;  %s2424_s18 = sphi %s2733_s18, %s1285_s18   ;;  %s2420_s2 = sphi %s2731_s2, %s3133_s2   ;;  %s2416_s16 = sphi %s3130_s16, %s3132_s16   ;;  %s2412_s14 = sphi %s3129_s14, %s3131_s14  }
 0x20f   : >> { %1292 = vst [vmem:[%s2412_s14] sm:$0xff] %v1291_v8  ;;  %1294 = vst [vmem:[%s2412_s14 + $0x8] sm:$0xff] %v1293_v0  ;;  %v1297_v2 = vld [vmem:[%s2416_s16 + $0x18] sm:$0xff]  ;;  %v1299_v3 = vld [vmem:[%s2416_s16 + $0x20] sm:$0xff]  ;;  %p1420_p0 = scmp.ge.s32.totalorder %s1419_s19, %s2722_s13  ;;  %p1284_p1 = scmp.ge.s32.totalorder %s1285_s18, %s2722_s13 }
 0x210   : >> { %1296 = vst [vmem:[%s2412_s14 + $0x10] sm:$0xff] %v1295_v1  ;;  %v1301_v6 = vld [vmem:[%s2416_s16 + $0x28] sm:$0xff]  ;;  %1298 = vst [vmem:[%s2412_s14 + $0x18] sm:$0xff] %v1297_v2  ;;  %v1303_v7 = vld [vmem:[%s2416_s16 + $0x30] sm:$0xff] }
 0x211   : >> { %1300 = vst [vmem:[%s2412_s14 + $0x20] sm:$0xff] %v1299_v3  ;;  %1302 = vst [vmem:[%s2412_s14 + $0x28] sm:$0xff] %v1301_v6  ;;  %v1305_v9 = vld [vmem:[%s2416_s16 + $0x38] sm:$0xff]  ;;  %v1307_v11 = vld [vmem:[%s2416_s16 + $0x40] sm:$0xff]  ;;  %s3147_s19 = smov (%p1420_p0, %s1419_s19), 0 }
 0x212   : >> { %1304 = vst [vmem:[%s2412_s14 + $0x30] sm:$0xff] %v1303_v7  ;;  %1306 = vst [vmem:[%s2412_s14 + $0x38] sm:$0xff] %v1305_v9  ;;  %v1309_v12 = vld [vmem:[%s2416_s16 + $0x48] sm:$0xff]  ;;  %v1311_v13 = vld [vmem:[%s2416_s16 + $0x50] sm:$0xff]  ;;  %s1930_s21 = sshll.u32 %s3147_s19, 9  ;;  %s3133_s2 = smov %s3147_s19 }
 0x213   : >> { %1308 = vst [vmem:[%s2412_s14 + $0x40] sm:$0xff] %v1307_v11  ;;  %v1313_v14 = vld [vmem:[%s2416_s16 + $0x58] sm:$0xff]  ;;  %1310 = vst [vmem:[%s2412_s14 + $0x48] sm:$0xff] %v1309_v12  ;;  %v1315_v15 = vld [vmem:[%s2416_s16 + $0x60] sm:$0xff]  ;;  %s2789_s22 = scalar_lea.vmem %s2699_s4, %s1930_s21 [#allocation3]   ;;  %s2792_s23 = scalar_lea.vmem %s2708_s9, %s1930_s21  }
 0x214   : >> { %1312 = vst [vmem:[%s2412_s14 + $0x50] sm:$0xff] %v1311_v13  ;;  %1314 = vst [vmem:[%s2412_s14 + $0x58] sm:$0xff] %v1313_v14  ;;  %v1317_v16 = vld [vmem:[%s2416_s16 + $0x68] sm:$0xff]  ;;  %v1319_v17 = vld [vmem:[%s2416_s16 + $0x70] sm:$0xff] }
 0x215   : >> { %1316 = vst [vmem:[%s2412_s14 + $0x60] sm:$0xff] %v1315_v15  ;;  %1318 = vst [vmem:[%s2412_s14 + $0x68] sm:$0xff] %v1317_v16  ;;  %v1321_v19 = vld [vmem:[%s2416_s16 + $0x78] sm:$0xff]  ;;  %v1323_v20 = vld [vmem:[%s2416_s16 + $0x80] sm:$0xff] }
 0x216   : >> { %1320 = vst [vmem:[%s2412_s14 + $0x70] sm:$0xff] %v1319_v17  ;;  %v1325_v21 = vld [vmem:[%s2416_s16 + $0x88] sm:$0xff]  ;;  %1322 = vst [vmem:[%s2412_s14 + $0x78] sm:$0xff] %v1321_v19  ;;  %v1327_v22 = vld [vmem:[%s2416_s16 + $0x90] sm:$0xff] }
 0x217   : >> { %1324 = vst [vmem:[%s2412_s14 + $0x80] sm:$0xff] %v1323_v20  ;;  %1326 = vst [vmem:[%s2412_s14 + $0x88] sm:$0xff] %v1325_v21  ;;  %v1329_v4 = vld [vmem:[%s2416_s16 + $0x98] sm:$0xff]  ;;  %v1331_v23 = vld [vmem:[%s2416_s16 + $0xa0] sm:$0xff] }
 0x218   : >> { %1328 = vst [vmem:[%s2412_s14 + $0x90] sm:$0xff] %v1327_v22  ;;  %1330 = vst [vmem:[%s2412_s14 + $0x98] sm:$0xff] %v1329_v4  ;;  %v1333_v24 = vld [vmem:[%s2416_s16 + $0xa8] sm:$0xff]  ;;  %v1335_v25 = vld [vmem:[%s2416_s16 + $0xb0] sm:$0xff] }
 0x219   : >> { %1332 = vst [vmem:[%s2412_s14 + $0xa0] sm:$0xff] %v1331_v23  ;;  %v1337_v26 = vld [vmem:[%s2416_s16 + $0xb8] sm:$0xff]  ;;  %1334 = vst [vmem:[%s2412_s14 + $0xa8] sm:$0xff] %v1333_v24  ;;  %v1339_v27 = vld [vmem:[%s2416_s16 + $0xc0] sm:$0xff] }
 0x21a   : >> { %1336 = vst [vmem:[%s2412_s14 + $0xb0] sm:$0xff] %v1335_v25  ;;  %1338 = vst [vmem:[%s2412_s14 + $0xb8] sm:$0xff] %v1337_v26  ;;  %v1341_v28 = vld [vmem:[%s2416_s16 + $0xc8] sm:$0xff]  ;;  %v1343_v29 = vld [vmem:[%s2416_s16 + $0xd0] sm:$0xff] }
 0x21b   : >> { %1340 = vst [vmem:[%s2412_s14 + $0xc0] sm:$0xff] %v1339_v27  ;;  %1342 = vst [vmem:[%s2412_s14 + $0xc8] sm:$0xff] %v1341_v28  ;;  %v1345_v10 = vld [vmem:[%s2416_s16 + $0xd8] sm:$0xff]  ;;  %v1347_v30 = vld [vmem:[%s2416_s16 + $0xe0] sm:$0xff] }
 0x21c   : >> { %1344 = vst [vmem:[%s2412_s14 + $0xd0] sm:$0xff] %v1343_v29  ;;  %v1349_v31 = vld [vmem:[%s2416_s16 + $0xe8] sm:$0xff]  ;;  %1346 = vst [vmem:[%s2412_s14 + $0xd8] sm:$0xff] %v1345_v10  ;;  %v1351_v18 = vld [vmem:[%s2416_s16 + $0xf0] sm:$0xff] }
 0x21d   : >> { %1348 = vst [vmem:[%s2412_s14 + $0xe0] sm:$0xff] %v1347_v30  ;;  %1350 = vst [vmem:[%s2412_s14 + $0xe8] sm:$0xff] %v1349_v31  ;;  %v1353_v32 = vld [vmem:[%s2416_s16 + $0xf8] sm:$0xff]  ;;  %v1355_v5 = vld [vmem:[%s2416_s16 + $0x100] sm:$0xff] }
 0x21e   : >> { %1352 = vst [vmem:[%s2412_s14 + $0xf0] sm:$0xff] %v1351_v18  ;;  %1354 = vst [vmem:[%s2412_s14 + $0xf8] sm:$0xff] %v1353_v32  ;;  %v1357_v33 = vld [vmem:[%s2416_s16 + $0x108] sm:$0xff]  ;;  %v1359_v34 = vld [vmem:[%s2416_s16 + $0x110] sm:$0xff] }
 0x21f   : >> { %1356 = vst [vmem:[%s2412_s14 + $0x100] sm:$0xff] %v1355_v5  ;;  %v1361_v35 = vld [vmem:[%s2416_s16 + $0x118] sm:$0xff]  ;;  %1358 = vst [vmem:[%s2412_s14 + $0x108] sm:$0xff] %v1357_v33  ;;  %v1363_v36 = vld [vmem:[%s2416_s16 + $0x120] sm:$0xff] }
 0x220   : >> { %1360 = vst [vmem:[%s2412_s14 + $0x110] sm:$0xff] %v1359_v34  ;;  %1362 = vst [vmem:[%s2412_s14 + $0x118] sm:$0xff] %v1361_v35  ;;  %v1365_v37 = vld [vmem:[%s2416_s16 + $0x128] sm:$0xff]  ;;  %v1367_v38 = vld [vmem:[%s2416_s16 + $0x130] sm:$0xff] }
 0x221   : >> { %1364 = vst [vmem:[%s2412_s14 + $0x120] sm:$0xff] %v1363_v36  ;;  %1366 = vst [vmem:[%s2412_s14 + $0x128] sm:$0xff] %v1365_v37  ;;  %v1369_v39 = vld [vmem:[%s2416_s16 + $0x138] sm:$0xff]  ;;  %v1371_v40 = vld [vmem:[%s2416_s16 + $0x140] sm:$0xff] }
 0x222   : >> { %1368 = vst [vmem:[%s2412_s14 + $0x130] sm:$0xff] %v1367_v38  ;;  %v1373_v41 = vld [vmem:[%s2416_s16 + $0x148] sm:$0xff]  ;;  %1370 = vst [vmem:[%s2412_s14 + $0x138] sm:$0xff] %v1369_v39  ;;  %v1375_v42 = vld [vmem:[%s2416_s16 + $0x150] sm:$0xff] }
 0x223   : >> { %1372 = vst [vmem:[%s2412_s14 + $0x140] sm:$0xff] %v1371_v40  ;;  %1374 = vst [vmem:[%s2412_s14 + $0x148] sm:$0xff] %v1373_v41  ;;  %v1377_v43 = vld [vmem:[%s2416_s16 + $0x158] sm:$0xff]  ;;  %v1379_v44 = vld [vmem:[%s2416_s16 + $0x160] sm:$0xff] }
 0x224   : >> { %1376 = vst [vmem:[%s2412_s14 + $0x150] sm:$0xff] %v1375_v42  ;;  %1378 = vst [vmem:[%s2412_s14 + $0x158] sm:$0xff] %v1377_v43  ;;  %v1381_v45 = vld [vmem:[%s2416_s16 + $0x168] sm:$0xff]  ;;  %v1383_v46 = vld [vmem:[%s2416_s16 + $0x170] sm:$0xff] }
 0x225   : >> { %1380 = vst [vmem:[%s2412_s14 + $0x160] sm:$0xff] %v1379_v44  ;;  %v1385_v47 = vld [vmem:[%s2416_s16 + $0x178] sm:$0xff]  ;;  %1382 = vst [vmem:[%s2412_s14 + $0x168] sm:$0xff] %v1381_v45  ;;  %v1387_v48 = vld [vmem:[%s2416_s16 + $0x180] sm:$0xff] }
 0x226   : >> { %1384 = vst [vmem:[%s2412_s14 + $0x170] sm:$0xff] %v1383_v46  ;;  %1386 = vst [vmem:[%s2412_s14 + $0x178] sm:$0xff] %v1385_v47  ;;  %v1389_v49 = vld [vmem:[%s2416_s16 + $0x188] sm:$0xff]  ;;  %v1391_v50 = vld [vmem:[%s2416_s16 + $0x190] sm:$0xff] }
 0x227   : >> { %1388 = vst [vmem:[%s2412_s14 + $0x180] sm:$0xff] %v1387_v48  ;;  %1390 = vst [vmem:[%s2412_s14 + $0x188] sm:$0xff] %v1389_v49  ;;  %v1393_v51 = vld [vmem:[%s2416_s16 + $0x198] sm:$0xff]  ;;  %v1395_v52 = vld [vmem:[%s2416_s16 + $0x1a0] sm:$0xff] }
 0x228   : >> { %1392 = vst [vmem:[%s2412_s14 + $0x190] sm:$0xff] %v1391_v50  ;;  %v1397_v53 = vld [vmem:[%s2416_s16 + $0x1a8] sm:$0xff]  ;;  %1394 = vst [vmem:[%s2412_s14 + $0x198] sm:$0xff] %v1393_v51  ;;  %v1399_v54 = vld [vmem:[%s2416_s16 + $0x1b0] sm:$0xff] }
 0x229   : >> { %1396 = vst [vmem:[%s2412_s14 + $0x1a0] sm:$0xff] %v1395_v52  ;;  %1398 = vst [vmem:[%s2412_s14 + $0x1a8] sm:$0xff] %v1397_v53  ;;  %v1401_v55 = vld [vmem:[%s2416_s16 + $0x1b8] sm:$0xff]  ;;  %v1403_v56 = vld [vmem:[%s2416_s16 + $0x1c0] sm:$0xff] }
 0x22a   : >> { %1400 = vst [vmem:[%s2412_s14 + $0x1b0] sm:$0xff] %v1399_v54  ;;  %1402 = vst [vmem:[%s2412_s14 + $0x1b8] sm:$0xff] %v1401_v55  ;;  %v1405_v57 = vld [vmem:[%s2416_s16 + $0x1c8] sm:$0xff]  ;;  %v1407_v58 = vld [vmem:[%s2416_s16 + $0x1d0] sm:$0xff]  ;;  %1287 = sbr.rel (!%p1284_p1) target bundleno = 526 (0x20e), region = 146 }
 0x22b   : >> { %1404 = vst [vmem:[%s2412_s14 + $0x1c0] sm:$0xff] %v1403_v56  ;;  %v1409_v59 = vld [vmem:[%s2416_s16 + $0x1d8] sm:$0xff]  ;;  %1406 = vst [vmem:[%s2412_s14 + $0x1c8] sm:$0xff] %v1405_v57  ;;  %v1411_v60 = vld [vmem:[%s2416_s16 + $0x1e0] sm:$0xff] }
 0x22c   : >> { %1408 = vst [vmem:[%s2412_s14 + $0x1d0] sm:$0xff] %v1407_v58  ;;  %1410 = vst [vmem:[%s2412_s14 + $0x1d8] sm:$0xff] %v1409_v59  ;;  %v1413_v61 = vld [vmem:[%s2416_s16 + $0x1e8] sm:$0xff]  ;;  %v1415_v62 = vld [vmem:[%s2416_s16 + $0x1f0] sm:$0xff] }
 0x22d   : >> { %1412 = vst [vmem:[%s2412_s14 + $0x1e0] sm:$0xff] %v1411_v60  ;;  %1414 = vst [vmem:[%s2412_s14 + $0x1e8] sm:$0xff] %v1413_v61  ;;  %v1417_v63 = vld [vmem:[%s2416_s16 + $0x1f8] sm:$0xff]  ;;  %s3132_s16 = smov %s2789_s22 }
 0x22e   : >> { %1416 = vst [vmem:[%s2412_s14 + $0x1f0] sm:$0xff] %v1415_v62  ;;  %1418 = vst [vmem:[%s2412_s14 + $0x1f8] sm:$0xff] %v1417_v63  ;;  %s3131_s14 = smov %s2792_s23 }
 0x22f PF: > { %s2898_s24 = sand.u32 63, %s1278_s12   ;;  %s1953_s25 = sshll.u32 %s2722_s13, 13 }
 0x230   : > { %s1430_s26 = sshra.s32 %s1953_s25, 4  ;;  %p1935_p2 = scmp.le.s32.totalorder %s2898_s24, 0 }
 0x231   : > { %s1431_s27 = scalar_lea.vmem %s2699_s4, %s1430_s26 [#allocation3]   ;;  %s1434_s28 = scalar_lea.vmem %s2708_s9, %s1430_s26  }
 0x232   : > { %1728 = sbr.rel (%p1935_p2) target bundleno = 575 (0x23f), region = 151  ;;  %s2426_s29 = smov (!%p1935_p2), %s1434_s28  }
 0x233   : > { %s2430_s30 = smov (!%p1935_p2), %s1431_s27   ;;  %s2434_s5 = smov (!%p1935_p2), 0  }
 0x234   : > { %s2438_s7 = smov (!%p1935_p2), 0  }
 0x237 LB: >> { %v1446_v8 = vld [vmem:[%s2432_s30] sm:$0xff]  ;;  %s1448_s8 = sadd.s32 1, %s2436_s5  ;;  %s1440_s7 = sadd.s32 1, %s2440_s7   ;;  %s2440_s7 = sphi %s2438_s7, %s1440_s7   ;;  %s2436_s5 = sphi %s2434_s5, %s2435_s5   ;;  %s2432_s30 = sphi %s2430_s30, %s1453_s30   ;;  %s2428_s29 = sphi %s2426_s29, %s1454_s29  }
 0x238   : >> { %1447 = vst [vmem:[%s2428_s29] sm:$0xff] %v1446_v8  ;;  %p1449_p3 = scmp.ge.s32.totalorder %s1448_s8, %s2898_s24  ;;  %p1439_p4 = scmp.ge.s32.totalorder %s1440_s7, %s2898_s24 }
 0x23a   : >> { %s3149_s8 = smov (%p1449_p3, %s1448_s8), 0  ;;  %1442 = sbr.rel (!%p1439_p4) target bundleno = 567 (0x237), region = 157 }
 0x23b   : >> { %s1936_s10 = sshll.u32 %s3149_s8, 3  ;;  %s2435_s5 = smov %s3149_s8  }
 0x23c   : >> { %s1453_s30 = scalar_lea.vmem %s1431_s27, %s1936_s10 [#allocation3]   ;;  %s1454_s29 = scalar_lea.vmem %s1434_s28, %s1936_s10  }
 0x23f PF: > { %1457 = sbr.rel (%p1274_p11) target bundleno = 639 (0x27f), region = 77  ;;  %s2910_s12 = ssub.s32 (!%p1274_p11), %s3145_s6, %s2715_s11 }
 0x240   : > { %s1463_s13 = sshrl.u32 (!%p1274_p11), %s3145_s6, 3  ;;  %s1460_s14 = scalar_lea.vmem (!%p1274_p11), %s2699_s4, %s2910_s12 [#allocation3] }
 0x241   : > { %s1462_s16 = scalar_lea.vmem (!%p1274_p11), %s2708_s9, %s2910_s12  ;;  %s2919_s2 = sshrl.u32 (!%p1274_p11), %s1463_s13, 6 }
 0x242   : > { %p1938_p5 = scmp.le.s32.totalorder (!%p1274_p11), %s2919_s2, 0 }
 0x244   : > { %1742 = sbr.rel (%p1938_p5) target bundleno = 618 (0x26a), region = 162  ;;  %s3134_s18 = smov (!%p1938_p5), %s2708_s9 }
 0x245   : > { %s3135_s19 = smov (!%p1938_p5), %s2699_s4  ;;  %s2928_s21 = smov (!%p1938_p5), 0  }
 0x246   : > { %s2930_s22 = smov (!%p1938_p5), 0  }
 0x249 LB: >> { %v1476_v0 = vld [vmem:[%s2448_s19] sm:$0xff]  ;;  %v1478_v1 = vld [vmem:[%s2448_s19 + $0x8] sm:$0xff]  ;;  %v1480_v2 = vld [vmem:[%s2448_s19 + $0x10] sm:$0xff]  ;;  %s1604_s23 = sadd.s32 1, %s2452_s21  ;;  %s1470_s22 = sadd.s32 1, %s2456_s22   ;;  %s2456_s22 = sphi %s2930_s22, %s1470_s22   ;;  %s2452_s21 = sphi %s2928_s21, %s3138_s21   ;;  %s2448_s19 = sphi %s3135_s19, %s3137_s19   ;;  %s2444_s18 = sphi %s3134_s18, %s3136_s18  }
 0x24a   : >> { %1477 = vst [vmem:[%s2444_s18] sm:$0xff] %v1476_v0  ;;  %1479 = vst [vmem:[%s2444_s18 + $0x8] sm:$0xff] %v1478_v1  ;;  %v1482_v3 = vld [vmem:[%s2448_s19 + $0x18] sm:$0xff]  ;;  %v1484_v6 = vld [vmem:[%s2448_s19 + $0x20] sm:$0xff]  ;;  %p1605_p6 = scmp.ge.s32.totalorder %s1604_s23, %s2919_s2  ;;  %p1469_p7 = scmp.ge.s32.totalorder %s1470_s22, %s2919_s2 }
 0x24b   : >> { %1481 = vst [vmem:[%s2444_s18 + $0x10] sm:$0xff] %v1480_v2  ;;  %v1486_v7 = vld [vmem:[%s2448_s19 + $0x28] sm:$0xff]  ;;  %1483 = vst [vmem:[%s2444_s18 + $0x18] sm:$0xff] %v1482_v3  ;;  %v1488_v9 = vld [vmem:[%s2448_s19 + $0x30] sm:$0xff] }
 0x24c   : >> { %1485 = vst [vmem:[%s2444_s18 + $0x20] sm:$0xff] %v1484_v6  ;;  %1487 = vst [vmem:[%s2444_s18 + $0x28] sm:$0xff] %v1486_v7  ;;  %v1490_v11 = vld [vmem:[%s2448_s19 + $0x38] sm:$0xff]  ;;  %v1492_v12 = vld [vmem:[%s2448_s19 + $0x40] sm:$0xff]  ;;  %s3151_s23 = smov (%p1605_p6, %s1604_s23), 0 }
 0x24d   : >> { %1489 = vst [vmem:[%s2444_s18 + $0x30] sm:$0xff] %v1488_v9  ;;  %1491 = vst [vmem:[%s2444_s18 + $0x38] sm:$0xff] %v1490_v11  ;;  %v1494_v13 = vld [vmem:[%s2448_s19 + $0x48] sm:$0xff]  ;;  %v1496_v14 = vld [vmem:[%s2448_s19 + $0x50] sm:$0xff]  ;;  %s1939_s24 = sshll.u32 %s3151_s23, 9  ;;  %s3138_s21 = smov %s3151_s23 }
 0x24e   : >> { %1493 = vst [vmem:[%s2444_s18 + $0x40] sm:$0xff] %v1492_v12  ;;  %v1498_v15 = vld [vmem:[%s2448_s19 + $0x58] sm:$0xff]  ;;  %1495 = vst [vmem:[%s2444_s18 + $0x48] sm:$0xff] %v1494_v13  ;;  %v1500_v16 = vld [vmem:[%s2448_s19 + $0x60] sm:$0xff]  ;;  %s2986_s25 = scalar_lea.vmem %s2699_s4, %s1939_s24 [#allocation3]   ;;  %s2989_s26 = scalar_lea.vmem %s2708_s9, %s1939_s24  }
 0x24f   : >> { %1497 = vst [vmem:[%s2444_s18 + $0x50] sm:$0xff] %v1496_v14  ;;  %1499 = vst [vmem:[%s2444_s18 + $0x58] sm:$0xff] %v1498_v15  ;;  %v1502_v17 = vld [vmem:[%s2448_s19 + $0x68] sm:$0xff]  ;;  %v1504_v19 = vld [vmem:[%s2448_s19 + $0x70] sm:$0xff] }
 0x250   : >> { %1501 = vst [vmem:[%s2444_s18 + $0x60] sm:$0xff] %v1500_v16  ;;  %1503 = vst [vmem:[%s2444_s18 + $0x68] sm:$0xff] %v1502_v17  ;;  %v1506_v20 = vld [vmem:[%s2448_s19 + $0x78] sm:$0xff]  ;;  %v1508_v21 = vld [vmem:[%s2448_s19 + $0x80] sm:$0xff] }
 0x251   : >> { %1505 = vst [vmem:[%s2444_s18 + $0x70] sm:$0xff] %v1504_v19  ;;  %v1510_v22 = vld [vmem:[%s2448_s19 + $0x88] sm:$0xff]  ;;  %1507 = vst [vmem:[%s2444_s18 + $0x78] sm:$0xff] %v1506_v20  ;;  %v1512_v4 = vld [vmem:[%s2448_s19 + $0x90] sm:$0xff] }
 0x252   : >> { %1509 = vst [vmem:[%s2444_s18 + $0x80] sm:$0xff] %v1508_v21  ;;  %1511 = vst [vmem:[%s2444_s18 + $0x88] sm:$0xff] %v1510_v22  ;;  %v1514_v23 = vld [vmem:[%s2448_s19 + $0x98] sm:$0xff]  ;;  %v1516_v24 = vld [vmem:[%s2448_s19 + $0xa0] sm:$0xff] }
 0x253   : >> { %1513 = vst [vmem:[%s2444_s18 + $0x90] sm:$0xff] %v1512_v4  ;;  %1515 = vst [vmem:[%s2444_s18 + $0x98] sm:$0xff] %v1514_v23  ;;  %v1518_v25 = vld [vmem:[%s2448_s19 + $0xa8] sm:$0xff]  ;;  %v1520_v26 = vld [vmem:[%s2448_s19 + $0xb0] sm:$0xff] }
 0x254   : >> { %1517 = vst [vmem:[%s2444_s18 + $0xa0] sm:$0xff] %v1516_v24  ;;  %v1522_v27 = vld [vmem:[%s2448_s19 + $0xb8] sm:$0xff]  ;;  %1519 = vst [vmem:[%s2444_s18 + $0xa8] sm:$0xff] %v1518_v25  ;;  %v1524_v28 = vld [vmem:[%s2448_s19 + $0xc0] sm:$0xff] }
 0x255   : >> { %1521 = vst [vmem:[%s2444_s18 + $0xb0] sm:$0xff] %v1520_v26  ;;  %1523 = vst [vmem:[%s2444_s18 + $0xb8] sm:$0xff] %v1522_v27  ;;  %v1526_v29 = vld [vmem:[%s2448_s19 + $0xc8] sm:$0xff]  ;;  %v1528_v10 = vld [vmem:[%s2448_s19 + $0xd0] sm:$0xff] }
 0x256   : >> { %1525 = vst [vmem:[%s2444_s18 + $0xc0] sm:$0xff] %v1524_v28  ;;  %1527 = vst [vmem:[%s2444_s18 + $0xc8] sm:$0xff] %v1526_v29  ;;  %v1530_v30 = vld [vmem:[%s2448_s19 + $0xd8] sm:$0xff]  ;;  %v1532_v31 = vld [vmem:[%s2448_s19 + $0xe0] sm:$0xff] }
 0x257   : >> { %1529 = vst [vmem:[%s2444_s18 + $0xd0] sm:$0xff] %v1528_v10  ;;  %v1534_v18 = vld [vmem:[%s2448_s19 + $0xe8] sm:$0xff]  ;;  %1531 = vst [vmem:[%s2444_s18 + $0xd8] sm:$0xff] %v1530_v30  ;;  %v1536_v32 = vld [vmem:[%s2448_s19 + $0xf0] sm:$0xff] }
 0x258   : >> { %1533 = vst [vmem:[%s2444_s18 + $0xe0] sm:$0xff] %v1532_v31  ;;  %1535 = vst [vmem:[%s2444_s18 + $0xe8] sm:$0xff] %v1534_v18  ;;  %v1538_v5 = vld [vmem:[%s2448_s19 + $0xf8] sm:$0xff]  ;;  %v1540_v33 = vld [vmem:[%s2448_s19 + $0x100] sm:$0xff] }
 0x259   : >> { %1537 = vst [vmem:[%s2444_s18 + $0xf0] sm:$0xff] %v1536_v32  ;;  %1539 = vst [vmem:[%s2444_s18 + $0xf8] sm:$0xff] %v1538_v5  ;;  %v1542_v34 = vld [vmem:[%s2448_s19 + $0x108] sm:$0xff]  ;;  %v1544_v35 = vld [vmem:[%s2448_s19 + $0x110] sm:$0xff] }
 0x25a   : >> { %1541 = vst [vmem:[%s2444_s18 + $0x100] sm:$0xff] %v1540_v33  ;;  %v1546_v36 = vld [vmem:[%s2448_s19 + $0x118] sm:$0xff]  ;;  %1543 = vst [vmem:[%s2444_s18 + $0x108] sm:$0xff] %v1542_v34  ;;  %v1548_v37 = vld [vmem:[%s2448_s19 + $0x120] sm:$0xff] }
 0x25b   : >> { %1545 = vst [vmem:[%s2444_s18 + $0x110] sm:$0xff] %v1544_v35  ;;  %1547 = vst [vmem:[%s2444_s18 + $0x118] sm:$0xff] %v1546_v36  ;;  %v1550_v38 = vld [vmem:[%s2448_s19 + $0x128] sm:$0xff]  ;;  %v1552_v39 = vld [vmem:[%s2448_s19 + $0x130] sm:$0xff] }
 0x25c   : >> { %1549 = vst [vmem:[%s2444_s18 + $0x120] sm:$0xff] %v1548_v37  ;;  %1551 = vst [vmem:[%s2444_s18 + $0x128] sm:$0xff] %v1550_v38  ;;  %v1554_v40 = vld [vmem:[%s2448_s19 + $0x138] sm:$0xff]  ;;  %v1556_v41 = vld [vmem:[%s2448_s19 + $0x140] sm:$0xff] }
 0x25d   : >> { %1553 = vst [vmem:[%s2444_s18 + $0x130] sm:$0xff] %v1552_v39  ;;  %v1558_v42 = vld [vmem:[%s2448_s19 + $0x148] sm:$0xff]  ;;  %1555 = vst [vmem:[%s2444_s18 + $0x138] sm:$0xff] %v1554_v40  ;;  %v1560_v43 = vld [vmem:[%s2448_s19 + $0x150] sm:$0xff] }
 0x25e   : >> { %1557 = vst [vmem:[%s2444_s18 + $0x140] sm:$0xff] %v1556_v41  ;;  %1559 = vst [vmem:[%s2444_s18 + $0x148] sm:$0xff] %v1558_v42  ;;  %v1562_v44 = vld [vmem:[%s2448_s19 + $0x158] sm:$0xff]  ;;  %v1564_v45 = vld [vmem:[%s2448_s19 + $0x160] sm:$0xff] }
 0x25f   : >> { %1561 = vst [vmem:[%s2444_s18 + $0x150] sm:$0xff] %v1560_v43  ;;  %1563 = vst [vmem:[%s2444_s18 + $0x158] sm:$0xff] %v1562_v44  ;;  %v1566_v46 = vld [vmem:[%s2448_s19 + $0x168] sm:$0xff]  ;;  %v1568_v47 = vld [vmem:[%s2448_s19 + $0x170] sm:$0xff] }
 0x260   : >> { %1565 = vst [vmem:[%s2444_s18 + $0x160] sm:$0xff] %v1564_v45  ;;  %v1570_v48 = vld [vmem:[%s2448_s19 + $0x178] sm:$0xff]  ;;  %1567 = vst [vmem:[%s2444_s18 + $0x168] sm:$0xff] %v1566_v46  ;;  %v1572_v49 = vld [vmem:[%s2448_s19 + $0x180] sm:$0xff] }
 0x261   : >> { %1569 = vst [vmem:[%s2444_s18 + $0x170] sm:$0xff] %v1568_v47  ;;  %1571 = vst [vmem:[%s2444_s18 + $0x178] sm:$0xff] %v1570_v48  ;;  %v1574_v50 = vld [vmem:[%s2448_s19 + $0x188] sm:$0xff]  ;;  %v1576_v51 = vld [vmem:[%s2448_s19 + $0x190] sm:$0xff] }
 0x262   : >> { %1573 = vst [vmem:[%s2444_s18 + $0x180] sm:$0xff] %v1572_v49  ;;  %1575 = vst [vmem:[%s2444_s18 + $0x188] sm:$0xff] %v1574_v50  ;;  %v1578_v52 = vld [vmem:[%s2448_s19 + $0x198] sm:$0xff]  ;;  %v1580_v53 = vld [vmem:[%s2448_s19 + $0x1a0] sm:$0xff] }
 0x263   : >> { %1577 = vst [vmem:[%s2444_s18 + $0x190] sm:$0xff] %v1576_v51  ;;  %v1582_v54 = vld [vmem:[%s2448_s19 + $0x1a8] sm:$0xff]  ;;  %1579 = vst [vmem:[%s2444_s18 + $0x198] sm:$0xff] %v1578_v52  ;;  %v1584_v55 = vld [vmem:[%s2448_s19 + $0x1b0] sm:$0xff] }
 0x264   : >> { %1581 = vst [vmem:[%s2444_s18 + $0x1a0] sm:$0xff] %v1580_v53  ;;  %1583 = vst [vmem:[%s2444_s18 + $0x1a8] sm:$0xff] %v1582_v54  ;;  %v1586_v56 = vld [vmem:[%s2448_s19 + $0x1b8] sm:$0xff]  ;;  %v1588_v57 = vld [vmem:[%s2448_s19 + $0x1c0] sm:$0xff] }
 0x265   : >> { %1585 = vst [vmem:[%s2444_s18 + $0x1b0] sm:$0xff] %v1584_v55  ;;  %1587 = vst [vmem:[%s2444_s18 + $0x1b8] sm:$0xff] %v1586_v56  ;;  %v1590_v58 = vld [vmem:[%s2448_s19 + $0x1c8] sm:$0xff]  ;;  %v1592_v59 = vld [vmem:[%s2448_s19 + $0x1d0] sm:$0xff]  ;;  %1472 = sbr.rel (!%p1469_p7) target bundleno = 585 (0x249), region = 168 }
 0x266   : >> { %1589 = vst [vmem:[%s2444_s18 + $0x1c0] sm:$0xff] %v1588_v57  ;;  %v1594_v60 = vld [vmem:[%s2448_s19 + $0x1d8] sm:$0xff]  ;;  %1591 = vst [vmem:[%s2444_s18 + $0x1c8] sm:$0xff] %v1590_v58  ;;  %v1596_v61 = vld [vmem:[%s2448_s19 + $0x1e0] sm:$0xff] }
 0x267   : >> { %1593 = vst [vmem:[%s2444_s18 + $0x1d0] sm:$0xff] %v1592_v59  ;;  %1595 = vst [vmem:[%s2444_s18 + $0x1d8] sm:$0xff] %v1594_v60  ;;  %v1598_v62 = vld [vmem:[%s2448_s19 + $0x1e8] sm:$0xff]  ;;  %v1600_v63 = vld [vmem:[%s2448_s19 + $0x1f0] sm:$0xff] }
 0x268   : >> { %1597 = vst [vmem:[%s2444_s18 + $0x1e0] sm:$0xff] %v1596_v61  ;;  %1599 = vst [vmem:[%s2444_s18 + $0x1e8] sm:$0xff] %v1598_v62  ;;  %v1602_v8 = vld [vmem:[%s2448_s19 + $0x1f8] sm:$0xff]  ;;  %s3137_s19 = smov %s2986_s25 }
 0x269   : >> { %1601 = vst [vmem:[%s2444_s18 + $0x1f0] sm:$0xff] %v1600_v63  ;;  %1603 = vst [vmem:[%s2444_s18 + $0x1f8] sm:$0xff] %v1602_v8  ;;  %s3136_s18 = smov %s2989_s26 }
 0x26a PF: > { %s3095_s27 = sand.u32 63, %s1463_s13   ;;  %s1955_s28 = sshll.u32 %s2919_s2, 13 }
 0x26b   : > { %s1615_s29 = sshra.s32 %s1955_s28, 4  ;;  %p1944_p8 = scmp.le.s32.totalorder %s3095_s27, 0 }
 0x26c   : > { %s1616_s30 = scalar_lea.vmem %s2699_s4, %s1615_s29 [#allocation3]   ;;  %s1619_s5 = scalar_lea.vmem %s2708_s9, %s1615_s29  }
 0x26d   : > { %1756 = sbr.rel (%p1944_p8) target bundleno = 634 (0x27a), region = 173  ;;  %s2458_s7 = smov (!%p1944_p8), %s1619_s5  }
 0x26e   : > { %s2462_s8 = smov (!%p1944_p8), %s1616_s30   ;;  %s2466_s10 = smov (!%p1944_p8), 0  }
 0x26f   : > { %s2470_s22 = smov (!%p1944_p8), 0  }
 0x272 LB: >> { %v1631_v0 = vld [vmem:[%s2464_s8] sm:$0xff]  ;;  %s1633_s13 = sadd.s32 1, %s2468_s10  ;;  %s1625_s22 = sadd.s32 1, %s2472_s22   ;;  %s2472_s22 = sphi %s2470_s22, %s1625_s22   ;;  %s2468_s10 = sphi %s2466_s10, %s2467_s10   ;;  %s2464_s8 = sphi %s2462_s8, %s1638_s8   ;;  %s2460_s7 = sphi %s2458_s7, %s1639_s7  }
 0x273   : >> { %1632 = vst [vmem:[%s2460_s7] sm:$0xff] %v1631_v0  ;;  %p1634_p9 = scmp.ge.s32.totalorder %s1633_s13, %s3095_s27  ;;  %p1624_p10 = scmp.ge.s32.totalorder %s1625_s22, %s3095_s27 }
 0x275   : >> { %s3153_s13 = smov (%p1634_p9, %s1633_s13), 0  ;;  %1627 = sbr.rel (!%p1624_p10) target bundleno = 626 (0x272), region = 179 }
 0x276   : >> { %s1945_s2 = sshll.u32 %s3153_s13, 3  ;;  %s2467_s10 = smov %s3153_s13  }
 0x277   : >> { %s1638_s8 = scalar_lea.vmem %s1616_s30, %s1945_s2 [#allocation3]   ;;  %s1639_s7 = scalar_lea.vmem %s1619_s5, %s1945_s2  }
 0x27a PF: > { %s2476_s18 = smov 1  }
 0x27b   : > { %s1640_s19 = sshll.u32 %s2476_s18, %s2715_s11 }
 0x27c   : > { %s1947_s21 = sadd.s32 4294967295, %s1640_s19 }
 0x27d   : > { %v1650_v1 = vld [vmem:[%s1460_s14] sm:%s1947_s21] }
 0x27e   : > { %1651 = vst [vmem:[%s1462_s16] sm:%s1947_s21] %v1650_v1 }
 0x27f PF: > { %p1948_p11 = scmp.ge.u32.totalorder %s3145_s6, 8 }
 0x280   : > { %s2477_s23 = smov (!%p1948_p11), 1  }
 0x281   : > { %1260 = sbr.rel (%p1948_p11) target bundleno = 648 (0x288), region = 48  ;;  %s1261_s24 = sshll.u32 (!%p1948_p11), %s2477_s23, %s3145_s6 }
 0x282   : > { %s1949_s25 = sadd.s32 (!%p1948_p11), 4294967295, %s1261_s24 }
 0x286   : > { %v1271_v2 = vld [vmem:[%s2699_s4] sm:%s1949_s25] }
 0x287   : > { %1272 = vst [vmem:[%s2708_s9] sm:%s1949_s25] %v1271_v2 }
 0x288 PF: > { %p12_p12 = scmp.ge.s32.totalorder %s2516_s17, 4   ;;  %s3139_s14 = smov %s2404_s15 }
 0x289   : > { %s3140_s15 = smov %s2524_s20  ;;  %s3141_s16 = smov %s2516_s17 }
 0x28a   :  { %14 = sbr.rel (!%p12_p12) target bundleno = 5 (0x5), region = 190 }

</bundles_post_ra>
